<compile_context>
chip_gen: v7x
topology: tpu7x:2x2x1
jax: 0.10.0
libtpu: 0.0.40
codegen_flags: <defaults>
</compile_context>

<pallas_src>
import jax
import jax.numpy as jnp
from jax.experimental import pallas as pl
from jax.experimental.pallas import tpu as pltpu

CIN = 48
COUT = 288
_ITEMSIZE = 4  # float32


def add_conv1x1_kernel(a_ref, b_ref, w_ref, o_ref):
    # a_ref, b_ref: (1, CIN, t) tiles of the two inputs (NCHW viewed as N,C,HW)
    # w_ref:        (COUT, CIN) full weight (resident across grid steps)
    # o_ref:        (1, COUT, t) output tile, already in NCHW layout
    x = a_ref[0] + b_ref[0]                                   # (CIN, t)   VPU
    o_ref[0] = jnp.dot(
        w_ref[...], x, preferred_element_type=jnp.float32
    ).astype(o_ref.dtype)                                     # (COUT, t)  MXU


def _spatial_tile(hw, vmem_budget=8 << 20):
    """Pick a lane-aligned spatial tile (or the full extent if it fits)."""
    # Per-step VMEM, double-buffered: (2 inputs * CIN + COUT) * t * 4B * 2.
    max_t = vmem_budget // (2 * (2 * CIN + COUT) * _ITEMSIZE)
    max_t = max(128, (max_t // 128) * 128)
    if hw <= max_t:
        return hw                        # block == full array dim: always legal
    ntiles = pl.cdiv(hw, max_t)          # smallest tile count that fits budget
    t = pl.cdiv(hw, ntiles)              # balance work across tiles
    return pl.cdiv(t, 128) * 128         # lane-aligned (multiple of 128)


def add_conv1x1(x97, x83, weight):
    """x97, x83: NCHW float32 [N, 48, H, W]; weight: [288, 48, 1, 1].

    Returns NCHW [N, 288, H, W] = Conv2d(48->288, 1x1, no bias)(x97 + x83).
    """
    n, c, h, w = x97.shape
    assert c == CIN
    hw = h * w

    # Contiguous reshapes only (no data movement): NCHW -> (N, CIN, H*W).
    a = x97.reshape(n, CIN, hw)
    b = x83.reshape(n, CIN, hw)
    wmat = weight.reshape(COUT, CIN)     # 1x1 kernel -> (COUT, CIN)

    t = _spatial_tile(hw)
    grid_hw = pl.cdiv(hw, t)             # partial last block is masked by
                                         # Pallas; safe since no reduction
                                         # crosses the hw axis.

    out = pl.pallas_call(
        add_conv1x1_kernel,
        out_shape=jax.ShapeDtypeStruct((n, COUT, hw), x97.dtype),
        grid_spec=pltpu.PrefetchScalarGridSpec(
            num_scalar_prefetch=0,
            grid=(n, grid_hw),
            in_specs=[
                pl.BlockSpec((1, CIN, t), lambda i, j: (i, 0, j)),
                pl.BlockSpec((1, CIN, t), lambda i, j: (i, 0, j)),
                pl.BlockSpec((COUT, CIN), lambda i, j: (0, 0)),
            ],
            out_specs=pl.BlockSpec((1, COUT, t), lambda i, j: (i, 0, j)),
        ),
        compiler_params=pltpu.CompilerParams(
            dimension_semantics=("parallel", "parallel"),
        ),
    )(a, b, wmat)

    return out.reshape(n, COUT, h, w)


if __name__ == "__main__":
    key = jax.random.PRNGKey(0)
    k1, k2, k3 = jax.random.split(key, 3)

    # Shapes from the original module: [1, 48, 56, 56] inputs, 48 -> 288 conv.
    N, H, W = 1, 56, 56
    x97 = jax.random.normal(k1, (N, CIN, H, W), dtype=jnp.float32)
    x83 = jax.random.normal(k2, (N, CIN, H, W), dtype=jnp.float32)

    # Deterministic Conv2d weight (kaiming-uniform-like scale), (COUT, CIN, 1, 1)
    bound = 1.0 / (CIN ** 0.5)
    weight = jax.random.uniform(
        k3, (COUT, CIN, 1, 1), dtype=jnp.float32, minval=-bound, maxval=bound
    )

    out = add_conv1x1(x97, x83, weight)
    out = jax.block_until_ready(out)

    # Plain-JAX reference: 1x1 conv == per-pixel channel matmul.
    ref = jnp.einsum("oc,nchw->nohw", weight[:, :, 0, 0], x97 + x83)
    assert out.shape == (N, COUT, H, W)
    assert jnp.allclose(out, ref, atol=1e-3, rtol=1e-3), float(
        jnp.max(jnp.abs(out - ref))
    )

    print("KERNEL_OK")
</pallas_src>

<mosaic_0001>
module attributes {stable_mosaic.version = 11 : i64} {
  func.func @add_conv1x1_kernel(%arg0: i32, %arg1: i32, %arg2: memref<1x48x1664xf32, #tpu.memory_space<vmem>>, %arg3: memref<1x48x1664xf32, #tpu.memory_space<vmem>>, %arg4: memref<288x48xf32, #tpu.memory_space<vmem>>, %arg5: memref<1x288x1664xf32, #tpu.memory_space<vmem>>) attributes {dimension_semantics = [#tpu.dimension_semantics<parallel>, #tpu.dimension_semantics<parallel>], iteration_bounds = array<i64: 1, 2>, scalar_prefetch = 0 : i64, scratch_operands = 0 : i64, tpu.core_type = #tpu.core_type<tc>, window_params = [{transform_indices = @transform_0, window_bounds = array<i64: 1, 48, 1664>}, {transform_indices = @transform_1, window_bounds = array<i64: 1, 48, 1664>}, {pipeline_mode = #tpu.pipeline_mode<synchronous>, transform_indices = @transform_2, window_bounds = array<i64: 288, 48>}, {transform_indices = @transform_3, window_bounds = array<i64: 1, 288, 1664>}]} {
    %c0 = arith.constant 0 : index
    %c0_0 = arith.constant 0 : index
    %c0_1 = arith.constant 0 : index
    %0 = vector.load %arg2[%c0, %c0_0, %c0_1] : memref<1x48x1664xf32, #tpu.memory_space<vmem>>, vector<1x48x1664xf32>
    %1 = vector.shape_cast %0 : vector<1x48x1664xf32> to vector<48x1664xf32>
    %c0_2 = arith.constant 0 : index
    %c0_3 = arith.constant 0 : index
    %c0_4 = arith.constant 0 : index
    %2 = vector.load %arg3[%c0_2, %c0_3, %c0_4] : memref<1x48x1664xf32, #tpu.memory_space<vmem>>, vector<1x48x1664xf32>
    %3 = vector.shape_cast %2 : vector<1x48x1664xf32> to vector<48x1664xf32>
    %4 = arith.addf %1, %3 : vector<48x1664xf32>
    %c0_5 = arith.constant 0 : index
    %c0_6 = arith.constant 0 : index
    %5 = vector.load %arg4[%c0_5, %c0_6] : memref<288x48xf32, #tpu.memory_space<vmem>>, vector<288x48xf32>
    %cst = arith.constant dense<0.000000e+00> : vector<288x1664xf32>
    %6 = tpu.matmul %5, %4, %cst {dimension_numbers = #tpu.dot_dimension_numbers<[1], [0], [0], [1], [0, 0, 1, 1], [], []>} : vector<288x48xf32>, vector<48x1664xf32>, vector<288x1664xf32> -> vector<288x1664xf32>
    %c0_7 = arith.constant 0 : index
    %c0_8 = arith.constant 0 : index
    %c0_9 = arith.constant 0 : index
    %7 = vector.load %arg5[%c0_7, %c0_8, %c0_9] : memref<1x288x1664xf32, #tpu.memory_space<vmem>>, vector<1x288x1664xf32>
    %8 = vector.shape_cast %7 : vector<1x288x1664xf32> to vector<288x1664xf32>
    %9 = vector.shape_cast %6 : vector<288x1664xf32> to vector<1x288x1664xf32>
    tpu.vector_store %arg5[%c0_7, %c0_8, %c0_9], %9 {strides = array<i32>} : memref<1x288x1664xf32, #tpu.memory_space<vmem>>, vector<1x288x1664xf32>,
    return
  }
  func.func @transform_0(%arg0: i32, %arg1: i32) -> (i32, i32, i32) {
    %c0_i32 = arith.constant 0 : i32
    %c0_i32_0 = arith.constant 0 : i32
    return %arg0, %c0_i32, %arg1 : i32, i32, i32
  }
  func.func @transform_1(%arg0: i32, %arg1: i32) -> (i32, i32, i32) {
    %c0_i32 = arith.constant 0 : i32
    %c0_i32_0 = arith.constant 0 : i32
    return %arg0, %c0_i32, %arg1 : i32, i32, i32
  }
  func.func @transform_2(%arg0: i32, %arg1: i32) -> (i32, i32) {
    %c0_i32 = arith.constant 0 : i32
    %c0_i32_0 = arith.constant 0 : i32
    %c0_i32_1 = arith.constant 0 : i32
    return %c0_i32, %c0_i32_0 : i32, i32
  }
  func.func @transform_3(%arg0: i32, %arg1: i32) -> (i32, i32, i32) {
    %c0_i32 = arith.constant 0 : i32
    %c0_i32_0 = arith.constant 0 : i32
    return %arg0, %c0_i32, %arg1 : i32, i32, i32
  }
}

</mosaic_0001>

<bundles_post_ra>
// kernel: tpu_custom_call.1
= control target key start
LH: loop header
LB: loop body
LE: loop exit
PB: predicated region body
PF: predicated region fallthrough
CT: control target
= control target key end

     0   :  { %8 = vsyncpa [#allocation3], 0  ;;  %s5916_s0 = inlined_call_operand.hbm [shape: f32[1,48,3136], index: 0, kind: input, shape index: {}]   ;;  %s5917_s1 = inlined_call_operand.hbm [shape: f32[1,48,3136], index: 1, kind: input, shape index: {}]   ;;  %s5918_s2 = inlined_call_operand.vmem [shape: f32[288,48], index: 2, kind: input, shape index: {}]   ;;  %s5919_s3 = inlined_call_operand.hbm [shape: f32[1,288,3136], index: 3, kind: output, shape index: {}]  }
   0x1   :  { %10 = vsyncpa [#allocation3 + $0x1], 0 }
   0x2   :  { %11 = vsyncpa [#allocation6], 0 }
   0x3   :  { %13 = vsyncpa [#allocation6 + $0x1], 0 }
   0x4   :  { %14 = vsyncpa [#allocation4], 0 }
   0x5   :  { %16 = vsyncpa [#allocation4 + $0x1], 0  ;;  %s3946_s12 = smov 0   ;;  %s3948_s13 = smov 0  }
   0x6   :  { %s3950_s14 = smov 0   ;;  %s3952_s15 = smov 0  }
   0x7   :  { %s3954_s16 = smov 0   ;;  %s3956_s17 = smov 0  }
   0x8 LB: > { %s3194_s18 = sadd.s32 4294967295, %s3914_s17   ;;  %s3195_s19 = sadd.s32 4294967294, %s3914_s17   ;;  %s3914_s17 = sphi %s3956_s17, %s22_s17   ;;  %s3910_s16 = sphi %s3954_s16, %s5932_s16   ;;  %s3906_s15 = sphi %s3952_s15, %s5931_s15   ;;  %s3902_s14 = sphi %s3950_s14, %s5930_s14   ;;  %s3898_s13 = sphi %s3948_s13, %s5929_s13   ;;  %s3894_s12 = sphi %s3946_s12, %s5928_s12  }
   0x9   : > { %s31_s20 = sadd.s32 1, %s3910_s16  ;;  %s43_s21 = sadd.s32 1, %s3902_s14 }
   0xa   : > { %p32_p0 = scmp.ge.s32.totalorder %s31_s20, 2  ;;  %p50_p1 = scmp.ne.s32.totalorder %s3902_s14, %s3898_s13 }
   0xb   : > { %p51_p2 = scmp.eq.s32.totalorder %s3914_s17, 0  ;;  %p56_p3 = scmp.ne.s32.totalorder %s3898_s13, %s3894_s12 }
   0xc   : > { %s5934_s20 = smov (%p32_p0, %s31_s20), 0  ;;  %p57_p5 = scmp.eq.s32.totalorder %s3194_s18, 0 }
   0xd   : > { %p3987_p4 = por %p51_p2, %p50_p1  ;;  %s39_s23 = ssub.s32 %s3910_s16, %s5934_s20 }
   0xe   : > { %p131_p6 = scmp.eq.s32.totalorder %s3194_s18, 1  ;;  %p41_p7 = scmp.eq.s32.totalorder %s39_s23, 0 }
   0xf   : > { %p3993_p8 = por %p57_p5, %p56_p3  ;;  %p137_p10 = scmp.eq.s32.totalorder %s3195_s19, 1 }
  0x10   : > { %p3997_p9 = por %p131_p6, %p50_p1  ;;  %p5920_p12 = scmp.ge.s32.totalorder %s3914_s17, 2 }
  0x11   : > { %s4002_s26 = scalar_select %p41_p7, %s3902_s14, %s43_s21  }
  0x12   : > { %s5923_s25 = scalar_select %p3997_p9, 1, 0 }
  0x13   : > { %p4004_p11 = por %p137_p10, %p56_p3  ;;  %156 = sbr.rel (%p5920_p12) target bundleno = 98 (0x62), region = 20 }
  0x15   : > { %s5924_s27 = scalar_select %p4004_p11, 1, 0 }
  0x1a   : > { %159 = sbr.rel (!%p3987_p4) target bundleno = 62 (0x3e), region = 24  ;;  %s160_s28 = sand.u32 (%p3987_p4), 1, %s3902_s14  }
  0x1b   : > { %s165_s29 = smul.u32 (%p3987_p4), 13, %s3910_s16  ;;  %s4021_s7 = scalar_lea.sflag (%p3987_p4), [#allocation3], %s160_s28 }
  0x1c   : > { %s3669_s30 = smul.u32 (%p3987_p4), 624, %s160_s28 }
  0x1d   : > { %s166_s4 = ssub.s32 (%p3987_p4), 25, %s165_s29 }
  0x1e   : > { %p167_p13 = scmp.lt.s32.totalorder (%p3987_p4), %s166_s4, 13  ;;  %s164_s8 = scalar_lea.vmem (%p3987_p4), [#allocation2], %s3669_s30 }
  0x21   : > { %s5936_s4 = smov (!%p167_p13, %s166_s4), 13 }
  0x22   : > { %s4018_s5 = smul.u32 768, %s5936_s4 }
  0x24   : > { %s171_s6 = ssub.s32 9984, %s4018_s5 }
  0x25   : > { %172 = vsyncadd %s4021_s7, %s171_s6  ;;  %p3198_p0 = scmp.ne.s32.totalorder %s4018_s5, 0  ;;  %s3468_s9 = smul.u32 1664, %s3910_s16 }
  0x26   : > { %s3200_s10 = sshll.u32 %s5936_s4, 3  ;;  %s180_s11 = sshll.u32 %s164_s8, 4  ;;  %s4032_s11 = int_to_ptr.vmem [resolvable:$true] %s180_s11 }
  0x27   : > { %s4030_s21 = scalar_lea.hbm %s5916_s0, %s3468_s9  ;;  %s3776_s30 = scalar_lea.hbm %s5916_s0, 19200 }
  0x28   : > { %s3772_s23 = scalar_lea.hbm %s4030_s21, %s4018_s5  ;;  %p3777_p5 = scmp.lt.u32.totalorder %s4030_s21, %s5916_s0 }
  0x29   : > { %p3773_p1 = scmp.ne.s32.totalorder %s4030_s21, %s3772_s23  ;;  %p3778_p6 = scmp.lt.u32.totalorder %s3776_s30, %s3772_s23 }
  0x2a   : > { %p3780_p10 = scmp.lt.u32.totalorder %s3772_s23, %s4030_s21 }
  0x2b   : > { %p3774_p2 = pnand %p3773_p1, %p3198_p0  ;;  %p3779_p7 = por %p3778_p6, %p3777_p5 }
  0x2d   : > { %p3775_p3 = pneg %p3774_p2  ;;  %p3781_p13 = por %p3780_p10, %p3779_p7 }
  0x2f   : > { %p3782_p12 = pnand %p3781_p13, %p3775_p3 }
  0x31   : > { %3785 = shalt.err (!%p3782_p12)
}
  0x32   : > { %s3786_s9 = scalar_lea.vmem %s4032_s11, %s4018_s5  ;;  %s3916_s18 = smov [#allocation2]  }
  0x33   : > { %p3787_p1 = scmp.ne.s32.totalorder %s4032_s11, %s3786_s9  ;;  %s3790_s19 = sshll.u32 %s3916_s18, 4  ;;  %s3791_s19 = int_to_ptr.vmem [resolvable:$false] %s3790_s19 }
  0x34   : > { %s3792_s28 = scalar_lea.vmem %s3791_s19, 19968  ;;  %p3793_p9 = scmp.lt.s32.totalorder %s4032_s11, %s3791_s19 }
  0x35   : > { %p3788_p2 = pnand %p3787_p1, %p3198_p0  ;;  %p3794_p5 = scmp.lt.s32.totalorder %s3792_s28, %s3786_s9 }
  0x37   : > { %p3789_p11 = pneg %p3788_p2  ;;  %p3795_p6 = por %p3794_p5, %p3793_p9 }
  0x39   : > { %p3796_p7 = pnand %p3795_p6, %p3789_p11 }
  0x3b   : > { %3799 = shalt.err (!%p3796_p7)
}
  0x3c   : > { %s3917_s23 = smov 3200   ;;  %s3918_s29 = smov 1664  }
  0x3d   : > { %186 = dma.hbm_to_vmem [thread:$0]  (%p3198_p0), %s4030_s21, %s4018_s5, %s4032_s11, %s4021_s7, %s3917_s23, %s3918_s29, %s3200_s10  }
  0x3e PF: > { %189 = sbr.rel (!%p3987_p4) target bundleno = 98 (0x62), region = 28  ;;  %s190_s30 = sand.u32 (%p3987_p4), 1, %s3902_s14  }
  0x3f   : > { %s195_s6 = smul.u32 (%p3987_p4), 13, %s3910_s16  ;;  %s4071_s4 = scalar_lea.sflag (%p3987_p4), [#allocation6], %s190_s30 }
  0x40   : > { %s3670_s8 = smul.u32 (%p3987_p4), 624, %s190_s30 }
  0x41   : > { %s196_s9 = ssub.s32 (%p3987_p4), 25, %s195_s6 }
  0x42   : > { %p197_p9 = scmp.lt.s32.totalorder (%p3987_p4), %s196_s9, 13  ;;  %s194_s5 = scalar_lea.vmem (%p3987_p4), [#allocation5], %s3670_s8 }
  0x45   : > { %s5938_s9 = smov (!%p197_p9, %s196_s9), 13 }
  0x46   : > { %s4068_s18 = smul.u32 768, %s5938_s9 }
  0x48   : > { %s201_s19 = ssub.s32 9984, %s4068_s18 }
  0x49   : > { %202 = vsyncadd %s4071_s4, %s201_s19  ;;  %p3203_p4 = scmp.ne.s32.totalorder %s4068_s18, 0  ;;  %s3469_s22 = smul.u32 1664, %s3910_s16 }
  0x4a   : > { %s3205_s7 = sshll.u32 %s5938_s9, 3  ;;  %s210_s10 = sshll.u32 %s194_s5, 4  ;;  %s4082_s10 = int_to_ptr.vmem [resolvable:$true] %s210_s10 }
  0x4b   : > { %s4080_s28 = scalar_lea.hbm %s5917_s1, %s3469_s22  ;;  %s3804_s6 = scalar_lea.hbm %s5917_s1, 19200 }
  0x4c   : > { %s3800_s23 = scalar_lea.hbm %s4080_s28, %s4068_s18  ;;  %p3805_p3 = scmp.lt.u32.totalorder %s4080_s28, %s5917_s1 }
  0x4d   : > { %p3801_p11 = scmp.ne.s32.totalorder %s4080_s28, %s3800_s23  ;;  %p3806_p10 = scmp.lt.u32.totalorder %s3804_s6, %s3800_s23 }
  0x4e   : > { %p3808_p1 = scmp.lt.u32.totalorder %s3800_s23, %s4080_s28 }
  0x4f   : > { %p3802_p12 = pnand %p3801_p11, %p3203_p4  ;;  %p3807_p13 = por %p3806_p10, %p3805_p3 }
  0x51   : > { %p3803_p0 = pneg %p3802_p12  ;;  %p3809_p2 = por %p3808_p1, %p3807_p13 }
  0x53   : > { %p3810_p5 = pnand %p3809_p2, %p3803_p0 }
  0x55   : > { %3813 = shalt.err (!%p3810_p5)
}
  0x56   : > { %s3814_s5 = scalar_lea.vmem %s4082_s10, %s4068_s18  ;;  %s3919_s22 = smov [#allocation5]  }
  0x57   : > { %p3815_p6 = scmp.ne.s32.totalorder %s4082_s10, %s3814_s5  ;;  %s3818_s11 = sshll.u32 %s3919_s22, 4  ;;  %s3819_s11 = int_to_ptr.vmem [resolvable:$false] %s3818_s11 }
  0x58   : > { %s3820_s21 = scalar_lea.vmem %s3819_s11, 19968  ;;  %p3821_p11 = scmp.lt.s32.totalorder %s4082_s10, %s3819_s11 }
  0x59   : > { %p3816_p7 = pnand %p3815_p6, %p3203_p4  ;;  %p3822_p12 = scmp.lt.s32.totalorder %s3820_s21, %s3814_s5 }
  0x5b   : > { %p3817_p9 = pneg %p3816_p7  ;;  %p3823_p3 = por %p3822_p12, %p3821_p11 }
  0x5d   : > { %p3824_p10 = pnand %p3823_p3, %p3817_p9 }
  0x5f   : > { %3827 = shalt.err (!%p3824_p10)
}
  0x60   : > { %s3920_s23 = smov 3200   ;;  %s3921_s29 = smov 1664  }
  0x61   : > { %216 = dma.hbm_to_vmem [thread:$0]  (%p3203_p4), %s4080_s28, %s4068_s18, %s4082_s10, %s4071_s4, %s3920_s23, %s3921_s29, %s3205_s7  }
  0x62 PF: > { %p3208_p0 = scmp.ge.s32.totalorder %s3914_s17, 1  ;;  %p218_p13 = scmp.lt.s32.totalorder %s3914_s17, 3 }
  0x64   : > { %p219_p1 = pnand %p3208_p0, %p218_p13 }
  0x65   : > { %s4114_s30 = sand.u32 (!%p219_p1), 1, %s3898_s13  }
  0x66   : > { %222 = sbr.rel (%p219_p1) target bundleno = 839 (0x347), region = 32  ;;  %s225_s8 = scalar_lea.sflag (!%p219_p1), [#allocation3], %s4114_s30 }
  0x67   : > { %s3671_s6 = smul.u32 (!%p219_p1), 624, %s4114_s30 }
  0x69   : > { %s4118_s19 = scalar_lea.vmem (!%p219_p1), [#allocation2], %s3671_s6 }
  0x6d   : > { %3881 = dma.done.wait (%p3993_p8), %s225_s8, 9984  }
  0x6e   : > { %3883 = vsyncadd (%p3993_p8), %s225_s8, 4294957312  ;;  %s234_s9 = scalar_lea.sflag [#allocation6], %s4114_s30  ;;  %s4125_s18 = scalar_lea.vmem [#allocation5], %s3671_s6 }
  0x6f   : > { %3885 = dma.done.wait (%p3993_p8), %s234_s9, 9984  }
  0x70   : > { %3887 = vsyncadd (%p3993_p8), %s234_s9, 4294957312  ;;  %v3922_v0 = vmov 0.0   ;;  %v281_v1 = vld [vmem:[%s4118_s19 + $0x8] sm:$0xff]  ;;  %v294_v2 = vld [vmem:[%s4118_s19 + $0x70] sm:$0xff]  ;;  %vm550_vm0 = vcmask 392192   ;;  %s3672_s7 = smul.u32 3744, %s4114_s30 }
  0x71   : > { %723 = vmatprep.mubr.f32.mxu0 %v3922_v0  ;;  %885 = vmatprep.mubr.f32.mxu1 %v3922_v0  ;;  %v359_v3 = vld [vmem:[%s4125_s18 + $0x8] sm:$0xff]  ;;  %v372_v4 = vld [vmem:[%s4125_s18 + $0x70] sm:$0xff]  ;;  %v280_v6 = vld [vmem:[%s4118_s19] sm:$0xff]  ;;  %s3059_s24 = scalar_lea.sflag [#allocation4], %s4114_s30  ;;  %p5925_p8 = scmp.ne.s32.totalorder %s5923_s25, 0 }
  0x72   : > { %v437_v5 = vadd.f32 %v359_v3, %v281_v1  ;;  %v293_v7 = vld [vmem:[%s4118_s19 + $0x68] sm:$0xff]  ;;  %v450_v8 = vadd.f32 %v372_v4, %v294_v2  ;;  %v358_v9 = vld [vmem:[%s4125_s18] sm:$0xff]  ;;  %v307_v11 = vld [vmem:[%s4118_s19 + $0xd8] sm:$0xff]  ;;  %s4783_s10 = scalar_lea.vmem [#allocation7], %s3672_s7  ;;  %s3066_s4 = smul.u32 (%p5925_p8), 13, %s3906_s15 }
  0x73   : > { %v371_v10 = vld [vmem:[%s4125_s18 + $0x68] sm:$0xff]  ;;  %v436_v12 = vadd.f32 %v358_v9, %v280_v6  ;;  %v320_v14 = vld [vmem:[%s4118_s19 + $0x140] sm:$0xff]  ;;  %v385_v15 = vld [vmem:[%s4125_s18 + $0xd8] sm:$0xff] }
  0x74   : > { %v449_v13 = vadd.f32 %v371_v10, %v293_v7  ;;  %v398_v16 = vld [vmem:[%s4125_s18 + $0x140] sm:$0xff]  ;;  %v3579_v17 = vpack.c.bf16 %v450_v8, %v437_v5  ;;  %v463_v18 = vadd.f32 %v385_v15, %v307_v11  ;;  %v306_v20 = vld [vmem:[%s4118_s19 + $0xd0] sm:$0xff]  ;;  %v319_v21 = vld [vmem:[%s4118_s19 + $0x138] sm:$0xff]  ;;  %s3067_s7 = ssub.s32 (%p5925_p8), 25, %s3066_s4 }
  0x75   : > { %v476_v19 = vadd.f32 %v398_v16, %v320_v14  ;;  %v384_v22 = vld [vmem:[%s4125_s18 + $0xd0] sm:$0xff]  ;;  %v397_v24 = vld [vmem:[%s4125_s18 + $0x138] sm:$0xff]  ;;  %v333_v26 = vld [vmem:[%s4118_s19 + $0x1a8] sm:$0xff]  ;;  %p3068_p4 = scmp.lt.s32.totalorder (%p5925_p8), %s3067_s7, 13 }
  0x76   : > { %v3581_v23 = vpack.c.bf16 %v449_v13, %v436_v12  ;;  %v462_v25 = vadd.f32 %v384_v22, %v306_v20  ;;  %v346_v27 = vld [vmem:[%s4118_s19 + $0x210] sm:$0xff]  ;;  %3580 = vmatprep.subr.bf16.mxu0 %v3579_v17  ;;  %3663 = vmatprep.subr.bf16.mxu1 %v3579_v17  ;;  %v475_v29 = vadd.f32 %v397_v24, %v319_v21  ;;  %v411_v30 = vld [vmem:[%s4125_s18 + $0x1a8] sm:$0xff]  ;;  %v332_v32 = vld [vmem:[%s4118_s19 + $0x1a0] sm:$0xff] }
  0x77   : > { %v3583_v28 = vpack.c.bf16 %v476_v19, %v463_v18  ;;  %v424_v31 = vld [vmem:[%s4125_s18 + $0x210] sm:$0xff]  ;;  %v489_v33 = vadd.f32 %v411_v30, %v333_v26  ;;  %v345_v35 = vld [vmem:[%s4118_s19 + $0x208] sm:$0xff]  ;;  %v410_v36 = vld [vmem:[%s4125_s18 + $0x1a0] sm:$0xff] }
  0x78   : > { %3582 = vmatpush1.bf16.msra.mxu0 %v3581_v23  ;;  %3666 = vmatpush1.bf16.msra.mxu1 %v3581_v23  ;;  %v502_v34 = vadd.f32 %v424_v31, %v346_v27  ;;  %v423_v37 = vld [vmem:[%s4125_s18 + $0x208] sm:$0xff]  ;;  %v3585_v38 = vpack.c.bf16 %v475_v29, %v462_v25  ;;  %v488_v39 = vadd.f32 %v410_v36, %v332_v32  ;;  %v283_v41 = vld [vmem:[%s4118_s19 + $0x18] sm:$0xff]  ;;  %v296_v43 = vld [vmem:[%s4118_s19 + $0x80] sm:$0xff] }
  0x79   : > { %3584 = vmatprep.subr.bf16.mxu0 %v3583_v28  ;;  %3664 = vmatprep.subr.bf16.mxu1 %v3583_v28  ;;  %v501_v40 = vadd.f32 %v423_v37, %v345_v35  ;;  %v361_v44 = vld [vmem:[%s4125_s18 + $0x18] sm:$0xff]  ;;  %v374_v45 = vld [vmem:[%s4125_s18 + $0x80] sm:$0xff]  ;;  %v285_v48 = vld [vmem:[%s4118_s19 + $0x28] sm:$0xff] }
  0x7a   : > { %v3587_v42 = vpack.c.bf16 %v502_v34, %v489_v33  ;;  %v439_v46 = vadd.f32 %v361_v44, %v283_v41  ;;  %v452_v47 = vadd.f32 %v374_v45, %v296_v43  ;;  %v298_v49 = vld [vmem:[%s4118_s19 + $0x90] sm:$0xff]  ;;  %v363_v50 = vld [vmem:[%s4125_s18 + $0x28] sm:$0xff]  ;;  %v295_v55 = vld [vmem:[%s4118_s19 + $0x78] sm:$0xff] }
  0x7b   : > { %v3589_v51 = vpack.c.bf16 %v501_v40, %v488_v39  ;;  %v376_v52 = vld [vmem:[%s4125_s18 + $0x90] sm:$0xff]  ;;  %v441_v53 = vadd.f32 %v363_v50, %v285_v48  ;;  %v373_v59 = vld [vmem:[%s4125_s18 + $0x78] sm:$0xff]  ;;  %v284_v60 = vld [vmem:[%s4118_s19 + $0x20] sm:$0xff] }
  0x7c   : > { %3586 = vmatpush1.bf16.msra.mxu0 %v3585_v38  ;;  %3667 = vmatpush1.bf16.msra.mxu1 %v3585_v38  ;;  %v282_v54 = vld [vmem:[%s4118_s19 + $0x10] sm:$0xff]  ;;  %v3591_v56 = vpack.c.bf16 %v452_v47, %v439_v46  ;;  %v454_v57 = vadd.f32 %v376_v52, %v298_v49  ;;  %v451_v62 = vadd.f32 %v373_v59, %v295_v55  ;;  %v297_v63 = vld [vmem:[%s4118_s19 + $0x88] sm:$0xff]  ;;  %v362_v1 = vld [vmem:[%s4125_s18 + $0x20] sm:$0xff] }
  0x7d   : > { %3588 = vmatprep.subr.bf16.mxu0 %v3587_v42  ;;  %3665 = vmatprep.subr.bf16.mxu1 %v3587_v42  ;;  %v360_v58 = vld [vmem:[%s4125_s18 + $0x10] sm:$0xff]  ;;  %v375_v2 = vld [vmem:[%s4125_s18 + $0x88] sm:$0xff]  ;;  %v440_v4 = vadd.f32 %v362_v1, %v284_v60  ;;  %v308_v15 = vld [vmem:[%s4118_s19 + $0xe0] sm:$0xff] }
  0x7e   : > { %v438_v61 = vadd.f32 %v360_v58, %v282_v54  ;;  %v3603_v3 = vpack.c.bf16 %v454_v57, %v441_v53  ;;  %v453_v5 = vadd.f32 %v375_v2, %v297_v63  ;;  %v4176_v6 = vld [vmem:[%s5918_s2] sm:$0xff]  ;;  %v4181_v7 = vld [vmem:[%s5918_s2 + $0xd8] sm:$0xff]  ;;  %v4198_v20 = vld [vmem:[%s5918_s2 + $0x8] sm:$0xff] }
  0x7f   : > { %v309_v10 = vld [vmem:[%s4118_s19 + $0xe8] sm:$0xff]  ;;  %v322_v11 = vld [vmem:[%s4118_s19 + $0x150] sm:$0xff]  ;;  %v386_v18 = vld [vmem:[%s4125_s18 + $0xe0] sm:$0xff] }
  0x80   : > { %3590 = vmatpush1.bf16.msra.mxu0 %v3589_v51  ;;  %3668 = vmatpush1.bf16.msra.mxu1 %v3589_v51  ;;  %v3593_v8 = vpack.c.bf16 %v451_v62, %v438_v61  ;;  %v3605_v9 = vpack.c.bf16 %v453_v5, %v440_v4  ;;  %v387_v12 = vld [vmem:[%s4125_s18 + $0xe8] sm:$0xff]  ;;  %v400_v13 = vld [vmem:[%s4125_s18 + $0x150] sm:$0xff]  ;;  %v464_v22 = vadd.f32 %v386_v18, %v308_v15  ;;  %v335_v25 = vld [vmem:[%s4118_s19 + $0x1b8] sm:$0xff] }
  0x81   : > { %3592 = vmatprep.subr.bf16.mxu1 %v3591_v56  ;;  %3604 = vmatprep.subr.bf16.mxu0 %v3603_v3  ;;  %v465_v14 = vadd.f32 %v387_v12, %v309_v10  ;;  %v321_v16 = vld [vmem:[%s4118_s19 + $0x148] sm:$0xff]  ;;  %v478_v17 = vadd.f32 %v400_v13, %v322_v11  ;;  %v4203_v21 = vld [vmem:[%s5918_s2 + $0xe0] sm:$0xff]  ;;  %v413_v28 = vld [vmem:[%s4125_s18 + $0x1b8] sm:$0xff] }
  0x82   : > { %v399_v19 = vld [vmem:[%s4125_s18 + $0x148] sm:$0xff]  ;;  %v348_v27 = vld [vmem:[%s4118_s19 + $0x220] sm:$0xff]  ;;  %v491_v30 = vadd.f32 %v413_v28, %v335_v25  ;;  %v334_v32 = vld [vmem:[%s4118_s19 + $0x1b0] sm:$0xff] }
  0x83   : > { %3209 = vmatmul.mubr.msk.f32.vlgmr.msra.gmra.mrb[0].mxu0 %vm550_vm0, %v4176_v6  ;;  %3236 = vmatmul.mubr.msk.f32.vlgmr.msra.gmra.mrb[0].mxu1 %vm550_vm0, %v4181_v7  ;;  %v477_v23 = vadd.f32 %v399_v19, %v321_v16  ;;  %v3595_v24 = vpack.c.bf16 %v478_v17, %v465_v14  ;;  %v426_v29 = vld [vmem:[%s4125_s18 + $0x220] sm:$0xff]  ;;  %v347_v33 = vld [vmem:[%s4118_s19 + $0x218] sm:$0xff]  ;;  %v412_v34 = vld [vmem:[%s4125_s18 + $0x1b0] sm:$0xff] }
  0x84   : > { %3594 = vmatpush1.bf16.msra.mxu1 %v3593_v8  ;;  %3606 = vmatpush1.bf16.msra.mxu0 %v3605_v9  ;;  %v504_v31 = vadd.f32 %v426_v29, %v348_v27  ;;  %v4223_v35 = vld [vmem:[%s5918_s2 + $0x10] sm:$0xff]  ;;  %v4228_v36 = vld [vmem:[%s5918_s2 + $0xe8] sm:$0xff]  ;;  %v490_v38 = vadd.f32 %v412_v34, %v334_v32  ;;  %v4234_v41 = vld [vmem:[%s5918_s2 + $0x18] sm:$0xff] }
  0x85   : > { %729 = vmatprep.mubr.f32.mxu0 %v3922_v0  ;;  %891 = vmatprep.mubr.f32.mxu1 %v3922_v0  ;;  %v3597_v26 = vpack.c.bf16 %v477_v23, %v464_v22  ;;  %v425_v37 = vld [vmem:[%s4125_s18 + $0x218] sm:$0xff]  ;;  %v4239_v42 = vld [vmem:[%s5918_s2 + $0xf0] sm:$0xff]  ;;  %v4268_v1 = vld [vmem:[%s5918_s2 + $0x20] sm:$0xff] }
  0x86   : > { %3596 = vmatprep.subr.bf16.mxu1 %v3595_v24  ;;  %v3599_v39 = vpack.c.bf16 %v504_v31, %v491_v30  ;;  %v503_v40 = vadd.f32 %v425_v37, %v347_v33  ;;  %v311_v43 = vld [vmem:[%s4118_s19 + $0xf8] sm:$0xff]  ;;  %v324_v44 = vld [vmem:[%s4118_s19 + $0x160] sm:$0xff]  ;;  %v310_v54 = vld [vmem:[%s4118_s19 + $0xf0] sm:$0xff] }
  0x87   : > { %3210 = vmatmul.mubr.msk.f32.gmra.mrb[2].mxu0 %vm550_vm0, %v4198_v20  ;;  %3237 = vmatmul.mubr.msk.f32.gmra.mrb[2].mxu1 %vm550_vm0, %v4203_v21  ;;  %v389_v45 = vld [vmem:[%s4125_s18 + $0xf8] sm:$0xff]  ;;  %v402_v47 = vld [vmem:[%s4125_s18 + $0x160] sm:$0xff]  ;;  %v388_v58 = vld [vmem:[%s4125_s18 + $0xf0] sm:$0xff] }
  0x88   : > { %735 = vmatprep.mubr.f32.mxu0 %v3922_v0  ;;  %897 = vmatprep.mubr.f32.mxu1 %v3922_v0  ;;  %v3601_v46 = vpack.c.bf16 %v503_v40, %v490_v38  ;;  %v467_v48 = vadd.f32 %v389_v45, %v311_v43  ;;  %v287_v49 = vld [vmem:[%s4118_s19 + $0x38] sm:$0xff]  ;;  %v300_v50 = vld [vmem:[%s4118_s19 + $0xa0] sm:$0xff]  ;;  %v480_v51 = vadd.f32 %v402_v47, %v324_v44  ;;  %v337_v8 = vld [vmem:[%s4118_s19 + $0x1c8] sm:$0xff] }
  0x89   : > { %3598 = vmatpush1.bf16.msra.mxu1 %v3597_v26  ;;  %v365_v52 = vld [vmem:[%s4125_s18 + $0x38] sm:$0xff]  ;;  %v378_v53 = vld [vmem:[%s4125_s18 + $0xa0] sm:$0xff]  ;;  %v466_v61 = vadd.f32 %v388_v58, %v310_v54  ;;  %v350_v9 = vld [vmem:[%s4118_s19 + $0x230] sm:$0xff] }
  0x8a   : > { %3600 = vmatprep.subr.bf16.mxu1 %v3599_v39  ;;  %v443_v55 = vadd.f32 %v365_v52, %v287_v49  ;;  %v456_v56 = vadd.f32 %v378_v53, %v300_v50  ;;  %v323_v57 = vld [vmem:[%s4118_s19 + $0x158] sm:$0xff]  ;;  %v3607_v60 = vpack.c.bf16 %v480_v51, %v467_v48  ;;  %v4283_v5 = vld [vmem:[%s5918_s2 + $0x100] sm:$0xff]  ;;  %v415_v10 = vld [vmem:[%s4125_s18 + $0x1c8] sm:$0xff] }
  0x8b   : > { %3211 = vmatmul.mubr.msk.f32.gmra.mrb[4].mxu0 %vm550_vm0, %v4223_v35  ;;  %3238 = vmatmul.mubr.msk.f32.gmra.mrb[4].mxu1 %vm550_vm0, %v4228_v36  ;;  %v401_v59 = vld [vmem:[%s4125_s18 + $0x158] sm:$0xff]  ;;  %v428_v11 = vld [vmem:[%s4125_s18 + $0x230] sm:$0xff]  ;;  %v336_v12 = vld [vmem:[%s4118_s19 + $0x1c0] sm:$0xff]  ;;  %v493_v13 = vadd.f32 %v415_v10, %v337_v8 }
  0x8c   : > { %741 = vmatprep.mubr.f32.mxu0 %v3922_v0  ;;  %903 = vmatprep.mubr.f32.mxu1 %v3922_v0  ;;  %v479_v62 = vadd.f32 %v401_v59, %v323_v57  ;;  %v3615_v63 = vpack.c.bf16 %v456_v56, %v443_v55  ;;  %v4273_v2 = vld [vmem:[%s5918_s2 + $0xf8] sm:$0xff]  ;;  %v4278_v4 = vld [vmem:[%s5918_s2 + $0x28] sm:$0xff]  ;;  %v506_v14 = vadd.f32 %v428_v11, %v350_v9  ;;  %v414_v16 = vld [vmem:[%s4125_s18 + $0x1c0] sm:$0xff] }
  0x8d   : > { %3602 = vmatpush1.bf16.msra.mxu1 %v3601_v46  ;;  %3608 = vmatprep.subr.bf16.mxu0 %v3607_v60  ;;  %v349_v15 = vld [vmem:[%s4118_s19 + $0x228] sm:$0xff]  ;;  %v492_v18 = vadd.f32 %v414_v16, %v336_v12  ;;  %v4308_v24 = vld [vmem:[%s5918_s2 + $0x30] sm:$0xff]  ;;  %v299_v33 = vld [vmem:[%s4118_s19 + $0x98] sm:$0xff] }
  0x8e   : > { %v3609_v3 = vpack.c.bf16 %v479_v62, %v466_v61  ;;  %3616 = vmatprep.subr.bf16.mxu1 %v3615_v63  ;;  %v427_v17 = vld [vmem:[%s4125_s18 + $0x228] sm:$0xff]  ;;  %v3611_v22 = vpack.c.bf16 %v506_v14, %v493_v13  ;;  %v302_v27 = vld [vmem:[%s4118_s19 + $0xb0] sm:$0xff]  ;;  %v377_v39 = vld [vmem:[%s4125_s18 + $0x98] sm:$0xff] }
  0x8f   : > { %3212 = vmatmul.mubr.msk.f32.gmra.mrb[6].mxu0 %vm550_vm0, %v4234_v41  ;;  %3239 = vmatmul.mubr.msk.f32.gmra.mrb[6].mxu1 %vm550_vm0, %v4239_v42  ;;  %v505_v19 = vadd.f32 %v427_v17, %v349_v15  ;;  %v4313_v25 = vld [vmem:[%s5918_s2 + $0x108] sm:$0xff]  ;;  %v4324_v28 = vld [vmem:[%s5918_s2 + $0x38] sm:$0xff]  ;;  %v380_v30 = vld [vmem:[%s4125_s18 + $0xb0] sm:$0xff]  ;;  %v455_v50 = vadd.f32 %v377_v39, %v299_v33 }
  0x90   : > { %747 = vmatprep.mubr.f32.mxu0 %v3922_v0  ;;  %909 = vmatprep.mubr.f32.mxu1 %v3922_v0  ;;  %v289_v26 = vld [vmem:[%s4118_s19 + $0x48] sm:$0xff]  ;;  %v4333_v31 = vld [vmem:[%s5918_s2 + $0x110] sm:$0xff]  ;;  %v458_v37 = vadd.f32 %v380_v30, %v302_v27  ;;  %v4352_v47 = vld [vmem:[%s5918_s2 + $0x40] sm:$0xff] }
  0x91   : > { %3610 = vmatpush1.bf16.msra.mxu0 %v3609_v3  ;;  %v3613_v23 = vpack.c.bf16 %v505_v19, %v492_v18  ;;  %v367_v29 = vld [vmem:[%s4125_s18 + $0x48] sm:$0xff]  ;;  %v286_v32 = vld [vmem:[%s4118_s19 + $0x30] sm:$0xff]  ;;  %v312_v53 = vld [vmem:[%s4118_s19 + $0x100] sm:$0xff] }
  0x92   : > { %3612 = vmatprep.subr.bf16.mxu0 %v3611_v22  ;;  %v445_v34 = vadd.f32 %v367_v29, %v289_v26  ;;  %v364_v38 = vld [vmem:[%s4125_s18 + $0x30] sm:$0xff]  ;;  %v313_v40 = vld [vmem:[%s4118_s19 + $0x108] sm:$0xff]  ;;  %v390_v55 = vld [vmem:[%s4125_s18 + $0x100] sm:$0xff] }
  0x93   : > { %3213 = vmatmul.mubr.msk.f32.gmra.mrb[8].mxu0 %vm550_vm0, %v4268_v1  ;;  %3240 = vmatmul.mubr.msk.f32.gmra.mrb[8].mxu1 %vm550_vm0, %v4273_v2  ;;  %v326_v43 = vld [vmem:[%s4118_s19 + $0x170] sm:$0xff]  ;;  %v391_v44 = vld [vmem:[%s4125_s18 + $0x108] sm:$0xff]  ;;  %v442_v49 = vadd.f32 %v364_v38, %v286_v32  ;;  %v339_v57 = vld [vmem:[%s4118_s19 + $0x1d8] sm:$0xff]  ;;  %v468_v3 = vadd.f32 %v390_v55, %v312_v53 }
  0x94   : > { %753 = vmatprep.mubr.f32.mxu0 %v3922_v0  ;;  %915 = vmatprep.mubr.f32.mxu1 %v3922_v0  ;;  %v404_v45 = vld [vmem:[%s4125_s18 + $0x170] sm:$0xff]  ;;  %v3627_v46 = vpack.c.bf16 %v458_v37, %v445_v34  ;;  %v4357_v48 = vld [vmem:[%s5918_s2 + $0x118] sm:$0xff]  ;;  %v469_v51 = vadd.f32 %v391_v44, %v313_v40  ;;  %v352_v58 = vld [vmem:[%s4118_s19 + $0x240] sm:$0xff] }
  0x95   : > { %3614 = vmatpush1.bf16.msra.mxu0 %v3613_v23  ;;  %v482_v52 = vadd.f32 %v404_v45, %v326_v43  ;;  %v325_v54 = vld [vmem:[%s4118_s19 + $0x168] sm:$0xff]  ;;  %v417_v59 = vld [vmem:[%s4125_s18 + $0x1d8] sm:$0xff]  ;;  %v430_v60 = vld [vmem:[%s4125_s18 + $0x240] sm:$0xff]  ;;  %v3617_v62 = vpack.c.bf16 %v455_v50, %v442_v49 }
  0x96   : > { %3628 = vmatprep.subr.bf16.mxu0 %v3627_v46  ;;  %v403_v56 = vld [vmem:[%s4125_s18 + $0x168] sm:$0xff]  ;;  %v338_v9 = vld [vmem:[%s4118_s19 + $0x1d0] sm:$0xff]  ;;  %v495_v10 = vadd.f32 %v417_v59, %v339_v57  ;;  %v508_v11 = vadd.f32 %v430_v60, %v352_v58  ;;  %v351_v12 = vld [vmem:[%s4118_s19 + $0x238] sm:$0xff] }
  0x97   : > { %3214 = vmatmul.mubr.msk.f32.gmra.mrb[10].mxu0 %vm550_vm0, %v4278_v4  ;;  %3241 = vmatmul.mubr.msk.f32.gmra.mrb[10].mxu1 %vm550_vm0, %v4283_v5  ;;  %v4376_v61 = vld [vmem:[%s5918_s2 + $0x48] sm:$0xff]  ;;  %v3619_v63 = vpack.c.bf16 %v482_v52, %v469_v51  ;;  %v481_v8 = vadd.f32 %v403_v56, %v325_v54  ;;  %v416_v13 = vld [vmem:[%s4125_s18 + $0x1d0] sm:$0xff]  ;;  %v4402_v22 = vld [vmem:[%s5918_s2 + $0x58] sm:$0xff] }
  0x98   : > { %759 = vmatprep.mubr.f32.mxu0 %v3922_v0  ;;  %921 = vmatprep.mubr.f32.mxu1 %v3922_v0  ;;  %v429_v14 = vld [vmem:[%s4125_s18 + $0x238] sm:$0xff]  ;;  %v4390_v15 = vld [vmem:[%s5918_s2 + $0x50] sm:$0xff]  ;;  %v494_v17 = vadd.f32 %v416_v13, %v338_v9  ;;  %v3623_v19 = vpack.c.bf16 %v508_v11, %v495_v10  ;;  %v4413_v26 = vld [vmem:[%s5918_s2 + $0x60] sm:$0xff] }
  0x99   : > { %v3621_v16 = vpack.c.bf16 %v481_v8, %v468_v3  ;;  %v507_v18 = vadd.f32 %v429_v14, %v351_v12  ;;  %v4424_v27 = vld [vmem:[%s5918_s2 + $0x68] sm:$0xff]  ;;  %v304_v30 = vld [vmem:[%s4118_s19 + $0xc0] sm:$0xff]  ;;  %v4450_v40 = vld [vmem:[%s5918_s2 + $0x78] sm:$0xff] }
  0x9a   : > { %v291_v29 = vld [vmem:[%s4118_s19 + $0x58] sm:$0xff]  ;;  %v4438_v33 = vld [vmem:[%s5918_s2 + $0x70] sm:$0xff]  ;;  %v4461_v43 = vld [vmem:[%s5918_s2 + $0x80] sm:$0xff] }
  0x9b   : > { %3215 = vmatmul.mubr.msk.f32.gmra.mrb[12].mxu0 %vm550_vm0, %v4308_v24  ;;  %3242 = vmatmul.mubr.msk.f32.gmra.mrb[12].mxu1 %vm550_vm0, %v4313_v25  ;;  %v3625_v23 = vpack.c.bf16 %v507_v18, %v494_v17  ;;  %v369_v32 = vld [vmem:[%s4125_s18 + $0x58] sm:$0xff]  ;;  %v382_v34 = vld [vmem:[%s4125_s18 + $0xc0] sm:$0xff]  ;;  %v301_v56 = vld [vmem:[%s4118_s19 + $0xa8] sm:$0xff] }
  0x9c   : > { %765 = vmatprep.mubr.f32.mxu0 %v3922_v0  ;;  %927 = vmatprep.mubr.f32.mxu1 %v3922_v0  ;;  %v447_v37 = vadd.f32 %v369_v32, %v291_v29  ;;  %v460_v38 = vadd.f32 %v382_v34, %v304_v30  ;;  %v4472_v44 = vld [vmem:[%s5918_s2 + $0x88] sm:$0xff]  ;;  %v4483_v45 = vld [vmem:[%s5918_s2 + $0x90] sm:$0xff]  ;;  %v4494_v46 = vld [vmem:[%s5918_s2 + $0x98] sm:$0xff] }
  0x9d   : > { %v4505_v49 = vld [vmem:[%s5918_s2 + $0xa0] sm:$0xff]  ;;  %v4516_v50 = vld [vmem:[%s5918_s2 + $0xa8] sm:$0xff]  ;;  %v4527_v51 = vld [vmem:[%s5918_s2 + $0xb0] sm:$0xff] }
  0x9e   : > { %v3639_v39 = vpack.c.bf16 %v460_v38, %v447_v37  ;;  %v4538_v52 = vld [vmem:[%s5918_s2 + $0xb8] sm:$0xff]  ;;  %v4549_v53 = vld [vmem:[%s5918_s2 + $0xc0] sm:$0xff]  ;;  %v4560_v54 = vld [vmem:[%s5918_s2 + $0xc8] sm:$0xff] }
  0x9f   : > { %3216 = vmatmul.mubr.msk.f32.gmra.mrb[14].mxu0 %vm550_vm0, %v4324_v28  ;;  %3243 = vmatmul.mubr.msk.f32.gmra.mrb[14].mxu1 %vm550_vm0, %v4333_v31  ;;  %v288_v55 = vld [vmem:[%s4118_s19 + $0x40] sm:$0xff]  ;;  %v379_v58 = vld [vmem:[%s4125_s18 + $0xa8] sm:$0xff]  ;;  %v315_v59 = vld [vmem:[%s4118_s19 + $0x118] sm:$0xff] }
  0xa0   : > { %771 = vmatprep.mubr.f32.mxu0 %v3922_v0  ;;  %933 = vmatprep.mubr.f32.mxu1 %v3922_v0  ;;  %v366_v57 = vld [vmem:[%s4125_s18 + $0x40] sm:$0xff]  ;;  %v457_v9 = vadd.f32 %v379_v58, %v301_v56  ;;  %v314_v12 = vld [vmem:[%s4118_s19 + $0x110] sm:$0xff]  ;;  %v327_v13 = vld [vmem:[%s4118_s19 + $0x178] sm:$0xff] }
  0xa1   : > { %v328_v60 = vld [vmem:[%s4118_s19 + $0x180] sm:$0xff]  ;;  %v444_v8 = vadd.f32 %v366_v57, %v288_v55  ;;  %v392_v14 = vld [vmem:[%s4125_s18 + $0x110] sm:$0xff]  ;;  %v341_v17 = vld [vmem:[%s4118_s19 + $0x1e8] sm:$0xff] }
  0xa2   : > { %v4579_v3 = vld [vmem:[%s5918_s2 + $0xd0] sm:$0xff]  ;;  %v470_v32 = vadd.f32 %v392_v14, %v314_v12  ;;  %v353_v55 = vld [vmem:[%s4118_s19 + $0x248] sm:$0xff] }
  0xa3   : > { %3217 = vmatmul.mubr.msk.f32.gmra.mrb[16].mxu0 %vm550_vm0, %v4352_v47  ;;  %3244 = vmatmul.mubr.msk.f32.gmra.mrb[16].mxu1 %vm550_vm0, %v4357_v48  ;;  %v354_v18 = vld [vmem:[%s4118_s19 + $0x250] sm:$0xff]  ;;  %v3629_v29 = vpack.c.bf16 %v457_v9, %v444_v8  ;;  %v340_v37 = vld [vmem:[%s4118_s19 + $0x1e0] sm:$0xff]  ;;  %v431_v57 = vld [vmem:[%s4125_s18 + $0x248] sm:$0xff] }
  0xa4   : > { %777 = vmatprep.mubr.f32.mxu0 %v3922_v0  ;;  %1004 = vmatprep.mubr.f32.mxu1 %v3922_v0  ;;  %v418_v56 = vld [vmem:[%s4125_s18 + $0x1e0] sm:$0xff]  ;;  %v305_v9 = vld [vmem:[%s4118_s19 + $0xc8] sm:$0xff] }
  0xa5   : > { %v292_v8 = vld [vmem:[%s4118_s19 + $0x60] sm:$0xff] }
  0xa7   : > { %3218 = vmatmul.mubr.msk.f32.gmra.mrb[18].mxu0 %vm550_vm0, %v4376_v61  ;;  %3245 = vmatmul.mubr.msk.f32.vlgmr.msra.gmra.mrb[18].mxu1 %vm550_vm0, %v4176_v6 }
  0xa8   : > { %3618 = vmatpush1.bf16.msra.mxu1 %v3617_v62  ;;  %783 = vmatprep.mubr.f32.mxu0 %v3922_v0  ;;  %v393_v62 = vld [vmem:[%s4125_s18 + $0x118] sm:$0xff] }
  0xa9   : > { %1010 = vmatprep.mubr.f32.mxu1 %v3922_v0  ;;  %3620 = vmatprep.subr.bf16.mxu1 %v3619_v63  ;;  %v406_v63 = vld [vmem:[%s4125_s18 + $0x180] sm:$0xff]  ;;  %v471_v10 = vadd.f32 %v393_v62, %v315_v59  ;;  %v496_v59 = vadd.f32 %v418_v56, %v340_v37  ;;  %v329_v56 = vld [vmem:[%s4118_s19 + $0x188] sm:$0xff] }
  0xaa   : > { %v484_v11 = vadd.f32 %v406_v63, %v328_v60  ;;  %v509_v60 = vadd.f32 %v431_v57, %v353_v55  ;;  %v316_v55 = vld [vmem:[%s4118_s19 + $0x120] sm:$0xff] }
  0xab   : > { %3219 = vmatmul.mubr.msk.f32.gmra.mrb[20].mxu0 %vm550_vm0, %v4390_v15  ;;  %3246 = vmatmul.mubr.msk.f32.gmra.mrb[20].mxu1 %vm550_vm0, %v4198_v20  ;;  %v394_v57 = vld [vmem:[%s4125_s18 + $0x120] sm:$0xff] }
  0xac   : > { %789 = vmatprep.mubr.f32.mxu0 %v3922_v0  ;;  %1016 = vmatprep.mubr.f32.mxu1 %v3922_v0  ;;  %v3631_v30 = vpack.c.bf16 %v484_v11, %v471_v10  ;;  %v3637_v63 = vpack.c.bf16 %v509_v60, %v496_v59  ;;  %v370_v10 = vld [vmem:[%s4125_s18 + $0x60] sm:$0xff]  ;;  %v383_v11 = vld [vmem:[%s4125_s18 + $0xc8] sm:$0xff]  ;;  %v343_v59 = vld [vmem:[%s4118_s19 + $0x1f8] sm:$0xff] }
  0xad   : > { %3622 = vmatpush1.bf16.msra.mxu1 %v3621_v16  ;;  %v405_v16 = vld [vmem:[%s4125_s18 + $0x178] sm:$0xff]  ;;  %v448_v12 = vadd.f32 %v370_v10, %v292_v8  ;;  %v356_v60 = vld [vmem:[%s4118_s19 + $0x260] sm:$0xff]  ;;  %v472_v10 = vadd.f32 %v394_v57, %v316_v55 }
  0xae   : > { %3624 = vmatprep.subr.bf16.mxu1 %v3623_v19  ;;  %v419_v19 = vld [vmem:[%s4125_s18 + $0x1e8] sm:$0xff]  ;;  %v483_v34 = vadd.f32 %v405_v16, %v327_v13  ;;  %v461_v13 = vadd.f32 %v383_v11, %v305_v9  ;;  %v290_v16 = vld [vmem:[%s4118_s19 + $0x50] sm:$0xff] }
  0xaf   : > { %3220 = vmatmul.mubr.msk.f32.gmra.mrb[22].mxu0 %vm550_vm0, %v4402_v22  ;;  %3247 = vmatmul.mubr.msk.f32.gmra.mrb[22].mxu1 %vm550_vm0, %v4223_v35  ;;  %v497_v38 = vadd.f32 %v419_v19, %v341_v17  ;;  %v303_v17 = vld [vmem:[%s4118_s19 + $0xb8] sm:$0xff] }
  0xb0   : > { %795 = vmatprep.mubr.f32.mxu0 %v3922_v0  ;;  %1022 = vmatprep.mubr.f32.mxu1 %v3922_v0  ;;  %v3633_v58 = vpack.c.bf16 %v483_v34, %v470_v32  ;;  %v4639_v14 = vpack.c.bf16 %v461_v13, %v448_v12  ;;  %v381_v19 = vld [vmem:[%s4125_s18 + $0xb8] sm:$0xff]  ;;  %v408_v32 = vld [vmem:[%s4125_s18 + $0x190] sm:$0xff] }
  0xb1   : > { %3626 = vmatpush1.bf16.msra.mxu1 %v3625_v23  ;;  %v432_v23 = vld [vmem:[%s4125_s18 + $0x250] sm:$0xff]  ;;  %v459_v37 = vadd.f32 %v381_v19, %v303_v17  ;;  %v355_v17 = vld [vmem:[%s4118_s19 + $0x258] sm:$0xff] }
  0xb2   : > { %3640 = vmatprep.subr.bf16.mxu1 %v3639_v39  ;;  %v510_v39 = vadd.f32 %v432_v23, %v354_v18  ;;  %v368_v18 = vld [vmem:[%s4125_s18 + $0x50] sm:$0xff]  ;;  %v317_v23 = vld [vmem:[%s4118_s19 + $0x128] sm:$0xff]  ;;  %v433_v19 = vld [vmem:[%s4125_s18 + $0x258] sm:$0xff] }
  0xb3   : > { %3221 = vmatmul.mubr.msk.f32.gmra.mrb[24].mxu0 %vm550_vm0, %v4413_v26  ;;  %3248 = vmatmul.mubr.msk.f32.gmra.mrb[24].mxu1 %vm550_vm0, %v4234_v41  ;;  %v446_v34 = vadd.f32 %v368_v18, %v290_v16  ;;  %v342_v12 = vld [vmem:[%s4118_s19 + $0x1f0] sm:$0xff] }
  0xb4   : > { %801 = vmatprep.mubr.f32.mxu0 %v3922_v0  ;;  %1028 = vmatprep.mubr.f32.mxu1 %v3922_v0  ;;  %v3635_v62 = vpack.c.bf16 %v510_v39, %v497_v38  ;;  %v420_v18 = vld [vmem:[%s4125_s18 + $0x1f0] sm:$0xff] }
  0xb5   : > { %v3641_v8 = vpack.c.bf16 %v459_v37, %v446_v34 }
  0xb7   : > { %3222 = vmatmul.mubr.msk.f32.gmra.mrb[26].mxu0 %vm550_vm0, %v4424_v27  ;;  %3249 = vmatmul.mubr.msk.f32.gmra.mrb[26].mxu1 %vm550_vm0, %v4268_v1 }
  0xb8   : > { %807 = vmatprep.mubr.f32.mxu0 %v3922_v0  ;;  %1034 = vmatprep.mubr.f32.mxu1 %v3922_v0 }
  0xbb   : > { %3223 = vmatmul.mubr.msk.f32.gmra.mrb[28].mxu0 %vm550_vm0, %v4438_v33  ;;  %3250 = vmatmul.mubr.msk.f32.gmra.mrb[28].mxu1 %vm550_vm0, %v4278_v4 }
  0xbc   : > { %813 = vmatprep.mubr.f32.mxu0 %v3922_v0  ;;  %1040 = vmatprep.mubr.f32.mxu1 %v3922_v0 }
  0xbf   : > { %3224 = vmatmul.mubr.msk.f32.gmra.mrb[30].mxu0 %vm550_vm0, %v4450_v40  ;;  %3251 = vmatmul.mubr.msk.f32.gmra.mrb[30].mxu1 %vm550_vm0, %v4308_v24 }
  0xc0   : > { %819 = vmatprep.mubr.f32.mxu0 %v3922_v0  ;;  %1046 = vmatprep.mubr.f32.mxu1 %v3922_v0 }
  0xc3   : > { %3225 = vmatmul.mubr.msk.f32.gmra.mrb[32].mxu0 %vm550_vm0, %v4461_v43  ;;  %3252 = vmatmul.mubr.msk.f32.gmra.mrb[32].mxu1 %vm550_vm0, %v4324_v28 }
  0xc4   : > { %825 = vmatprep.mubr.f32.mxu0 %v3922_v0  ;;  %1052 = vmatprep.mubr.f32.mxu1 %v3922_v0 }
  0xc7   : > { %3226 = vmatmul.mubr.msk.f32.gmra.mrb[34].mxu0 %vm550_vm0, %v4472_v44  ;;  %3253 = vmatmul.mubr.msk.f32.gmra.mrb[34].mxu1 %vm550_vm0, %v4352_v47 }
  0xc8   : > { %831 = vmatprep.mubr.f32.mxu0 %v3922_v0  ;;  %1058 = vmatprep.mubr.f32.mxu1 %v3922_v0 }
  0xcb   : > { %3227 = vmatmul.mubr.msk.f32.gmra.mrb[36].mxu0 %vm550_vm0, %v4483_v45  ;;  %3254 = vmatmul.mubr.msk.f32.gmra.mrb[36].mxu1 %vm550_vm0, %v4376_v61 }
  0xcc   : > { %837 = vmatprep.mubr.f32.mxu0 %v3922_v0  ;;  %1064 = vmatprep.mubr.f32.mxu1 %v3922_v0 }
  0xcf   : > { %3228 = vmatmul.mubr.msk.f32.gmra.mrb[38].mxu0 %vm550_vm0, %v4494_v46  ;;  %3255 = vmatmul.mubr.msk.f32.gmra.mrb[38].mxu1 %vm550_vm0, %v4390_v15 }
  0xd0   : > { %843 = vmatprep.mubr.f32.mxu0 %v3922_v0  ;;  %1070 = vmatprep.mubr.f32.mxu1 %v3922_v0 }
  0xd3   : > { %3229 = vmatmul.mubr.msk.f32.gmra.mrb[40].mxu0 %vm550_vm0, %v4505_v49  ;;  %3256 = vmatmul.mubr.msk.f32.gmra.mrb[40].mxu1 %vm550_vm0, %v4402_v22 }
  0xd4   : > { %849 = vmatprep.mubr.f32.mxu0 %v3922_v0  ;;  %1076 = vmatprep.mubr.f32.mxu1 %v3922_v0 }
  0xd7   : > { %3230 = vmatmul.mubr.msk.f32.gmra.mrb[42].mxu0 %vm550_vm0, %v4516_v50  ;;  %3257 = vmatmul.mubr.msk.f32.gmra.mrb[42].mxu1 %vm550_vm0, %v4413_v26 }
  0xd8   : > { %855 = vmatprep.mubr.f32.mxu0 %v3922_v0  ;;  %1082 = vmatprep.mubr.f32.mxu1 %v3922_v0 }
  0xdb   : > { %3231 = vmatmul.mubr.msk.f32.gmra.mrb[44].mxu0 %vm550_vm0, %v4527_v51  ;;  %3258 = vmatmul.mubr.msk.f32.gmra.mrb[44].mxu1 %vm550_vm0, %v4424_v27 }
  0xdc   : > { %861 = vmatprep.mubr.f32.mxu0 %v3922_v0  ;;  %1088 = vmatprep.mubr.f32.mxu1 %v3922_v0 }
  0xdf   : > { %3232 = vmatmul.mubr.msk.f32.gmra.mrb[46].mxu0 %vm550_vm0, %v4538_v52  ;;  %3259 = vmatmul.mubr.msk.f32.gmra.mrb[46].mxu1 %vm550_vm0, %v4438_v33 }
  0xe0   : > { %867 = vmatprep.mubr.f32.mxu0 %v3922_v0  ;;  %1094 = vmatprep.mubr.f32.mxu1 %v3922_v0 }
  0xe3   : > { %3233 = vmatmul.mubr.msk.f32.gmra.mrb[48].mxu0 %vm550_vm0, %v4549_v53  ;;  %3260 = vmatmul.mubr.msk.f32.gmra.mrb[48].mxu1 %vm550_vm0, %v4450_v40 }
  0xe4   : > { %873 = vmatprep.mubr.f32.mxu0 %v3922_v0  ;;  %1100 = vmatprep.mubr.f32.mxu1 %v3922_v0 }
  0xe7   : > { %3234 = vmatmul.mubr.msk.f32.gmra.mrb[50].mxu0 %vm550_vm0, %v4560_v54  ;;  %3261 = vmatmul.mubr.msk.f32.gmra.mrb[50].mxu1 %vm550_vm0, %v4461_v43 }
  0xe8   : > { %879 = vmatprep.mubr.f32.mxu0 %v3922_v0  ;;  %1106 = vmatprep.mubr.f32.mxu1 %v3922_v0 }
  0xeb   : > { %3235 = vmatmul.mubr.msk.f32.gmra.mrb[52].mxu0 %vm550_vm0, %v4579_v3  ;;  %3262 = vmatmul.mubr.msk.f32.gmra.mrb[52].mxu1 %vm550_vm0, %v4472_v44 }
  0xec   : > { %1112 = vmatprep.mubr.f32.mxu1 %v3922_v0  ;;  %1285 = vmatprep.mubr.f32.mxu0 %v3922_v0 }
  0xef   : > { %3263 = vmatmul.mubr.msk.f32.gmra.mrb[54].mxu1 %vm550_vm0, %v4483_v45  ;;  %3281 = vmatmul.mubr.msk.f32.vlgmr.msra.gmra.mrb[54].mxu0 %vm550_vm0, %v4176_v6 }
  0xf0   : > { %3630 = vmatpush1.bf16.msra.mxu0 %v3629_v29  ;;  %1118 = vmatprep.mubr.f32.mxu1 %v3922_v0  ;;  %v330_v29 = vld [vmem:[%s4118_s19 + $0x190] sm:$0xff] }
  0xf1   : > { %1291 = vmatprep.mubr.f32.mxu0 %v3922_v0  ;;  %3632 = vmatprep.subr.bf16.mxu0 %v3631_v30  ;;  %v395_v30 = vld [vmem:[%s4125_s18 + $0x128] sm:$0xff]  ;;  %v486_v39 = vadd.f32 %v408_v32, %v330_v29  ;;  %v498_v29 = vadd.f32 %v420_v18, %v342_v12  ;;  %v396_v12 = vld [vmem:[%s4125_s18 + $0x130] sm:$0xff] }
  0xf2   : > { %v473_v38 = vadd.f32 %v395_v30, %v317_v23  ;;  %v511_v30 = vadd.f32 %v433_v19, %v355_v17 }
  0xf3   : > { %3264 = vmatmul.mubr.msk.f32.gmra.mrb[56].mxu1 %vm550_vm0, %v4494_v46  ;;  %3282 = vmatmul.mubr.msk.f32.gmra.mrb[56].mxu0 %vm550_vm0, %v4198_v20 }
  0xf4   : > { %1124 = vmatprep.mubr.f32.mxu1 %v3922_v0  ;;  %1297 = vmatprep.mubr.f32.mxu0 %v3922_v0  ;;  %v3643_v9 = vpack.c.bf16 %v486_v39, %v473_v38 }
  0xf5   : > { %3634 = vmatpush1.bf16.msra.mxu0 %v3633_v58  ;;  %v407_v58 = vld [vmem:[%s4125_s18 + $0x188] sm:$0xff] }
  0xf6   : > { %3636 = vmatprep.subr.bf16.mxu0 %v3635_v62  ;;  %v421_v62 = vld [vmem:[%s4125_s18 + $0x1f8] sm:$0xff]  ;;  %v485_v11 = vadd.f32 %v407_v58, %v329_v56 }
  0xf7   : > { %3265 = vmatmul.mubr.msk.f32.gmra.mrb[58].mxu1 %vm550_vm0, %v4505_v49  ;;  %3283 = vmatmul.mubr.msk.f32.gmra.mrb[58].mxu0 %vm550_vm0, %v4223_v35  ;;  %v499_v13 = vadd.f32 %v421_v62, %v343_v59 }
  0xf8   : > { %1130 = vmatprep.mubr.f32.mxu1 %v3922_v0  ;;  %1303 = vmatprep.mubr.f32.mxu0 %v3922_v0  ;;  %v3645_v23 = vpack.c.bf16 %v485_v11, %v472_v10  ;;  %v331_v11 = vld [vmem:[%s4118_s19 + $0x198] sm:$0xff] }
  0xf9   : > { %3638 = vmatpush1.bf16.msra.mxu0 %v3637_v63  ;;  %v434_v63 = vld [vmem:[%s4125_s18 + $0x260] sm:$0xff] }
  0xfa   : > { %3652 = vmatprep.subr.bf16.mxu0 %v4639_v14  ;;  %v512_v16 = vadd.f32 %v434_v63, %v356_v60 }
  0xfb   : > { %3266 = vmatmul.mubr.msk.f32.gmra.mrb[60].mxu1 %vm550_vm0, %v4516_v50  ;;  %3284 = vmatmul.mubr.msk.f32.gmra.mrb[60].mxu0 %vm550_vm0, %v4234_v41 }
  0xfc   : > { %1136 = vmatprep.mubr.f32.mxu1 %v3922_v0  ;;  %1309 = vmatprep.mubr.f32.mxu0 %v3922_v0  ;;  %v3647_v32 = vpack.c.bf16 %v512_v16, %v499_v13  ;;  %v409_v13 = vld [vmem:[%s4125_s18 + $0x198] sm:$0xff] }
  0xfd   : > { %v487_v17 = vadd.f32 %v409_v13, %v331_v11 }
  0xff   : > { %3267 = vmatmul.mubr.msk.f32.gmra.mrb[62].mxu1 %vm550_vm0, %v4527_v51  ;;  %3285 = vmatmul.mubr.msk.f32.gmra.mrb[62].mxu0 %vm550_vm0, %v4268_v1 }
 0x100   : > { %1142 = vmatprep.mubr.f32.mxu1 %v3922_v0  ;;  %1315 = vmatprep.mubr.f32.mxu0 %v3922_v0 }
 0x103   : > { %3268 = vmatmul.mubr.msk.f32.gmra.mrb[64].mxu1 %vm550_vm0, %v4538_v52  ;;  %3286 = vmatmul.mubr.msk.f32.gmra.mrb[64].mxu0 %vm550_vm0, %v4278_v4 }
 0x104   : > { %1148 = vmatprep.mubr.f32.mxu1 %v3922_v0  ;;  %1321 = vmatprep.mubr.f32.mxu0 %v3922_v0 }
 0x107   : > { %3269 = vmatmul.mubr.msk.f32.gmra.mrb[66].mxu1 %vm550_vm0, %v4549_v53  ;;  %3287 = vmatmul.mubr.msk.f32.gmra.mrb[66].mxu0 %vm550_vm0, %v4308_v24 }
 0x108   : > { %1154 = vmatprep.mubr.f32.mxu1 %v3922_v0  ;;  %1327 = vmatprep.mubr.f32.mxu0 %v3922_v0 }
 0x10b   : > { %3270 = vmatmul.mubr.msk.f32.gmra.mrb[68].mxu1 %vm550_vm0, %v4560_v54  ;;  %3288 = vmatmul.mubr.msk.f32.gmra.mrb[68].mxu0 %vm550_vm0, %v4324_v28 }
 0x10c   : > { %1160 = vmatprep.mubr.f32.mxu1 %v3922_v0  ;;  %1333 = vmatprep.mubr.f32.mxu0 %v3922_v0 }
 0x10f   : > { %3271 = vmatmul.mubr.msk.f32.gmra.mrb[70].mxu1 %vm550_vm0, %v4579_v3  ;;  %3289 = vmatmul.mubr.msk.f32.gmra.mrb[70].mxu0 %vm550_vm0, %v4352_v47 }
 0x110   : > { %1166 = vmatprep.mubr.f32.mxu1 %v3922_v0  ;;  %1339 = vmatprep.mubr.f32.mxu0 %v3922_v0 }
 0x113   : > { %3272 = vmatmul.mubr.msk.f32.gmra.mrb[72].mxu1 %vm550_vm0, %v4181_v7  ;;  %3290 = vmatmul.mubr.msk.f32.gmra.mrb[72].mxu0 %vm550_vm0, %v4376_v61 }
 0x114   : > { %1172 = vmatprep.mubr.f32.mxu1 %v3922_v0  ;;  %1345 = vmatprep.mubr.f32.mxu0 %v3922_v0 }
 0x117   : > { %3273 = vmatmul.mubr.msk.f32.gmra.mrb[74].mxu1 %vm550_vm0, %v4203_v21  ;;  %3291 = vmatmul.mubr.msk.f32.gmra.mrb[74].mxu0 %vm550_vm0, %v4390_v15 }
 0x118   : > { %1178 = vmatprep.mubr.f32.mxu1 %v3922_v0  ;;  %1351 = vmatprep.mubr.f32.mxu0 %v3922_v0 }
 0x11b   : > { %3274 = vmatmul.mubr.msk.f32.gmra.mrb[76].mxu1 %vm550_vm0, %v4228_v36  ;;  %3292 = vmatmul.mubr.msk.f32.gmra.mrb[76].mxu0 %vm550_vm0, %v4402_v22 }
 0x11c   : > { %1184 = vmatprep.mubr.f32.mxu1 %v3922_v0  ;;  %1357 = vmatprep.mubr.f32.mxu0 %v3922_v0 }
 0x11f   : > { %3275 = vmatmul.mubr.msk.f32.gmra.mrb[78].mxu1 %vm550_vm0, %v4239_v42  ;;  %3293 = vmatmul.mubr.msk.f32.gmra.mrb[78].mxu0 %vm550_vm0, %v4413_v26 }
 0x120   : > { %1190 = vmatprep.mubr.f32.mxu1 %v3922_v0  ;;  %1363 = vmatprep.mubr.f32.mxu0 %v3922_v0 }
 0x123   : > { %3276 = vmatmul.mubr.msk.f32.gmra.mrb[80].mxu1 %vm550_vm0, %v4273_v2  ;;  %3294 = vmatmul.mubr.msk.f32.gmra.mrb[80].mxu0 %vm550_vm0, %v4424_v27 }
 0x124   : > { %1196 = vmatprep.mubr.f32.mxu1 %v3922_v0  ;;  %1369 = vmatprep.mubr.f32.mxu0 %v3922_v0 }
 0x127   : > { %3277 = vmatmul.mubr.msk.f32.gmra.mrb[82].mxu1 %vm550_vm0, %v4283_v5  ;;  %3295 = vmatmul.mubr.msk.f32.gmra.mrb[82].mxu0 %vm550_vm0, %v4438_v33 }
 0x128   : > { %1202 = vmatprep.mubr.f32.mxu1 %v3922_v0  ;;  %1375 = vmatprep.mubr.f32.mxu0 %v3922_v0 }
 0x12b   : > { %3278 = vmatmul.mubr.msk.f32.gmra.mrb[84].mxu1 %vm550_vm0, %v4313_v25  ;;  %3296 = vmatmul.mubr.msk.f32.gmra.mrb[84].mxu0 %vm550_vm0, %v4450_v40 }
 0x12c   : > { %1208 = vmatprep.mubr.f32.mxu1 %v3922_v0  ;;  %1381 = vmatprep.mubr.f32.mxu0 %v3922_v0 }
 0x12f   : > { %3279 = vmatmul.mubr.msk.f32.gmra.mrb[86].mxu1 %vm550_vm0, %v4333_v31  ;;  %3297 = vmatmul.mubr.msk.f32.gmra.mrb[86].mxu0 %vm550_vm0, %v4461_v43 }
 0x130   : > { %1214 = vmatprep.mubr.f32.mxu1 %v3922_v0  ;;  %1387 = vmatprep.mubr.f32.mxu0 %v3922_v0 }
 0x133   : > { %3280 = vmatmul.mubr.msk.f32.gmra.mrb[88].mxu1 %vm550_vm0, %v4357_v48  ;;  %3298 = vmatmul.mubr.msk.f32.gmra.mrb[88].mxu0 %vm550_vm0, %v4472_v44 }
 0x134   : > { %1393 = vmatprep.mubr.f32.mxu0 %v3922_v0  ;;  %1566 = vmatprep.mubr.f32.mxu1 %v3922_v0 }
 0x137   : > { %3299 = vmatmul.mubr.msk.f32.gmra.mrb[90].mxu0 %vm550_vm0, %v4483_v45  ;;  %3317 = vmatmul.mubr.msk.f32.vlgmr.msra.gmra.mrb[90].mxu1 %vm550_vm0, %v4176_v6  ;;  %v3649_v6 = vpack.c.bf16 %v511_v30, %v498_v29  ;;  %v357_v29 = vld [vmem:[%s4118_s19 + $0x268] sm:$0xff]  ;;  %v422_v30 = vld [vmem:[%s4125_s18 + $0x200] sm:$0xff] }
 0x138   : > { %3642 = vmatpush1.bf16.msra.mxu1 %v3641_v8  ;;  %1399 = vmatprep.mubr.f32.mxu0 %v3922_v0 }
 0x139   : > { %1572 = vmatprep.mubr.f32.mxu1 %v3922_v0  ;;  %3644 = vmatprep.subr.bf16.mxu1 %v3643_v9 }
 0x13b   : > { %3300 = vmatmul.mubr.msk.f32.gmra.mrb[92].mxu0 %vm550_vm0, %v4494_v46  ;;  %3318 = vmatmul.mubr.msk.f32.gmra.mrb[92].mxu1 %vm550_vm0, %v4198_v20 }
 0x13c   : > { %1405 = vmatprep.mubr.f32.mxu0 %v3922_v0  ;;  %1578 = vmatprep.mubr.f32.mxu1 %v3922_v0 }
 0x13d   : > { %3646 = vmatpush1.bf16.msra.mxu1 %v3645_v23  ;;  %v344_v23 = vld [vmem:[%s4118_s19 + $0x200] sm:$0xff] }
 0x13e   : > { %3648 = vmatprep.subr.bf16.mxu1 %v3647_v32  ;;  %v435_v32 = vld [vmem:[%s4125_s18 + $0x268] sm:$0xff] }
 0x13f   : > { %3301 = vmatmul.mubr.msk.f32.gmra.mrb[94].mxu0 %vm550_vm0, %v4505_v49  ;;  %3319 = vmatmul.mubr.msk.f32.gmra.mrb[94].mxu1 %vm550_vm0, %v4223_v35 }
 0x140   : > { %1411 = vmatprep.mubr.f32.mxu0 %v3922_v0  ;;  %1584 = vmatprep.mubr.f32.mxu1 %v3922_v0 }
 0x141   : > { %3650 = vmatpush1.bf16.msra.mxu1 %v3649_v6 }
 0x143   : > { %3302 = vmatmul.mubr.msk.f32.gmra.mrb[96].mxu0 %vm550_vm0, %v4516_v50  ;;  %3320 = vmatmul.mubr.msk.f32.gmra.mrb[96].mxu1 %vm550_vm0, %v4234_v41 }
 0x144   : > { %1417 = vmatprep.mubr.f32.mxu0 %v3922_v0  ;;  %1590 = vmatprep.mubr.f32.mxu1 %v3922_v0 }
 0x147   : > { %3303 = vmatmul.mubr.msk.f32.gmra.mrb[98].mxu0 %vm550_vm0, %v4527_v51  ;;  %3321 = vmatmul.mubr.msk.f32.gmra.mrb[98].mxu1 %vm550_vm0, %v4268_v1 }
 0x148   : > { %1423 = vmatprep.mubr.f32.mxu0 %v3922_v0  ;;  %1596 = vmatprep.mubr.f32.mxu1 %v3922_v0 }
 0x14b   : > { %3304 = vmatmul.mubr.msk.f32.gmra.mrb[100].mxu0 %vm550_vm0, %v4538_v52  ;;  %3322 = vmatmul.mubr.msk.f32.gmra.mrb[100].mxu1 %vm550_vm0, %v4278_v4 }
 0x14c   : > { %1429 = vmatprep.mubr.f32.mxu0 %v3922_v0  ;;  %1602 = vmatprep.mubr.f32.mxu1 %v3922_v0 }
 0x14f   : > { %3305 = vmatmul.mubr.msk.f32.gmra.mrb[102].mxu0 %vm550_vm0, %v4549_v53  ;;  %3323 = vmatmul.mubr.msk.f32.gmra.mrb[102].mxu1 %vm550_vm0, %v4308_v24 }
 0x150   : > { %1435 = vmatprep.mubr.f32.mxu0 %v3922_v0  ;;  %1608 = vmatprep.mubr.f32.mxu1 %v3922_v0 }
 0x153   : > { %3306 = vmatmul.mubr.msk.f32.gmra.mrb[104].mxu0 %vm550_vm0, %v4560_v54  ;;  %3324 = vmatmul.mubr.msk.f32.gmra.mrb[104].mxu1 %vm550_vm0, %v4324_v28 }
 0x154   : > { %1441 = vmatprep.mubr.f32.mxu0 %v3922_v0  ;;  %1614 = vmatprep.mubr.f32.mxu1 %v3922_v0 }
 0x156   : > { %v725_v20 = vpop.f32.mrb[0].mxu0  ;;  %v887_v35 = vpop.f32.mrb[0].mxu1 }
 0x157   : > { %2590 = vst [vmem:[%s4783_s10] sm:$0xff] %v725_v20  ;;  %2941 = vst [vmem:[%s4783_s10 + $0xaf8] sm:$0xff] %v887_v35  ;;  %v727_v41 = vpop.f32.mrb[1].mxu0  ;;  %v889_v1 = vpop.f32.mrb[1].mxu1  ;;  %3307 = vmatmul.mubr.msk.f32.gmra.mrb[106].mxu0 %vm550_vm0, %v4579_v3  ;;  %3325 = vmatmul.mubr.msk.f32.gmra.mrb[106].mxu1 %vm550_vm0, %v4352_v47 }
 0x158   : > { %2591 = vst [vmem:[%s4783_s10 + $0x8] sm:$0xff] %v727_v41  ;;  %2942 = vst [vmem:[%s4783_s10 + $0xb00] sm:$0xff] %v889_v1  ;;  %1447 = vmatprep.mubr.f32.mxu0 %v3922_v0  ;;  %1620 = vmatprep.mubr.f32.mxu1 %v3922_v0  ;;  %v500_v41 = vadd.f32 %v422_v30, %v344_v23  ;;  %v513_v1 = vadd.f32 %v435_v32, %v357_v29  ;;  %v5061_v29 = vld [vmem:[%s5918_s2 + $0x50] sm:$0xff] }
 0x15a   : > { %v731_v4 = vpop.f32.mrb[2].mxu0  ;;  %v893_v24 = vpop.f32.mrb[2].mxu1 }
 0x15b   : > { %2603 = vst [vmem:[%s4783_s10 + $0x68] sm:$0xff] %v731_v4  ;;  %2954 = vst [vmem:[%s4783_s10 + $0xb60] sm:$0xff] %v893_v24  ;;  %v733_v28 = vpop.f32.mrb[3].mxu0  ;;  %v895_v34 = vpop.f32.mrb[3].mxu1  ;;  %3308 = vmatmul.mubr.msk.f32.gmra.mrb[108].mxu0 %vm550_vm0, %v4181_v7  ;;  %3326 = vmatmul.mubr.msk.f32.gmra.mrb[108].mxu1 %vm550_vm0, %v4376_v61  ;;  %v4900_v4 = vld [vmem:[%s5918_s2] sm:$0xff] }
 0x15c   : > { %2604 = vst [vmem:[%s4783_s10 + $0x70] sm:$0xff] %v733_v28  ;;  %2955 = vst [vmem:[%s4783_s10 + $0xb68] sm:$0xff] %v895_v34  ;;  %1453 = vmatprep.mubr.f32.mxu0 %v3922_v0  ;;  %1626 = vmatprep.mubr.f32.mxu1 %v3922_v0  ;;  %v3659_v28 = vpack.c.bf16 %v513_v1, %v500_v41  ;;  %v5081_v41 = vld [vmem:[%s5918_s2 + $0x58] sm:$0xff] }
 0x15e   : > { %v737_v47 = vpop.f32.mrb[4].mxu0  ;;  %v899_v37 = vpop.f32.mrb[4].mxu1 }
 0x15f   : > { %2616 = vst [vmem:[%s4783_s10 + $0xd0] sm:$0xff] %v737_v47  ;;  %2967 = vst [vmem:[%s4783_s10 + $0xbc8] sm:$0xff] %v899_v37  ;;  %v739_v38 = vpop.f32.mrb[5].mxu0  ;;  %v901_v39 = vpop.f32.mrb[5].mxu1  ;;  %3309 = vmatmul.mubr.msk.f32.gmra.mrb[110].mxu0 %vm550_vm0, %v4203_v21  ;;  %3327 = vmatmul.mubr.msk.f32.gmra.mrb[110].mxu1 %vm550_vm0, %v4390_v15 }
 0x160   : > { %2617 = vst [vmem:[%s4783_s10 + $0xd8] sm:$0xff] %v739_v38  ;;  %2968 = vst [vmem:[%s4783_s10 + $0xbd0] sm:$0xff] %v901_v39  ;;  %1459 = vmatprep.mubr.f32.mxu0 %v3922_v0  ;;  %1632 = vmatprep.mubr.f32.mxu1 %v3922_v0 }
 0x162   : > { %v743_v7 = vpop.f32.mrb[6].mxu0  ;;  %v905_v61 = vpop.f32.mrb[6].mxu1 }
 0x163   : > { %2629 = vst [vmem:[%s4783_s10 + $0x138] sm:$0xff] %v743_v7  ;;  %2980 = vst [vmem:[%s4783_s10 + $0xc30] sm:$0xff] %v905_v61  ;;  %v745_v55 = vpop.f32.mrb[7].mxu0  ;;  %v907_v56 = vpop.f32.mrb[7].mxu1  ;;  %3310 = vmatmul.mubr.msk.f32.gmra.mrb[112].mxu0 %vm550_vm0, %v4228_v36  ;;  %3328 = vmatmul.mubr.msk.f32.gmra.mrb[112].mxu1 %vm550_vm0, %v4402_v22  ;;  %v4931_v7 = vld [vmem:[%s5918_s2 + $0x10] sm:$0xff] }
 0x164   : > { %2630 = vst [vmem:[%s4783_s10 + $0x140] sm:$0xff] %v745_v55  ;;  %2981 = vst [vmem:[%s4783_s10 + $0xc38] sm:$0xff] %v907_v56  ;;  %1465 = vmatprep.mubr.f32.mxu0 %v3922_v0  ;;  %1638 = vmatprep.mubr.f32.mxu1 %v3922_v0 }
 0x166   : > { %v749_v21 = vpop.f32.mrb[8].mxu0  ;;  %v911_v15 = vpop.f32.mrb[8].mxu1 }
 0x167   : > { %2642 = vst [vmem:[%s4783_s10 + $0x1a0] sm:$0xff] %v749_v21  ;;  %2993 = vst [vmem:[%s4783_s10 + $0xc98] sm:$0xff] %v911_v15  ;;  %v751_v57 = vpop.f32.mrb[9].mxu0  ;;  %v913_v58 = vpop.f32.mrb[9].mxu1  ;;  %3311 = vmatmul.mubr.msk.f32.gmra.mrb[114].mxu0 %vm550_vm0, %v4239_v42  ;;  %3329 = vmatmul.mubr.msk.f32.gmra.mrb[114].mxu1 %vm550_vm0, %v4413_v26  ;;  %v4946_v21 = vld [vmem:[%s5918_s2 + $0x18] sm:$0xff] }
 0x168   : > { %2643 = vst [vmem:[%s4783_s10 + $0x1a8] sm:$0xff] %v751_v57  ;;  %2994 = vst [vmem:[%s4783_s10 + $0xca0] sm:$0xff] %v913_v58  ;;  %1471 = vmatprep.mubr.f32.mxu0 %v3922_v0  ;;  %1644 = vmatprep.mubr.f32.mxu1 %v3922_v0 }
 0x16a   : > { %v755_v36 = vpop.f32.mrb[10].mxu0  ;;  %v917_v22 = vpop.f32.mrb[10].mxu1 }
 0x16b   : > { %2655 = vst [vmem:[%s4783_s10 + $0x208] sm:$0xff] %v755_v36  ;;  %3006 = vst [vmem:[%s4783_s10 + $0xd00] sm:$0xff] %v917_v22  ;;  %v757_v59 = vpop.f32.mrb[11].mxu0  ;;  %v919_v60 = vpop.f32.mrb[11].mxu1  ;;  %3312 = vmatmul.mubr.msk.f32.gmra.mrb[116].mxu0 %vm550_vm0, %v4273_v2  ;;  %3330 = vmatmul.mubr.msk.f32.gmra.mrb[116].mxu1 %vm550_vm0, %v4424_v27  ;;  %v4961_v36 = vld [vmem:[%s5918_s2 + $0x20] sm:$0xff] }
 0x16c   : > { %2656 = vst [vmem:[%s4783_s10 + $0x210] sm:$0xff] %v757_v59  ;;  %3007 = vst [vmem:[%s4783_s10 + $0xd08] sm:$0xff] %v919_v60  ;;  %1477 = vmatprep.mubr.f32.mxu0 %v3922_v0  ;;  %1650 = vmatprep.mubr.f32.mxu1 %v3922_v0 }
 0x16e   : > { %v761_v42 = vpop.f32.mrb[12].mxu0  ;;  %v923_v26 = vpop.f32.mrb[12].mxu1 }
 0x16f   : > { %2668 = vst [vmem:[%s4783_s10 + $0x270] sm:$0xff] %v761_v42  ;;  %3019 = vst [vmem:[%s4783_s10 + $0xd68] sm:$0xff] %v923_v26  ;;  %v763_v62 = vpop.f32.mrb[13].mxu0  ;;  %v925_v63 = vpop.f32.mrb[13].mxu1  ;;  %3313 = vmatmul.mubr.msk.f32.gmra.mrb[118].mxu0 %vm550_vm0, %v4283_v5  ;;  %3331 = vmatmul.mubr.msk.f32.gmra.mrb[118].mxu1 %vm550_vm0, %v4438_v33  ;;  %v318_v33 = vld [vmem:[%s4118_s19 + $0x130] sm:$0xff]  ;;  %v4976_v42 = vld [vmem:[%s5918_s2 + $0x28] sm:$0xff] }
 0x170   : > { %2669 = vst [vmem:[%s4783_s10 + $0x278] sm:$0xff] %v763_v62  ;;  %3020 = vst [vmem:[%s4783_s10 + $0xd70] sm:$0xff] %v925_v63  ;;  %1483 = vmatprep.mubr.f32.mxu0 %v3922_v0  ;;  %1656 = vmatprep.mubr.f32.mxu1 %v3922_v0  ;;  %v474_v16 = vadd.f32 %v396_v12, %v318_v33  ;;  %v5006_v33 = vld [vmem:[%s5918_s2 + $0x38] sm:$0xff]  ;;  %v5021_v12 = vld [vmem:[%s5918_s2 + $0x40] sm:$0xff] }
 0x172   : > { %v767_v2 = vpop.f32.mrb[14].mxu0  ;;  %v929_v27 = vpop.f32.mrb[14].mxu1  ;;  %v3655_v6 = vpack.c.bf16 %v487_v17, %v474_v16  ;;  %v5034_v16 = vld [vmem:[%s5918_s2 + $0xd8] sm:$0xff]  ;;  %v5041_v17 = vld [vmem:[%s5918_s2 + $0x48] sm:$0xff] }
 0x173   : > { %2681 = vst [vmem:[%s4783_s10 + $0x2d8] sm:$0xff] %v767_v2  ;;  %3032 = vst [vmem:[%s4783_s10 + $0xdd0] sm:$0xff] %v929_v27  ;;  %v769_v5 = vpop.f32.mrb[15].mxu0  ;;  %v931_v8 = vpop.f32.mrb[15].mxu1  ;;  %3314 = vmatmul.mubr.msk.f32.gmra.mrb[120].mxu0 %vm550_vm0, %v4313_v25  ;;  %3332 = vmatmul.mubr.msk.f32.gmra.mrb[120].mxu1 %vm550_vm0, %v4450_v40  ;;  %v4991_v2 = vld [vmem:[%s5918_s2 + $0x30] sm:$0xff] }
 0x174   : > { %2682 = vst [vmem:[%s4783_s10 + $0x2e0] sm:$0xff] %v769_v5  ;;  %3033 = vst [vmem:[%s4783_s10 + $0xdd8] sm:$0xff] %v931_v8  ;;  %1489 = vmatprep.mubr.f32.mxu0 %v3922_v0  ;;  %1662 = vmatprep.mubr.f32.mxu1 %v3922_v0 }
 0x176   : > { %v773_v9 = vpop.f32.mrb[16].mxu0  ;;  %v935_v10 = vpop.f32.mrb[16].mxu1 }
 0x177   : > { %2694 = vst [vmem:[%s4783_s10 + $0x340] sm:$0xff] %v773_v9  ;;  %3045 = vst [vmem:[%s4783_s10 + $0xe38] sm:$0xff] %v935_v10  ;;  %v775_v25 = vpop.f32.mrb[17].mxu0  ;;  %v937_v40 = vpop.f32.mrb[17].mxu1  ;;  %3315 = vmatmul.mubr.msk.f32.gmra.mrb[122].mxu0 %vm550_vm0, %v4333_v31  ;;  %3333 = vmatmul.mubr.msk.f32.gmra.mrb[122].mxu1 %vm550_vm0, %v4461_v43 }
 0x178   : > { %2695 = vst [vmem:[%s4783_s10 + $0x348] sm:$0xff] %v775_v25  ;;  %3046 = vst [vmem:[%s4783_s10 + $0xe40] sm:$0xff] %v937_v40  ;;  %1495 = vmatprep.mubr.f32.mxu0 %v3922_v0  ;;  %1668 = vmatprep.mubr.f32.mxu1 %v3922_v0 }
 0x17a   : > { %v779_v18 = vpop.f32.mrb[18].mxu0  ;;  %v1006_v19 = vpop.f32.mrb[18].mxu1 }
 0x17b   : > { %2707 = vst [vmem:[%s4783_s10 + $0x3a8] sm:$0xff] %v779_v18  ;;  %2592 = vst [vmem:[%s4783_s10 + $0x10] sm:$0xff] %v1006_v19  ;;  %v781_v31 = vpop.f32.mrb[19].mxu0  ;;  %v1008_v43 = vpop.f32.mrb[19].mxu1  ;;  %3316 = vmatmul.mubr.msk.f32.gmra.mrb[124].mxu0 %vm550_vm0, %v4357_v48  ;;  %3334 = vmatmul.mubr.msk.f32.gmra.mrb[124].mxu1 %vm550_vm0, %v4472_v44 }
 0x17c   : > { %2708 = vst [vmem:[%s4783_s10 + $0x3b0] sm:$0xff] %v781_v31  ;;  %2593 = vst [vmem:[%s4783_s10 + $0x18] sm:$0xff] %v1008_v43  ;;  %1674 = vmatprep.mubr.f32.mxu1 %v3922_v0  ;;  %1847 = vmatprep.mubr.f32.mxu0 %v3922_v0  ;;  %v5054_v43 = vld [vmem:[%s5918_s2 + $0xe0] sm:$0xff] }
 0x17e   : > { %v785_v20 = vpop.f32.mrb[20].mxu0  ;;  %v1012_v35 = vpop.f32.mrb[20].mxu1 }
 0x17f   : > { %2720 = vst [vmem:[%s4783_s10 + $0x410] sm:$0xff] %v785_v20  ;;  %2605 = vst [vmem:[%s4783_s10 + $0x78] sm:$0xff] %v1012_v35  ;;  %v787_v48 = vpop.f32.mrb[21].mxu0  ;;  %v1014_v44 = vpop.f32.mrb[21].mxu1  ;;  %3335 = vmatmul.mubr.msk.f32.gmra.mrb[126].mxu1 %vm550_vm0, %v4483_v45  ;;  %3353 = vmatmul.mubr.msk.f32.vlgmr.msra.gmra.mrb[126].mxu0 %vm550_vm0, %v4900_v4  ;;  %v5074_v35 = vld [vmem:[%s5918_s2 + $0xe8] sm:$0xff] }
 0x180   : > { %2721 = vst [vmem:[%s4783_s10 + $0x418] sm:$0xff] %v787_v48  ;;  %2606 = vst [vmem:[%s4783_s10 + $0x80] sm:$0xff] %v1014_v44  ;;  %3654 = vmatpush3.bf16.msra.mxu0 %v4639_v14  ;;  %1680 = vmatprep.mubr.f32.mxu1 %v3922_v0  ;;  %v4916_v14 = vld [vmem:[%s5918_s2 + $0x8] sm:$0xff] }
 0x181   : > { %1853 = vmatprep.mubr.f32.mxu0 %v3922_v0  ;;  %3656 = vmatprep.subr.bf16.mxu0 %v3655_v6 }
 0x182   : > { %v791_v45 = vpop.f32.mrb[22].mxu0  ;;  %v1018_v24 = vpop.f32.mrb[22].mxu1 }
 0x183   : > { %2733 = vst [vmem:[%s4783_s10 + $0x478] sm:$0xff] %v791_v45  ;;  %2618 = vst [vmem:[%s4783_s10 + $0xe0] sm:$0xff] %v1018_v24  ;;  %v793_v34 = vpop.f32.mrb[23].mxu0  ;;  %v1020_v47 = vpop.f32.mrb[23].mxu1  ;;  %3336 = vmatmul.mubr.msk.f32.gmra.mrb[128].mxu1 %vm550_vm0, %v4494_v46  ;;  %3354 = vmatmul.mubr.msk.f32.gmra.mrb[128].mxu0 %vm550_vm0, %v4916_v14  ;;  %v5094_v24 = vld [vmem:[%s5918_s2 + $0xf0] sm:$0xff] }
 0x184   : > { %2734 = vst [vmem:[%s4783_s10 + $0x480] sm:$0xff] %v793_v34  ;;  %2619 = vst [vmem:[%s4783_s10 + $0xe8] sm:$0xff] %v1020_v47  ;;  %1686 = vmatprep.mubr.f32.mxu1 %v3922_v0  ;;  %1859 = vmatprep.mubr.f32.mxu0 %v3922_v0 }
 0x185   : > { %3658 = vmatpush3.bf16.msra.mxu0 %v3655_v6 }
 0x186   : > { %v797_v37 = vpop.f32.mrb[24].mxu0  ;;  %v1024_v38 = vpop.f32.mrb[24].mxu1  ;;  %3660 = vmatprep.subr.bf16.mxu0 %v3659_v28 }
 0x187   : > { %2746 = vst [vmem:[%s4783_s10 + $0x4e0] sm:$0xff] %v797_v37  ;;  %2631 = vst [vmem:[%s4783_s10 + $0x148] sm:$0xff] %v1024_v38  ;;  %v799_v46 = vpop.f32.mrb[25].mxu0  ;;  %v1026_v39 = vpop.f32.mrb[25].mxu1  ;;  %3337 = vmatmul.mubr.msk.f32.gmra.mrb[130].mxu1 %vm550_vm0, %v4505_v49  ;;  %3355 = vmatmul.mubr.msk.f32.gmra.mrb[130].mxu0 %vm550_vm0, %v4931_v7 }
 0x188   : > { %2747 = vst [vmem:[%s4783_s10 + $0x4e8] sm:$0xff] %v799_v46  ;;  %2632 = vst [vmem:[%s4783_s10 + $0x150] sm:$0xff] %v1026_v39  ;;  %1692 = vmatprep.mubr.f32.mxu1 %v3922_v0  ;;  %1865 = vmatprep.mubr.f32.mxu0 %v3922_v0  ;;  %v5114_v46 = vld [vmem:[%s5918_s2 + $0xf8] sm:$0xff]  ;;  %v5121_v39 = vld [vmem:[%s5918_s2 + $0x68] sm:$0xff] }
 0x189   : > { %3662 = vmatpush3.bf16.msra.mxu0 %v3659_v28  ;;  %v5101_v28 = vld [vmem:[%s5918_s2 + $0x60] sm:$0xff] }
 0x18a   : > { %v803_v61 = vpop.f32.mrb[26].mxu0  ;;  %v1030_v49 = vpop.f32.mrb[26].mxu1 }
 0x18b   : > { %2759 = vst [vmem:[%s4783_s10 + $0x548] sm:$0xff] %v803_v61  ;;  %2644 = vst [vmem:[%s4783_s10 + $0x1b0] sm:$0xff] %v1030_v49  ;;  %v805_v55 = vpop.f32.mrb[27].mxu0  ;;  %v1032_v56 = vpop.f32.mrb[27].mxu1  ;;  %3338 = vmatmul.mubr.msk.f32.gmra.mrb[132].mxu1 %vm550_vm0, %v4516_v50  ;;  %3356 = vmatmul.mubr.msk.f32.gmra.mrb[132].mxu0 %vm550_vm0, %v4946_v21 }
 0x18c   : > { %2760 = vst [vmem:[%s4783_s10 + $0x550] sm:$0xff] %v805_v55  ;;  %2645 = vst [vmem:[%s4783_s10 + $0x1b8] sm:$0xff] %v1032_v56  ;;  %1698 = vmatprep.mubr.f32.mxu1 %v3922_v0  ;;  %1871 = vmatprep.mubr.f32.mxu0 %v3922_v0 }
 0x18e   : > { %v809_v15 = vpop.f32.mrb[28].mxu0  ;;  %v1036_v50 = vpop.f32.mrb[28].mxu1 }
 0x18f   : > { %2772 = vst [vmem:[%s4783_s10 + $0x5b0] sm:$0xff] %v809_v15  ;;  %2657 = vst [vmem:[%s4783_s10 + $0x218] sm:$0xff] %v1036_v50  ;;  %v811_v57 = vpop.f32.mrb[29].mxu0  ;;  %v1038_v58 = vpop.f32.mrb[29].mxu1  ;;  %3339 = vmatmul.mubr.msk.f32.gmra.mrb[134].mxu1 %vm550_vm0, %v4527_v51  ;;  %3357 = vmatmul.mubr.msk.f32.gmra.mrb[134].mxu0 %vm550_vm0, %v4961_v36  ;;  %v5134_v15 = vld [vmem:[%s5918_s2 + $0x100] sm:$0xff]  ;;  %v5141_v50 = vld [vmem:[%s5918_s2 + $0x70] sm:$0xff] }
 0x190   : > { %2773 = vst [vmem:[%s4783_s10 + $0x5b8] sm:$0xff] %v811_v57  ;;  %2658 = vst [vmem:[%s4783_s10 + $0x220] sm:$0xff] %v1038_v58  ;;  %1704 = vmatprep.mubr.f32.mxu1 %v3922_v0  ;;  %1877 = vmatprep.mubr.f32.mxu0 %v3922_v0 }
 0x192   : > { %v815_v22 = vpop.f32.mrb[30].mxu0  ;;  %v1042_v51 = vpop.f32.mrb[30].mxu1 }
 0x193   : > { %2785 = vst [vmem:[%s4783_s10 + $0x618] sm:$0xff] %v815_v22  ;;  %2670 = vst [vmem:[%s4783_s10 + $0x280] sm:$0xff] %v1042_v51  ;;  %v817_v59 = vpop.f32.mrb[31].mxu0  ;;  %v1044_v60 = vpop.f32.mrb[31].mxu1  ;;  %3340 = vmatmul.mubr.msk.f32.gmra.mrb[136].mxu1 %vm550_vm0, %v4538_v52  ;;  %3358 = vmatmul.mubr.msk.f32.gmra.mrb[136].mxu0 %vm550_vm0, %v4976_v42 }
 0x194   : > { %2786 = vst [vmem:[%s4783_s10 + $0x620] sm:$0xff] %v817_v59  ;;  %2671 = vst [vmem:[%s4783_s10 + $0x288] sm:$0xff] %v1044_v60  ;;  %1710 = vmatprep.mubr.f32.mxu1 %v3922_v0  ;;  %1883 = vmatprep.mubr.f32.mxu0 %v3922_v0  ;;  %v5154_v59 = vld [vmem:[%s5918_s2 + $0x108] sm:$0xff]  ;;  %v5161_v60 = vld [vmem:[%s5918_s2 + $0x78] sm:$0xff] }
 0x196   : > { %v821_v26 = vpop.f32.mrb[32].mxu0  ;;  %v1048_v52 = vpop.f32.mrb[32].mxu1 }
 0x197   : > { %2798 = vst [vmem:[%s4783_s10 + $0x680] sm:$0xff] %v821_v26  ;;  %2683 = vst [vmem:[%s4783_s10 + $0x2e8] sm:$0xff] %v1048_v52  ;;  %v823_v62 = vpop.f32.mrb[33].mxu0  ;;  %v1050_v63 = vpop.f32.mrb[33].mxu1  ;;  %3341 = vmatmul.mubr.msk.f32.gmra.mrb[138].mxu1 %vm550_vm0, %v4549_v53  ;;  %3359 = vmatmul.mubr.msk.f32.gmra.mrb[138].mxu0 %vm550_vm0, %v4991_v2 }
 0x198   : > { %2799 = vst [vmem:[%s4783_s10 + $0x688] sm:$0xff] %v823_v62  ;;  %2684 = vst [vmem:[%s4783_s10 + $0x2f0] sm:$0xff] %v1050_v63  ;;  %1716 = vmatprep.mubr.f32.mxu1 %v3922_v0  ;;  %1889 = vmatprep.mubr.f32.mxu0 %v3922_v0 }
 0x19a   : > { %v827_v27 = vpop.f32.mrb[34].mxu0  ;;  %v1054_v53 = vpop.f32.mrb[34].mxu1 }
 0x19b   : > { %2811 = vst [vmem:[%s4783_s10 + $0x6e8] sm:$0xff] %v827_v27  ;;  %2696 = vst [vmem:[%s4783_s10 + $0x350] sm:$0xff] %v1054_v53  ;;  %v829_v5 = vpop.f32.mrb[35].mxu0  ;;  %v1056_v8 = vpop.f32.mrb[35].mxu1  ;;  %3342 = vmatmul.mubr.msk.f32.gmra.mrb[140].mxu1 %vm550_vm0, %v4560_v54  ;;  %3360 = vmatmul.mubr.msk.f32.gmra.mrb[140].mxu0 %vm550_vm0, %v5006_v33  ;;  %v5174_v27 = vld [vmem:[%s5918_s2 + $0x110] sm:$0xff]  ;;  %v5181_v53 = vld [vmem:[%s5918_s2 + $0x80] sm:$0xff] }
 0x19c   : > { %2812 = vst [vmem:[%s4783_s10 + $0x6f0] sm:$0xff] %v829_v5  ;;  %2697 = vst [vmem:[%s4783_s10 + $0x358] sm:$0xff] %v1056_v8  ;;  %1722 = vmatprep.mubr.f32.mxu1 %v3922_v0  ;;  %1895 = vmatprep.mubr.f32.mxu0 %v3922_v0 }
 0x19e   : > { %v833_v9 = vpop.f32.mrb[36].mxu0  ;;  %v1060_v54 = vpop.f32.mrb[36].mxu1 }
 0x19f   : > { %2824 = vst [vmem:[%s4783_s10 + $0x750] sm:$0xff] %v833_v9  ;;  %2709 = vst [vmem:[%s4783_s10 + $0x3b8] sm:$0xff] %v1060_v54  ;;  %v835_v10 = vpop.f32.mrb[37].mxu0  ;;  %v1062_v11 = vpop.f32.mrb[37].mxu1  ;;  %3343 = vmatmul.mubr.msk.f32.gmra.mrb[142].mxu1 %vm550_vm0, %v4579_v3  ;;  %3361 = vmatmul.mubr.msk.f32.gmra.mrb[142].mxu0 %vm550_vm0, %v5021_v12 }
 0x1a0   : > { %2825 = vst [vmem:[%s4783_s10 + $0x758] sm:$0xff] %v835_v10  ;;  %2710 = vst [vmem:[%s4783_s10 + $0x3c0] sm:$0xff] %v1062_v11  ;;  %1728 = vmatprep.mubr.f32.mxu1 %v3922_v0  ;;  %1901 = vmatprep.mubr.f32.mxu0 %v3922_v0  ;;  %v5194_v10 = vld [vmem:[%s5918_s2 + $0x118] sm:$0xff]  ;;  %v5201_v11 = vld [vmem:[%s5918_s2 + $0x88] sm:$0xff] }
 0x1a2   : > { %v839_v13 = vpop.f32.mrb[38].mxu0  ;;  %v1066_v25 = vpop.f32.mrb[38].mxu1 }
 0x1a3   : > { %2837 = vst [vmem:[%s4783_s10 + $0x7b8] sm:$0xff] %v839_v13  ;;  %2722 = vst [vmem:[%s4783_s10 + $0x420] sm:$0xff] %v1066_v25  ;;  %v841_v3 = vpop.f32.mrb[39].mxu0  ;;  %v1068_v40 = vpop.f32.mrb[39].mxu1  ;;  %3344 = vmatmul.mubr.msk.f32.gmra.mrb[144].mxu1 %vm550_vm0, %v5034_v16  ;;  %3362 = vmatmul.mubr.msk.f32.gmra.mrb[144].mxu0 %vm550_vm0, %v5041_v17 }
 0x1a4   : > { %2838 = vst [vmem:[%s4783_s10 + $0x7c0] sm:$0xff] %v841_v3  ;;  %2723 = vst [vmem:[%s4783_s10 + $0x428] sm:$0xff] %v1068_v40  ;;  %1734 = vmatprep.mubr.f32.mxu1 %v3922_v0  ;;  %1907 = vmatprep.mubr.f32.mxu0 %v3922_v0 }
 0x1a6   : > { %v845_v18 = vpop.f32.mrb[40].mxu0  ;;  %v1072_v19 = vpop.f32.mrb[40].mxu1 }
 0x1a7   : > { %2850 = vst [vmem:[%s4783_s10 + $0x820] sm:$0xff] %v845_v18  ;;  %2735 = vst [vmem:[%s4783_s10 + $0x488] sm:$0xff] %v1072_v19  ;;  %v847_v23 = vpop.f32.mrb[41].mxu0  ;;  %v1074_v31 = vpop.f32.mrb[41].mxu1  ;;  %3345 = vmatmul.mubr.msk.f32.gmra.mrb[146].mxu1 %vm550_vm0, %v5054_v43  ;;  %3363 = vmatmul.mubr.msk.f32.gmra.mrb[146].mxu0 %vm550_vm0, %v5061_v29  ;;  %v5214_v18 = vld [vmem:[%s5918_s2 + $0x90] sm:$0xff] }
 0x1a8   : > { %2851 = vst [vmem:[%s4783_s10 + $0x828] sm:$0xff] %v847_v23  ;;  %2736 = vst [vmem:[%s4783_s10 + $0x490] sm:$0xff] %v1074_v31  ;;  %1740 = vmatprep.mubr.f32.mxu1 %v3922_v0  ;;  %1913 = vmatprep.mubr.f32.mxu0 %v3922_v0 }
 0x1aa   : > { %v851_v30 = vpop.f32.mrb[42].mxu0  ;;  %v1078_v32 = vpop.f32.mrb[42].mxu1 }
 0x1ab   : > { %2863 = vst [vmem:[%s4783_s10 + $0x888] sm:$0xff] %v851_v30  ;;  %2748 = vst [vmem:[%s4783_s10 + $0x4f0] sm:$0xff] %v1078_v32  ;;  %v853_v6 = vpop.f32.mrb[43].mxu0  ;;  %v1080_v20 = vpop.f32.mrb[43].mxu1  ;;  %3346 = vmatmul.mubr.msk.f32.gmra.mrb[148].mxu1 %vm550_vm0, %v5074_v35  ;;  %3364 = vmatmul.mubr.msk.f32.gmra.mrb[148].mxu0 %vm550_vm0, %v5081_v41  ;;  %v5229_v32 = vld [vmem:[%s5918_s2 + $0x98] sm:$0xff] }
 0x1ac   : > { %2864 = vst [vmem:[%s4783_s10 + $0x890] sm:$0xff] %v853_v6  ;;  %2749 = vst [vmem:[%s4783_s10 + $0x4f8] sm:$0xff] %v1080_v20  ;;  %1746 = vmatprep.mubr.f32.mxu1 %v3922_v0  ;;  %1919 = vmatprep.mubr.f32.mxu0 %v3922_v0 }
 0x1ae   : > { %v857_v1 = vpop.f32.mrb[44].mxu0  ;;  %v1084_v48 = vpop.f32.mrb[44].mxu1 }
 0x1af   : > { %2876 = vst [vmem:[%s4783_s10 + $0x8f0] sm:$0xff] %v857_v1  ;;  %2761 = vst [vmem:[%s4783_s10 + $0x558] sm:$0xff] %v1084_v48  ;;  %v859_v44 = vpop.f32.mrb[45].mxu0  ;;  %v1086_v45 = vpop.f32.mrb[45].mxu1  ;;  %3347 = vmatmul.mubr.msk.f32.gmra.mrb[150].mxu1 %vm550_vm0, %v5094_v24  ;;  %3365 = vmatmul.mubr.msk.f32.gmra.mrb[150].mxu0 %vm550_vm0, %v5101_v28 }
 0x1b0   : > { %2877 = vst [vmem:[%s4783_s10 + $0x8f8] sm:$0xff] %v859_v44  ;;  %2762 = vst [vmem:[%s4783_s10 + $0x560] sm:$0xff] %v1086_v45  ;;  %1752 = vmatprep.mubr.f32.mxu1 %v3922_v0  ;;  %1925 = vmatprep.mubr.f32.mxu0 %v3922_v0  ;;  %v5244_v44 = vld [vmem:[%s5918_s2 + $0xa0] sm:$0xff] }
 0x1b2   : > { %v863_v34 = vpop.f32.mrb[46].mxu0  ;;  %v1090_v47 = vpop.f32.mrb[46].mxu1 }
 0x1b3   : > { %2889 = vst [vmem:[%s4783_s10 + $0x958] sm:$0xff] %v863_v34  ;;  %2774 = vst [vmem:[%s4783_s10 + $0x5c0] sm:$0xff] %v1090_v47  ;;  %v865_v37 = vpop.f32.mrb[47].mxu0  ;;  %v1092_v38 = vpop.f32.mrb[47].mxu1  ;;  %3348 = vmatmul.mubr.msk.f32.gmra.mrb[152].mxu1 %vm550_vm0, %v5114_v46  ;;  %3366 = vmatmul.mubr.msk.f32.gmra.mrb[152].mxu0 %vm550_vm0, %v5121_v39 }
 0x1b4   : > { %2890 = vst [vmem:[%s4783_s10 + $0x960] sm:$0xff] %v865_v37  ;;  %2775 = vst [vmem:[%s4783_s10 + $0x5c8] sm:$0xff] %v1092_v38  ;;  %1758 = vmatprep.mubr.f32.mxu1 %v3922_v0  ;;  %1931 = vmatprep.mubr.f32.mxu0 %v3922_v0  ;;  %v5259_v38 = vld [vmem:[%s5918_s2 + $0xa8] sm:$0xff] }
 0x1b6   : > { %v869_v61 = vpop.f32.mrb[48].mxu0  ;;  %v1096_v49 = vpop.f32.mrb[48].mxu1 }
 0x1b7   : > { %2902 = vst [vmem:[%s4783_s10 + $0x9c0] sm:$0xff] %v869_v61  ;;  %2787 = vst [vmem:[%s4783_s10 + $0x628] sm:$0xff] %v1096_v49  ;;  %v871_v55 = vpop.f32.mrb[49].mxu0  ;;  %v1098_v56 = vpop.f32.mrb[49].mxu1  ;;  %3349 = vmatmul.mubr.msk.f32.gmra.mrb[154].mxu1 %vm550_vm0, %v5134_v15  ;;  %3367 = vmatmul.mubr.msk.f32.gmra.mrb[154].mxu0 %vm550_vm0, %v5141_v50 }
 0x1b8   : > { %2903 = vst [vmem:[%s4783_s10 + $0x9c8] sm:$0xff] %v871_v55  ;;  %2788 = vst [vmem:[%s4783_s10 + $0x630] sm:$0xff] %v1098_v56  ;;  %1764 = vmatprep.mubr.f32.mxu1 %v3922_v0  ;;  %1937 = vmatprep.mubr.f32.mxu0 %v3922_v0 }
 0x1ba   : > { %v875_v57 = vpop.f32.mrb[50].mxu0  ;;  %v1102_v58 = vpop.f32.mrb[50].mxu1 }
 0x1bb   : > { %2915 = vst [vmem:[%s4783_s10 + $0xa28] sm:$0xff] %v875_v57  ;;  %2800 = vst [vmem:[%s4783_s10 + $0x690] sm:$0xff] %v1102_v58  ;;  %v877_v22 = vpop.f32.mrb[51].mxu0  ;;  %v1104_v51 = vpop.f32.mrb[51].mxu1  ;;  %3350 = vmatmul.mubr.msk.f32.gmra.mrb[156].mxu1 %vm550_vm0, %v5154_v59  ;;  %3368 = vmatmul.mubr.msk.f32.gmra.mrb[156].mxu0 %vm550_vm0, %v5161_v60  ;;  %v5274_v57 = vld [vmem:[%s5918_s2 + $0xb0] sm:$0xff] }
 0x1bc   : > { %2916 = vst [vmem:[%s4783_s10 + $0xa30] sm:$0xff] %v877_v22  ;;  %2801 = vst [vmem:[%s4783_s10 + $0x698] sm:$0xff] %v1104_v51  ;;  %1770 = vmatprep.mubr.f32.mxu1 %v3922_v0  ;;  %1943 = vmatprep.mubr.f32.mxu0 %v3922_v0 }
 0x1be   : > { %v881_v26 = vpop.f32.mrb[52].mxu0  ;;  %v1108_v52 = vpop.f32.mrb[52].mxu1 }
 0x1bf   : > { %2928 = vst [vmem:[%s4783_s10 + $0xa90] sm:$0xff] %v881_v26  ;;  %2813 = vst [vmem:[%s4783_s10 + $0x6f8] sm:$0xff] %v1108_v52  ;;  %v883_v62 = vpop.f32.mrb[53].mxu0  ;;  %v1110_v63 = vpop.f32.mrb[53].mxu1  ;;  %3351 = vmatmul.mubr.msk.f32.gmra.mrb[158].mxu1 %vm550_vm0, %v5174_v27  ;;  %3369 = vmatmul.mubr.msk.f32.gmra.mrb[158].mxu0 %vm550_vm0, %v5181_v53  ;;  %v5289_v52 = vld [vmem:[%s5918_s2 + $0xb8] sm:$0xff] }
 0x1c0   : > { %2929 = vst [vmem:[%s4783_s10 + $0xa98] sm:$0xff] %v883_v62  ;;  %2814 = vst [vmem:[%s4783_s10 + $0x700] sm:$0xff] %v1110_v63  ;;  %1776 = vmatprep.mubr.f32.mxu1 %v3922_v0  ;;  %1949 = vmatprep.mubr.f32.mxu0 %v3922_v0 }
 0x1c2   : > { %v1114_v5 = vpop.f32.mrb[54].mxu1  ;;  %v1287_v8 = vpop.f32.mrb[54].mxu0 }
 0x1c3   : > { %2826 = vst [vmem:[%s4783_s10 + $0x760] sm:$0xff] %v1114_v5  ;;  %2594 = vst [vmem:[%s4783_s10 + $0x20] sm:$0xff] %v1287_v8  ;;  %v1116_v9 = vpop.f32.mrb[55].mxu1  ;;  %v1289_v54 = vpop.f32.mrb[55].mxu0  ;;  %3352 = vmatmul.mubr.msk.f32.gmra.mrb[160].mxu1 %vm550_vm0, %v5194_v10  ;;  %3370 = vmatmul.mubr.msk.f32.gmra.mrb[160].mxu0 %vm550_vm0, %v5201_v11 }
 0x1c4   : > { %2827 = vst [vmem:[%s4783_s10 + $0x768] sm:$0xff] %v1116_v9  ;;  %2595 = vst [vmem:[%s4783_s10 + $0x28] sm:$0xff] %v1289_v54  ;;  %1955 = vmatprep.mubr.f32.mxu0 %v3922_v0  ;;  %2128 = vmatprep.mubr.f32.mxu1 %v3922_v0  ;;  %v5304_v9 = vld [vmem:[%s5918_s2 + $0xc0] sm:$0xff] }
 0x1c6   : > { %v1120_v13 = vpop.f32.mrb[56].mxu1  ;;  %v1293_v25 = vpop.f32.mrb[56].mxu0 }
 0x1c7   : > { %2839 = vst [vmem:[%s4783_s10 + $0x7c8] sm:$0xff] %v1120_v13  ;;  %2607 = vst [vmem:[%s4783_s10 + $0x88] sm:$0xff] %v1293_v25  ;;  %v1122_v3 = vpop.f32.mrb[57].mxu1  ;;  %v1295_v40 = vpop.f32.mrb[57].mxu0  ;;  %3371 = vmatmul.mubr.msk.f32.gmra.mrb[162].mxu0 %vm550_vm0, %v5214_v18  ;;  %3389 = vmatmul.mubr.msk.f32.vlgmr.msra.gmra.mrb[162].mxu1 %vm550_vm0, %v4900_v4 }
 0x1c8   : > { %2840 = vst [vmem:[%s4783_s10 + $0x7d0] sm:$0xff] %v1122_v3  ;;  %2608 = vst [vmem:[%s4783_s10 + $0x90] sm:$0xff] %v1295_v40  ;;  %1961 = vmatprep.mubr.f32.mxu0 %v3922_v0  ;;  %2134 = vmatprep.mubr.f32.mxu1 %v3922_v0  ;;  %v5319_v40 = vld [vmem:[%s5918_s2 + $0xc8] sm:$0xff] }
 0x1ca   : > { %v1126_v19 = vpop.f32.mrb[58].mxu1  ;;  %v1299_v23 = vpop.f32.mrb[58].mxu0 }
 0x1cb   : > { %2852 = vst [vmem:[%s4783_s10 + $0x830] sm:$0xff] %v1126_v19  ;;  %2620 = vst [vmem:[%s4783_s10 + $0xf0] sm:$0xff] %v1299_v23  ;;  %v1128_v31 = vpop.f32.mrb[59].mxu1  ;;  %v1301_v30 = vpop.f32.mrb[59].mxu0  ;;  %3372 = vmatmul.mubr.msk.f32.gmra.mrb[164].mxu0 %vm550_vm0, %v5229_v32  ;;  %3390 = vmatmul.mubr.msk.f32.gmra.mrb[164].mxu1 %vm550_vm0, %v4916_v14 }
 0x1cc   : > { %2853 = vst [vmem:[%s4783_s10 + $0x838] sm:$0xff] %v1128_v31  ;;  %2621 = vst [vmem:[%s4783_s10 + $0xf8] sm:$0xff] %v1301_v30  ;;  %1967 = vmatprep.mubr.f32.mxu0 %v3922_v0  ;;  %2140 = vmatprep.mubr.f32.mxu1 %v3922_v0 }
 0x1ce   : > { %v1132_v6 = vpop.f32.mrb[60].mxu1  ;;  %v1305_v20 = vpop.f32.mrb[60].mxu0 }
 0x1cf   : > { %2865 = vst [vmem:[%s4783_s10 + $0x898] sm:$0xff] %v1132_v6  ;;  %2633 = vst [vmem:[%s4783_s10 + $0x158] sm:$0xff] %v1305_v20  ;;  %v1134_v1 = vpop.f32.mrb[61].mxu1  ;;  %v1307_v48 = vpop.f32.mrb[61].mxu0  ;;  %3373 = vmatmul.mubr.msk.f32.gmra.mrb[166].mxu0 %vm550_vm0, %v5244_v44  ;;  %3391 = vmatmul.mubr.msk.f32.gmra.mrb[166].mxu1 %vm550_vm0, %v4931_v7  ;;  %v5334_v6 = vld [vmem:[%s5918_s2 + $0xd0] sm:$0xff] }
 0x1d0   : > { %2866 = vst [vmem:[%s4783_s10 + $0x8a0] sm:$0xff] %v1134_v1  ;;  %2634 = vst [vmem:[%s4783_s10 + $0x160] sm:$0xff] %v1307_v48  ;;  %1973 = vmatprep.mubr.f32.mxu0 %v3922_v0  ;;  %2146 = vmatprep.mubr.f32.mxu1 %v3922_v0 }
 0x1d2   : > { %v1138_v45 = vpop.f32.mrb[62].mxu1  ;;  %v1311_v34 = vpop.f32.mrb[62].mxu0 }
 0x1d3   : > { %2878 = vst [vmem:[%s4783_s10 + $0x900] sm:$0xff] %v1138_v45  ;;  %2646 = vst [vmem:[%s4783_s10 + $0x1c0] sm:$0xff] %v1311_v34  ;;  %v1140_v47 = vpop.f32.mrb[63].mxu1  ;;  %v1313_v37 = vpop.f32.mrb[63].mxu0  ;;  %3374 = vmatmul.mubr.msk.f32.gmra.mrb[168].mxu0 %vm550_vm0, %v5259_v38  ;;  %3392 = vmatmul.mubr.msk.f32.gmra.mrb[168].mxu1 %vm550_vm0, %v4946_v21 }
 0x1d4   : > { %2879 = vst [vmem:[%s4783_s10 + $0x908] sm:$0xff] %v1140_v47  ;;  %2647 = vst [vmem:[%s4783_s10 + $0x1c8] sm:$0xff] %v1313_v37  ;;  %1979 = vmatprep.mubr.f32.mxu0 %v3922_v0  ;;  %2152 = vmatprep.mubr.f32.mxu1 %v3922_v0 }
 0x1d6   : > { %v1144_v61 = vpop.f32.mrb[64].mxu1  ;;  %v1317_v49 = vpop.f32.mrb[64].mxu0 }
 0x1d7   : > { %2891 = vst [vmem:[%s4783_s10 + $0x968] sm:$0xff] %v1144_v61  ;;  %2659 = vst [vmem:[%s4783_s10 + $0x228] sm:$0xff] %v1317_v49  ;;  %v1146_v55 = vpop.f32.mrb[65].mxu1  ;;  %v1319_v56 = vpop.f32.mrb[65].mxu0  ;;  %3375 = vmatmul.mubr.msk.f32.gmra.mrb[170].mxu0 %vm550_vm0, %v5274_v57  ;;  %3393 = vmatmul.mubr.msk.f32.gmra.mrb[170].mxu1 %vm550_vm0, %v4961_v36 }
 0x1d8   : > { %2892 = vst [vmem:[%s4783_s10 + $0x970] sm:$0xff] %v1146_v55  ;;  %2660 = vst [vmem:[%s4783_s10 + $0x230] sm:$0xff] %v1319_v56  ;;  %1985 = vmatprep.mubr.f32.mxu0 %v3922_v0  ;;  %2158 = vmatprep.mubr.f32.mxu1 %v3922_v0 }
 0x1da   : > { %v1150_v58 = vpop.f32.mrb[66].mxu1  ;;  %v1323_v22 = vpop.f32.mrb[66].mxu0 }
 0x1db   : > { %2904 = vst [vmem:[%s4783_s10 + $0x9d0] sm:$0xff] %v1150_v58  ;;  %2672 = vst [vmem:[%s4783_s10 + $0x290] sm:$0xff] %v1323_v22  ;;  %v1152_v51 = vpop.f32.mrb[67].mxu1  ;;  %v1325_v26 = vpop.f32.mrb[67].mxu0  ;;  %3376 = vmatmul.mubr.msk.f32.gmra.mrb[172].mxu0 %vm550_vm0, %v5289_v52  ;;  %3394 = vmatmul.mubr.msk.f32.gmra.mrb[172].mxu1 %vm550_vm0, %v4976_v42 }
 0x1dc   : > { %2905 = vst [vmem:[%s4783_s10 + $0x9d8] sm:$0xff] %v1152_v51  ;;  %2673 = vst [vmem:[%s4783_s10 + $0x298] sm:$0xff] %v1325_v26  ;;  %1991 = vmatprep.mubr.f32.mxu0 %v3922_v0  ;;  %2164 = vmatprep.mubr.f32.mxu1 %v3922_v0 }
 0x1de   : > { %v1156_v62 = vpop.f32.mrb[68].mxu1  ;;  %v1329_v63 = vpop.f32.mrb[68].mxu0 }
 0x1df   : > { %2917 = vst [vmem:[%s4783_s10 + $0xa38] sm:$0xff] %v1156_v62  ;;  %2685 = vst [vmem:[%s4783_s10 + $0x2f8] sm:$0xff] %v1329_v63  ;;  %v1158_v5 = vpop.f32.mrb[69].mxu1  ;;  %v1331_v8 = vpop.f32.mrb[69].mxu0  ;;  %3377 = vmatmul.mubr.msk.f32.gmra.mrb[174].mxu0 %vm550_vm0, %v5304_v9  ;;  %3395 = vmatmul.mubr.msk.f32.gmra.mrb[174].mxu1 %vm550_vm0, %v4991_v2 }
 0x1e0   : > { %2918 = vst [vmem:[%s4783_s10 + $0xa40] sm:$0xff] %v1158_v5  ;;  %2686 = vst [vmem:[%s4783_s10 + $0x300] sm:$0xff] %v1331_v8  ;;  %1997 = vmatprep.mubr.f32.mxu0 %v3922_v0  ;;  %2170 = vmatprep.mubr.f32.mxu1 %v3922_v0 }
 0x1e2   : > { %v1162_v54 = vpop.f32.mrb[70].mxu1  ;;  %v1335_v13 = vpop.f32.mrb[70].mxu0 }
 0x1e3   : > { %2930 = vst [vmem:[%s4783_s10 + $0xaa0] sm:$0xff] %v1162_v54  ;;  %2698 = vst [vmem:[%s4783_s10 + $0x360] sm:$0xff] %v1335_v13  ;;  %v1164_v25 = vpop.f32.mrb[71].mxu1  ;;  %v1337_v3 = vpop.f32.mrb[71].mxu0  ;;  %3378 = vmatmul.mubr.msk.f32.gmra.mrb[176].mxu0 %vm550_vm0, %v5319_v40  ;;  %3396 = vmatmul.mubr.msk.f32.gmra.mrb[176].mxu1 %vm550_vm0, %v5006_v33 }
 0x1e4   : > { %2931 = vst [vmem:[%s4783_s10 + $0xaa8] sm:$0xff] %v1164_v25  ;;  %2699 = vst [vmem:[%s4783_s10 + $0x368] sm:$0xff] %v1337_v3  ;;  %2003 = vmatprep.mubr.f32.mxu0 %v3922_v0  ;;  %2176 = vmatprep.mubr.f32.mxu1 %v3922_v0 }
 0x1e6   : > { %v1168_v19 = vpop.f32.mrb[72].mxu1  ;;  %v1341_v23 = vpop.f32.mrb[72].mxu0 }
 0x1e7   : > { %2943 = vst [vmem:[%s4783_s10 + $0xb08] sm:$0xff] %v1168_v19  ;;  %2711 = vst [vmem:[%s4783_s10 + $0x3c8] sm:$0xff] %v1341_v23  ;;  %v1170_v31 = vpop.f32.mrb[73].mxu1  ;;  %v1343_v30 = vpop.f32.mrb[73].mxu0  ;;  %3379 = vmatmul.mubr.msk.f32.gmra.mrb[178].mxu0 %vm550_vm0, %v5334_v6  ;;  %3397 = vmatmul.mubr.msk.f32.gmra.mrb[178].mxu1 %vm550_vm0, %v5021_v12 }
 0x1e8   : > { %2944 = vst [vmem:[%s4783_s10 + $0xb10] sm:$0xff] %v1170_v31  ;;  %2712 = vst [vmem:[%s4783_s10 + $0x3d0] sm:$0xff] %v1343_v30  ;;  %2009 = vmatprep.mubr.f32.mxu0 %v3922_v0  ;;  %2182 = vmatprep.mubr.f32.mxu1 %v3922_v0 }
 0x1ea   : > { %v1174_v20 = vpop.f32.mrb[74].mxu1  ;;  %v1347_v1 = vpop.f32.mrb[74].mxu0 }
 0x1eb   : > { %2956 = vst [vmem:[%s4783_s10 + $0xb70] sm:$0xff] %v1174_v20  ;;  %2724 = vst [vmem:[%s4783_s10 + $0x430] sm:$0xff] %v1347_v1  ;;  %v1176_v48 = vpop.f32.mrb[75].mxu1  ;;  %v1349_v45 = vpop.f32.mrb[75].mxu0  ;;  %3380 = vmatmul.mubr.msk.f32.gmra.mrb[180].mxu0 %vm550_vm0, %v5034_v16  ;;  %3398 = vmatmul.mubr.msk.f32.gmra.mrb[180].mxu1 %vm550_vm0, %v5041_v17 }
 0x1ec   : > { %2957 = vst [vmem:[%s4783_s10 + $0xb78] sm:$0xff] %v1176_v48  ;;  %2725 = vst [vmem:[%s4783_s10 + $0x438] sm:$0xff] %v1349_v45  ;;  %2015 = vmatprep.mubr.f32.mxu0 %v3922_v0  ;;  %2188 = vmatprep.mubr.f32.mxu1 %v3922_v0 }
 0x1ee   : > { %v1180_v34 = vpop.f32.mrb[76].mxu1  ;;  %v1353_v47 = vpop.f32.mrb[76].mxu0 }
 0x1ef   : > { %2969 = vst [vmem:[%s4783_s10 + $0xbd8] sm:$0xff] %v1180_v34  ;;  %2737 = vst [vmem:[%s4783_s10 + $0x498] sm:$0xff] %v1353_v47  ;;  %v1182_v37 = vpop.f32.mrb[77].mxu1  ;;  %v1355_v61 = vpop.f32.mrb[77].mxu0  ;;  %3381 = vmatmul.mubr.msk.f32.gmra.mrb[182].mxu0 %vm550_vm0, %v5054_v43  ;;  %3399 = vmatmul.mubr.msk.f32.gmra.mrb[182].mxu1 %vm550_vm0, %v5061_v29 }
 0x1f0   : > { %2970 = vst [vmem:[%s4783_s10 + $0xbe0] sm:$0xff] %v1182_v37  ;;  %2738 = vst [vmem:[%s4783_s10 + $0x4a0] sm:$0xff] %v1355_v61  ;;  %2021 = vmatprep.mubr.f32.mxu0 %v3922_v0  ;;  %2194 = vmatprep.mubr.f32.mxu1 %v3922_v0 }
 0x1f2   : > { %v1186_v49 = vpop.f32.mrb[78].mxu1  ;;  %v1359_v55 = vpop.f32.mrb[78].mxu0 }
 0x1f3   : > { %2982 = vst [vmem:[%s4783_s10 + $0xc40] sm:$0xff] %v1186_v49  ;;  %2750 = vst [vmem:[%s4783_s10 + $0x500] sm:$0xff] %v1359_v55  ;;  %v1188_v56 = vpop.f32.mrb[79].mxu1  ;;  %v1361_v58 = vpop.f32.mrb[79].mxu0  ;;  %3382 = vmatmul.mubr.msk.f32.gmra.mrb[184].mxu0 %vm550_vm0, %v5074_v35  ;;  %3400 = vmatmul.mubr.msk.f32.gmra.mrb[184].mxu1 %vm550_vm0, %v5081_v41 }
 0x1f4   : > { %2983 = vst [vmem:[%s4783_s10 + $0xc48] sm:$0xff] %v1188_v56  ;;  %2751 = vst [vmem:[%s4783_s10 + $0x508] sm:$0xff] %v1361_v58  ;;  %2027 = vmatprep.mubr.f32.mxu0 %v3922_v0  ;;  %2200 = vmatprep.mubr.f32.mxu1 %v3922_v0 }
 0x1f6   : > { %v1192_v22 = vpop.f32.mrb[80].mxu1  ;;  %v1365_v51 = vpop.f32.mrb[80].mxu0 }
 0x1f7   : > { %2995 = vst [vmem:[%s4783_s10 + $0xca8] sm:$0xff] %v1192_v22  ;;  %2763 = vst [vmem:[%s4783_s10 + $0x568] sm:$0xff] %v1365_v51  ;;  %v1194_v26 = vpop.f32.mrb[81].mxu1  ;;  %v1367_v62 = vpop.f32.mrb[81].mxu0  ;;  %3383 = vmatmul.mubr.msk.f32.gmra.mrb[186].mxu0 %vm550_vm0, %v5094_v24  ;;  %3401 = vmatmul.mubr.msk.f32.gmra.mrb[186].mxu1 %vm550_vm0, %v5101_v28 }
 0x1f8   : > { %2996 = vst [vmem:[%s4783_s10 + $0xcb0] sm:$0xff] %v1194_v26  ;;  %2764 = vst [vmem:[%s4783_s10 + $0x570] sm:$0xff] %v1367_v62  ;;  %2033 = vmatprep.mubr.f32.mxu0 %v3922_v0  ;;  %2206 = vmatprep.mubr.f32.mxu1 %v3922_v0 }
 0x1fa   : > { %v1198_v63 = vpop.f32.mrb[82].mxu1  ;;  %v1371_v5 = vpop.f32.mrb[82].mxu0 }
 0x1fb   : > { %3008 = vst [vmem:[%s4783_s10 + $0xd10] sm:$0xff] %v1198_v63  ;;  %2776 = vst [vmem:[%s4783_s10 + $0x5d0] sm:$0xff] %v1371_v5  ;;  %v1200_v8 = vpop.f32.mrb[83].mxu1  ;;  %v1373_v54 = vpop.f32.mrb[83].mxu0  ;;  %3384 = vmatmul.mubr.msk.f32.gmra.mrb[188].mxu0 %vm550_vm0, %v5114_v46  ;;  %3402 = vmatmul.mubr.msk.f32.gmra.mrb[188].mxu1 %vm550_vm0, %v5121_v39 }
 0x1fc   : > { %3009 = vst [vmem:[%s4783_s10 + $0xd18] sm:$0xff] %v1200_v8  ;;  %2777 = vst [vmem:[%s4783_s10 + $0x5d8] sm:$0xff] %v1373_v54  ;;  %2039 = vmatprep.mubr.f32.mxu0 %v3922_v0  ;;  %2212 = vmatprep.mubr.f32.mxu1 %v3922_v0 }
 0x1fe   : > { %v1204_v13 = vpop.f32.mrb[84].mxu1  ;;  %v1377_v25 = vpop.f32.mrb[84].mxu0 }
 0x1ff   : > { %3021 = vst [vmem:[%s4783_s10 + $0xd78] sm:$0xff] %v1204_v13  ;;  %2789 = vst [vmem:[%s4783_s10 + $0x638] sm:$0xff] %v1377_v25  ;;  %v1206_v3 = vpop.f32.mrb[85].mxu1  ;;  %v1379_v19 = vpop.f32.mrb[85].mxu0  ;;  %3385 = vmatmul.mubr.msk.f32.gmra.mrb[190].mxu0 %vm550_vm0, %v5134_v15  ;;  %3403 = vmatmul.mubr.msk.f32.gmra.mrb[190].mxu1 %vm550_vm0, %v5141_v50 }
 0x200   : > { %3022 = vst [vmem:[%s4783_s10 + $0xd80] sm:$0xff] %v1206_v3  ;;  %2790 = vst [vmem:[%s4783_s10 + $0x640] sm:$0xff] %v1379_v19  ;;  %2045 = vmatprep.mubr.f32.mxu0 %v3922_v0  ;;  %2218 = vmatprep.mubr.f32.mxu1 %v3922_v0 }
 0x202   : > { %v1210_v23 = vpop.f32.mrb[86].mxu1  ;;  %v1383_v31 = vpop.f32.mrb[86].mxu0 }
 0x203   : > { %3034 = vst [vmem:[%s4783_s10 + $0xde0] sm:$0xff] %v1210_v23  ;;  %2802 = vst [vmem:[%s4783_s10 + $0x6a0] sm:$0xff] %v1383_v31  ;;  %v1212_v30 = vpop.f32.mrb[87].mxu1  ;;  %v1385_v20 = vpop.f32.mrb[87].mxu0  ;;  %3386 = vmatmul.mubr.msk.f32.gmra.mrb[192].mxu0 %vm550_vm0, %v5154_v59  ;;  %3404 = vmatmul.mubr.msk.f32.gmra.mrb[192].mxu1 %vm550_vm0, %v5161_v60 }
 0x204   : > { %3035 = vst [vmem:[%s4783_s10 + $0xde8] sm:$0xff] %v1212_v30  ;;  %2803 = vst [vmem:[%s4783_s10 + $0x6a8] sm:$0xff] %v1385_v20  ;;  %2051 = vmatprep.mubr.f32.mxu0 %v3922_v0  ;;  %2224 = vmatprep.mubr.f32.mxu1 %v3922_v0 }
 0x206   : > { %v1216_v1 = vpop.f32.mrb[88].mxu1  ;;  %v1389_v48 = vpop.f32.mrb[88].mxu0 }
 0x207   : > { %3047 = vst [vmem:[%s4783_s10 + $0xe48] sm:$0xff] %v1216_v1  ;;  %2815 = vst [vmem:[%s4783_s10 + $0x708] sm:$0xff] %v1389_v48  ;;  %v1218_v45 = vpop.f32.mrb[89].mxu1  ;;  %v1391_v34 = vpop.f32.mrb[89].mxu0  ;;  %3387 = vmatmul.mubr.msk.f32.gmra.mrb[194].mxu0 %vm550_vm0, %v5174_v27  ;;  %3405 = vmatmul.mubr.msk.f32.gmra.mrb[194].mxu1 %vm550_vm0, %v5181_v53 }
 0x208   : > { %3048 = vst [vmem:[%s4783_s10 + $0xe50] sm:$0xff] %v1218_v45  ;;  %2816 = vst [vmem:[%s4783_s10 + $0x710] sm:$0xff] %v1391_v34  ;;  %2057 = vmatprep.mubr.f32.mxu0 %v3922_v0  ;;  %2230 = vmatprep.mubr.f32.mxu1 %v3922_v0 }
 0x20a   : > { %v1395_v47 = vpop.f32.mrb[90].mxu0  ;;  %v1568_v37 = vpop.f32.mrb[90].mxu1 }
 0x20b   : > { %2828 = vst [vmem:[%s4783_s10 + $0x770] sm:$0xff] %v1395_v47  ;;  %2596 = vst [vmem:[%s4783_s10 + $0x30] sm:$0xff] %v1568_v37  ;;  %v1397_v61 = vpop.f32.mrb[91].mxu0  ;;  %v1570_v49 = vpop.f32.mrb[91].mxu1  ;;  %3388 = vmatmul.mubr.msk.f32.gmra.mrb[196].mxu0 %vm550_vm0, %v5194_v10  ;;  %3406 = vmatmul.mubr.msk.f32.gmra.mrb[196].mxu1 %vm550_vm0, %v5201_v11 }
 0x20c   : > { %2829 = vst [vmem:[%s4783_s10 + $0x778] sm:$0xff] %v1397_v61  ;;  %2597 = vst [vmem:[%s4783_s10 + $0x38] sm:$0xff] %v1570_v49  ;;  %2236 = vmatprep.mubr.f32.mxu1 %v3922_v0  ;;  %3525 = vmatprep.mubr.msk.f32.mxu0 %vm550_vm0, %v4900_v4 }
 0x20e   : > { %v1401_v55 = vpop.f32.mrb[92].mxu0  ;;  %v1574_v56 = vpop.f32.mrb[92].mxu1 }
 0x20f   : > { %2841 = vst [vmem:[%s4783_s10 + $0x7d8] sm:$0xff] %v1401_v55  ;;  %2609 = vst [vmem:[%s4783_s10 + $0x98] sm:$0xff] %v1574_v56  ;;  %v1403_v58 = vpop.f32.mrb[93].mxu0  ;;  %v1576_v22 = vpop.f32.mrb[93].mxu1  ;;  %3407 = vmatmul.mubr.msk.f32.gmra.mrb[198].mxu1 %vm550_vm0, %v5214_v18  ;;  %3526 = vmatmul.mubr.msk.f32.vlgmr.msra.gmra.mrb[198].mxu0 %vm550_vm0, %v4916_v14 }
 0x210   : > { %2842 = vst [vmem:[%s4783_s10 + $0x7e0] sm:$0xff] %v1403_v58  ;;  %2610 = vst [vmem:[%s4783_s10 + $0xa0] sm:$0xff] %v1576_v22  ;;  %2242 = vmatprep.mubr.f32.mxu1 %v3922_v0  ;;  %3528 = vmatprep.mubr.msk.f32.mxu0 %vm550_vm0, %v4931_v7 }
 0x212   : > { %v1407_v4 = vpop.f32.mrb[94].mxu0  ;;  %v1580_v51 = vpop.f32.mrb[94].mxu1 }
 0x213   : > { %2854 = vst [vmem:[%s4783_s10 + $0x840] sm:$0xff] %v1407_v4  ;;  %2622 = vst [vmem:[%s4783_s10 + $0x100] sm:$0xff] %v1580_v51  ;;  %v1409_v26 = vpop.f32.mrb[95].mxu0  ;;  %v1582_v62 = vpop.f32.mrb[95].mxu1  ;;  %3408 = vmatmul.mubr.msk.f32.gmra.mrb[200].mxu1 %vm550_vm0, %v5229_v32  ;;  %3529 = vmatmul.mubr.msk.f32.gmra.mrb[200].mxu0 %vm550_vm0, %v4946_v21 }
 0x214   : > { %2855 = vst [vmem:[%s4783_s10 + $0x848] sm:$0xff] %v1409_v26  ;;  %2623 = vst [vmem:[%s4783_s10 + $0x108] sm:$0xff] %v1582_v62  ;;  %2248 = vmatprep.mubr.f32.mxu1 %v3922_v0  ;;  %3531 = vmatprep.mubr.msk.f32.mxu0 %vm550_vm0, %v4961_v36 }
 0x216   : > { %v1413_v14 = vpop.f32.mrb[96].mxu0  ;;  %v1586_v7 = vpop.f32.mrb[96].mxu1 }
 0x217   : > { %2867 = vst [vmem:[%s4783_s10 + $0x8a8] sm:$0xff] %v1413_v14  ;;  %2635 = vst [vmem:[%s4783_s10 + $0x168] sm:$0xff] %v1586_v7  ;;  %v1415_v63 = vpop.f32.mrb[97].mxu0  ;;  %v1588_v5 = vpop.f32.mrb[97].mxu1  ;;  %3409 = vmatmul.mubr.msk.f32.gmra.mrb[202].mxu1 %vm550_vm0, %v5244_v44  ;;  %3532 = vmatmul.mubr.msk.f32.gmra.mrb[202].mxu0 %vm550_vm0, %v4976_v42 }
 0x218   : > { %2868 = vst [vmem:[%s4783_s10 + $0x8b0] sm:$0xff] %v1415_v63  ;;  %2636 = vst [vmem:[%s4783_s10 + $0x170] sm:$0xff] %v1588_v5  ;;  %2254 = vmatprep.mubr.f32.mxu1 %v3922_v0  ;;  %3534 = vmatprep.mubr.msk.f32.mxu0 %vm550_vm0, %v4991_v2 }
 0x21a   : > { %v1419_v21 = vpop.f32.mrb[98].mxu0  ;;  %v1592_v36 = vpop.f32.mrb[98].mxu1 }
 0x21b   : > { %2880 = vst [vmem:[%s4783_s10 + $0x910] sm:$0xff] %v1419_v21  ;;  %2648 = vst [vmem:[%s4783_s10 + $0x1d0] sm:$0xff] %v1592_v36  ;;  %v1421_v8 = vpop.f32.mrb[99].mxu0  ;;  %v1594_v54 = vpop.f32.mrb[99].mxu1  ;;  %3410 = vmatmul.mubr.msk.f32.gmra.mrb[204].mxu1 %vm550_vm0, %v5259_v38  ;;  %3535 = vmatmul.mubr.msk.f32.gmra.mrb[204].mxu0 %vm550_vm0, %v5006_v33 }
 0x21c   : > { %2881 = vst [vmem:[%s4783_s10 + $0x918] sm:$0xff] %v1421_v8  ;;  %2649 = vst [vmem:[%s4783_s10 + $0x1d8] sm:$0xff] %v1594_v54  ;;  %2260 = vmatprep.mubr.f32.mxu1 %v3922_v0  ;;  %3537 = vmatprep.mubr.msk.f32.mxu0 %vm550_vm0, %v5021_v12 }
 0x21e   : > { %v1425_v42 = vpop.f32.mrb[100].mxu0  ;;  %v1598_v2 = vpop.f32.mrb[100].mxu1 }
 0x21f   : > { %2893 = vst [vmem:[%s4783_s10 + $0x978] sm:$0xff] %v1425_v42  ;;  %2661 = vst [vmem:[%s4783_s10 + $0x238] sm:$0xff] %v1598_v2  ;;  %v1427_v13 = vpop.f32.mrb[101].mxu0  ;;  %v1600_v25 = vpop.f32.mrb[101].mxu1  ;;  %3411 = vmatmul.mubr.msk.f32.gmra.mrb[206].mxu1 %vm550_vm0, %v5274_v57  ;;  %3538 = vmatmul.mubr.msk.f32.gmra.mrb[206].mxu0 %vm550_vm0, %v5041_v17 }
 0x220   : > { %2894 = vst [vmem:[%s4783_s10 + $0x980] sm:$0xff] %v1427_v13  ;;  %2662 = vst [vmem:[%s4783_s10 + $0x240] sm:$0xff] %v1600_v25  ;;  %2266 = vmatprep.mubr.f32.mxu1 %v3922_v0  ;;  %3540 = vmatprep.mubr.msk.f32.mxu0 %vm550_vm0, %v5061_v29 }
 0x222   : > { %v1431_v33 = vpop.f32.mrb[102].mxu0  ;;  %v1604_v12 = vpop.f32.mrb[102].mxu1 }
 0x223   : > { %2906 = vst [vmem:[%s4783_s10 + $0x9e0] sm:$0xff] %v1431_v33  ;;  %2674 = vst [vmem:[%s4783_s10 + $0x2a0] sm:$0xff] %v1604_v12  ;;  %v1433_v3 = vpop.f32.mrb[103].mxu0  ;;  %v1606_v19 = vpop.f32.mrb[103].mxu1  ;;  %3412 = vmatmul.mubr.msk.f32.gmra.mrb[208].mxu1 %vm550_vm0, %v5289_v52  ;;  %3541 = vmatmul.mubr.msk.f32.gmra.mrb[208].mxu0 %vm550_vm0, %v5081_v41 }
 0x224   : > { %2907 = vst [vmem:[%s4783_s10 + $0x9e8] sm:$0xff] %v1433_v3  ;;  %2675 = vst [vmem:[%s4783_s10 + $0x2a8] sm:$0xff] %v1606_v19  ;;  %2272 = vmatprep.mubr.f32.mxu1 %v3922_v0  ;;  %3543 = vmatprep.mubr.msk.f32.mxu0 %vm550_vm0, %v5101_v28 }
 0x226   : > { %v1437_v17 = vpop.f32.mrb[104].mxu0  ;;  %v1610_v29 = vpop.f32.mrb[104].mxu1 }
 0x227   : > { %2919 = vst [vmem:[%s4783_s10 + $0xa48] sm:$0xff] %v1437_v17  ;;  %2687 = vst [vmem:[%s4783_s10 + $0x308] sm:$0xff] %v1610_v29  ;;  %v1439_v23 = vpop.f32.mrb[105].mxu0  ;;  %v1612_v31 = vpop.f32.mrb[105].mxu1  ;;  %3413 = vmatmul.mubr.msk.f32.gmra.mrb[210].mxu1 %vm550_vm0, %v5304_v9  ;;  %3544 = vmatmul.mubr.msk.f32.gmra.mrb[210].mxu0 %vm550_vm0, %v5121_v39 }
 0x228   : > { %2920 = vst [vmem:[%s4783_s10 + $0xa50] sm:$0xff] %v1439_v23  ;;  %2688 = vst [vmem:[%s4783_s10 + $0x310] sm:$0xff] %v1612_v31  ;;  %2278 = vmatprep.mubr.f32.mxu1 %v3922_v0  ;;  %3546 = vmatprep.mubr.msk.f32.mxu0 %vm550_vm0, %v5141_v50 }
 0x22a   : > { %v1443_v41 = vpop.f32.mrb[106].mxu0  ;;  %v1616_v28 = vpop.f32.mrb[106].mxu1 }
 0x22b   : > { %2932 = vst [vmem:[%s4783_s10 + $0xab0] sm:$0xff] %v1443_v41  ;;  %2700 = vst [vmem:[%s4783_s10 + $0x370] sm:$0xff] %v1616_v28  ;;  %v1445_v30 = vpop.f32.mrb[107].mxu0  ;;  %v1618_v20 = vpop.f32.mrb[107].mxu1  ;;  %3414 = vmatmul.mubr.msk.f32.gmra.mrb[212].mxu1 %vm550_vm0, %v5319_v40  ;;  %3547 = vmatmul.mubr.msk.f32.gmra.mrb[212].mxu0 %vm550_vm0, %v5161_v60 }
 0x22c   : > { %2933 = vst [vmem:[%s4783_s10 + $0xab8] sm:$0xff] %v1445_v30  ;;  %2701 = vst [vmem:[%s4783_s10 + $0x378] sm:$0xff] %v1618_v20  ;;  %2284 = vmatprep.mubr.f32.mxu1 %v3922_v0  ;;  %3549 = vmatprep.mubr.msk.f32.mxu0 %vm550_vm0, %v5181_v53 }
 0x22e   : > { %v1449_v39 = vpop.f32.mrb[108].mxu0  ;;  %v1622_v50 = vpop.f32.mrb[108].mxu1 }
 0x22f   : > { %2945 = vst [vmem:[%s4783_s10 + $0xb18] sm:$0xff] %v1449_v39  ;;  %2713 = vst [vmem:[%s4783_s10 + $0x3d8] sm:$0xff] %v1622_v50  ;;  %v1451_v1 = vpop.f32.mrb[109].mxu0  ;;  %v1624_v48 = vpop.f32.mrb[109].mxu1  ;;  %3415 = vmatmul.mubr.msk.f32.gmra.mrb[214].mxu1 %vm550_vm0, %v5334_v6  ;;  %3550 = vmatmul.mubr.msk.f32.gmra.mrb[214].mxu0 %vm550_vm0, %v5201_v11 }
 0x230   : > { %2946 = vst [vmem:[%s4783_s10 + $0xb20] sm:$0xff] %v1451_v1  ;;  %2714 = vst [vmem:[%s4783_s10 + $0x3e0] sm:$0xff] %v1624_v48  ;;  %2290 = vmatprep.mubr.f32.mxu1 %v3922_v0  ;;  %3552 = vmatprep.mubr.msk.f32.mxu0 %vm550_vm0, %v5214_v18 }
 0x232   : > { %v1455_v60 = vpop.f32.mrb[110].mxu0  ;;  %v1628_v53 = vpop.f32.mrb[110].mxu1 }
 0x233   : > { %2958 = vst [vmem:[%s4783_s10 + $0xb80] sm:$0xff] %v1455_v60  ;;  %2726 = vst [vmem:[%s4783_s10 + $0x440] sm:$0xff] %v1628_v53  ;;  %v1457_v45 = vpop.f32.mrb[111].mxu0  ;;  %v1630_v34 = vpop.f32.mrb[111].mxu1  ;;  %3416 = vmatmul.mubr.msk.f32.gmra.mrb[216].mxu1 %vm550_vm0, %v5034_v16  ;;  %3553 = vmatmul.mubr.msk.f32.gmra.mrb[216].mxu0 %vm550_vm0, %v5229_v32 }
 0x234   : > { %2959 = vst [vmem:[%s4783_s10 + $0xb88] sm:$0xff] %v1457_v45  ;;  %2727 = vst [vmem:[%s4783_s10 + $0x448] sm:$0xff] %v1630_v34  ;;  %2296 = vmatprep.mubr.f32.mxu1 %v3922_v0  ;;  %3555 = vmatprep.mubr.msk.f32.mxu0 %vm550_vm0, %v5244_v44 }
 0x236   : > { %v1461_v11 = vpop.f32.mrb[112].mxu0  ;;  %v1634_v18 = vpop.f32.mrb[112].mxu1 }
 0x237   : > { %2971 = vst [vmem:[%s4783_s10 + $0xbe8] sm:$0xff] %v1461_v11  ;;  %2739 = vst [vmem:[%s4783_s10 + $0x4a8] sm:$0xff] %v1634_v18  ;;  %v1463_v47 = vpop.f32.mrb[113].mxu0  ;;  %v1636_v37 = vpop.f32.mrb[113].mxu1  ;;  %3417 = vmatmul.mubr.msk.f32.gmra.mrb[218].mxu1 %vm550_vm0, %v5054_v43  ;;  %3556 = vmatmul.mubr.msk.f32.gmra.mrb[218].mxu0 %vm550_vm0, %v5259_v38 }
 0x238   : > { %2972 = vst [vmem:[%s4783_s10 + $0xbf0] sm:$0xff] %v1463_v47  ;;  %2740 = vst [vmem:[%s4783_s10 + $0x4b0] sm:$0xff] %v1636_v37  ;;  %2302 = vmatprep.mubr.f32.mxu1 %v3922_v0  ;;  %3558 = vmatprep.mubr.msk.f32.mxu0 %vm550_vm0, %v5274_v57 }
 0x23a   : > { %v1467_v32 = vpop.f32.mrb[114].mxu0  ;;  %v1640_v44 = vpop.f32.mrb[114].mxu1 }
 0x23b   : > { %2984 = vst [vmem:[%s4783_s10 + $0xc50] sm:$0xff] %v1467_v32  ;;  %2752 = vst [vmem:[%s4783_s10 + $0x510] sm:$0xff] %v1640_v44  ;;  %v1469_v61 = vpop.f32.mrb[115].mxu0  ;;  %v1642_v49 = vpop.f32.mrb[115].mxu1  ;;  %3418 = vmatmul.mubr.msk.f32.gmra.mrb[220].mxu1 %vm550_vm0, %v5074_v35  ;;  %3559 = vmatmul.mubr.msk.f32.gmra.mrb[220].mxu0 %vm550_vm0, %v5289_v52 }
 0x23c   : > { %2985 = vst [vmem:[%s4783_s10 + $0xc58] sm:$0xff] %v1469_v61  ;;  %2753 = vst [vmem:[%s4783_s10 + $0x518] sm:$0xff] %v1642_v49  ;;  %2308 = vmatprep.mubr.f32.mxu1 %v3922_v0  ;;  %3561 = vmatprep.mubr.msk.f32.mxu0 %vm550_vm0, %v5304_v9 }
 0x23e   : > { %v1473_v38 = vpop.f32.mrb[116].mxu0  ;;  %v1646_v57 = vpop.f32.mrb[116].mxu1 }
 0x23f   : > { %2997 = vst [vmem:[%s4783_s10 + $0xcb8] sm:$0xff] %v1473_v38  ;;  %2765 = vst [vmem:[%s4783_s10 + $0x578] sm:$0xff] %v1646_v57  ;;  %v1475_v55 = vpop.f32.mrb[117].mxu0  ;;  %v1648_v56 = vpop.f32.mrb[117].mxu1  ;;  %3419 = vmatmul.mubr.msk.f32.gmra.mrb[222].mxu1 %vm550_vm0, %v5094_v24  ;;  %3562 = vmatmul.mubr.msk.f32.gmra.mrb[222].mxu0 %vm550_vm0, %v5319_v40 }
 0x240   : > { %2998 = vst [vmem:[%s4783_s10 + $0xcc0] sm:$0xff] %v1475_v55  ;;  %2766 = vst [vmem:[%s4783_s10 + $0x580] sm:$0xff] %v1648_v56  ;;  %2314 = vmatprep.mubr.f32.mxu1 %v3922_v0  ;;  %3564 = vmatprep.mubr.msk.f32.mxu0 %vm550_vm0, %v5334_v6 }
 0x242   : > { %v1479_v52 = vpop.f32.mrb[118].mxu0  ;;  %v1652_v9 = vpop.f32.mrb[118].mxu1 }
 0x243   : > { %3010 = vst [vmem:[%s4783_s10 + $0xd20] sm:$0xff] %v1479_v52  ;;  %2778 = vst [vmem:[%s4783_s10 + $0x5e0] sm:$0xff] %v1652_v9  ;;  %v1481_v58 = vpop.f32.mrb[119].mxu0  ;;  %v1654_v22 = vpop.f32.mrb[119].mxu1  ;;  %3420 = vmatmul.mubr.msk.f32.gmra.mrb[224].mxu1 %vm550_vm0, %v5114_v46  ;;  %3565 = vmatmul.mubr.msk.f32.gmra.mrb[224].mxu0 %vm550_vm0, %v5034_v16 }
 0x244   : > { %3011 = vst [vmem:[%s4783_s10 + $0xd28] sm:$0xff] %v1481_v58  ;;  %2779 = vst [vmem:[%s4783_s10 + $0x5e8] sm:$0xff] %v1654_v22  ;;  %2320 = vmatprep.mubr.f32.mxu1 %v3922_v0  ;;  %3567 = vmatprep.mubr.msk.f32.mxu0 %vm550_vm0, %v5054_v43 }
 0x246   : > { %v1485_v40 = vpop.f32.mrb[120].mxu0  ;;  %v1658_v6 = vpop.f32.mrb[120].mxu1 }
 0x247   : > { %3023 = vst [vmem:[%s4783_s10 + $0xd88] sm:$0xff] %v1485_v40  ;;  %2791 = vst [vmem:[%s4783_s10 + $0x648] sm:$0xff] %v1658_v6  ;;  %v1487_v4 = vpop.f32.mrb[121].mxu0  ;;  %v1660_v51 = vpop.f32.mrb[121].mxu1  ;;  %3421 = vmatmul.mubr.msk.f32.gmra.mrb[226].mxu1 %vm550_vm0, %v5134_v15  ;;  %3568 = vmatmul.mubr.msk.f32.gmra.mrb[226].mxu0 %vm550_vm0, %v5074_v35 }
 0x248   : > { %3024 = vst [vmem:[%s4783_s10 + $0xd90] sm:$0xff] %v1487_v4  ;;  %2792 = vst [vmem:[%s4783_s10 + $0x650] sm:$0xff] %v1660_v51  ;;  %2326 = vmatprep.mubr.f32.mxu1 %v3922_v0  ;;  %3570 = vmatprep.mubr.msk.f32.mxu0 %vm550_vm0, %v5094_v24 }
 0x24a   : > { %v1491_v16 = vpop.f32.mrb[122].mxu0  ;;  %v1664_v43 = vpop.f32.mrb[122].mxu1 }
 0x24b   : > { %3036 = vst [vmem:[%s4783_s10 + $0xdf0] sm:$0xff] %v1491_v16  ;;  %2804 = vst [vmem:[%s4783_s10 + $0x6b0] sm:$0xff] %v1664_v43  ;;  %v1493_v26 = vpop.f32.mrb[123].mxu0  ;;  %v1666_v62 = vpop.f32.mrb[123].mxu1  ;;  %3422 = vmatmul.mubr.msk.f32.gmra.mrb[228].mxu1 %vm550_vm0, %v5154_v59  ;;  %3571 = vmatmul.mubr.msk.f32.gmra.mrb[228].mxu0 %vm550_vm0, %v5114_v46 }
 0x24c   : > { %3037 = vst [vmem:[%s4783_s10 + $0xdf8] sm:$0xff] %v1493_v26  ;;  %2805 = vst [vmem:[%s4783_s10 + $0x6b8] sm:$0xff] %v1666_v62  ;;  %2332 = vmatprep.mubr.f32.mxu1 %v3922_v0  ;;  %3573 = vmatprep.mubr.msk.f32.mxu0 %vm550_vm0, %v5134_v15 }
 0x24e   : > { %v1497_v35 = vpop.f32.mrb[124].mxu0  ;;  %v1670_v24 = vpop.f32.mrb[124].mxu1 }
 0x24f   : > { %3049 = vst [vmem:[%s4783_s10 + $0xe58] sm:$0xff] %v1497_v35  ;;  %2817 = vst [vmem:[%s4783_s10 + $0x718] sm:$0xff] %v1670_v24  ;;  %v1499_v14 = vpop.f32.mrb[125].mxu0  ;;  %v1672_v7 = vpop.f32.mrb[125].mxu1  ;;  %3423 = vmatmul.mubr.msk.f32.gmra.mrb[230].mxu1 %vm550_vm0, %v5174_v27  ;;  %3574 = vmatmul.mubr.msk.f32.gmra.mrb[230].mxu0 %vm550_vm0, %v5154_v59 }
 0x250   : > { %3050 = vst [vmem:[%s4783_s10 + $0xe60] sm:$0xff] %v1499_v14  ;;  %2818 = vst [vmem:[%s4783_s10 + $0x720] sm:$0xff] %v1672_v7  ;;  %2338 = vmatprep.mubr.f32.mxu1 %v3922_v0  ;;  %3576 = vmatprep.mubr.msk.f32.mxu0 %vm550_vm0, %v5174_v27 }
 0x252   : > { %v1676_v46 = vpop.f32.mrb[126].mxu1  ;;  %v1849_v15 = vpop.f32.mrb[126].mxu0 }
 0x253   : > { %2830 = vst [vmem:[%s4783_s10 + $0x780] sm:$0xff] %v1676_v46  ;;  %2598 = vst [vmem:[%s4783_s10 + $0x40] sm:$0xff] %v1849_v15  ;;  %v1678_v63 = vpop.f32.mrb[127].mxu1  ;;  %v1851_v5 = vpop.f32.mrb[127].mxu0  ;;  %3424 = vmatmul.mubr.msk.f32.gmra.mrb[232].mxu1 %vm550_vm0, %v5194_v10  ;;  %3577 = vmatmul.mubr.msk.f32.gmra.mrb[232].mxu0 %vm550_vm0, %v5194_v10 }
 0x254   : > { %2831 = vst [vmem:[%s4783_s10 + $0x788] sm:$0xff] %v1678_v63  ;;  %2599 = vst [vmem:[%s4783_s10 + $0x48] sm:$0xff] %v1851_v5 }
 0x256   : > { %v1682_v0 = vpop.f32.mrb[128].mxu1  ;;  %v1855_v59 = vpop.f32.mrb[128].mxu0 }
 0x257   : > { %2843 = vst [vmem:[%s4783_s10 + $0x7e8] sm:$0xff] %v1682_v0  ;;  %2611 = vst [vmem:[%s4783_s10 + $0xa8] sm:$0xff] %v1855_v59  ;;  %v1684_v27 = vpop.f32.mrb[129].mxu1  ;;  %v1857_v21 = vpop.f32.mrb[129].mxu0 }
 0x258   : > { %2844 = vst [vmem:[%s4783_s10 + $0x7f0] sm:$0xff] %v1684_v27  ;;  %2612 = vst [vmem:[%s4783_s10 + $0xb0] sm:$0xff] %v1857_v21 }
 0x25a   : > { %v1688_v36 = vpop.f32.mrb[130].mxu1  ;;  %v1861_v8 = vpop.f32.mrb[130].mxu0 }
 0x25b   : > { %2856 = vst [vmem:[%s4783_s10 + $0x850] sm:$0xff] %v1688_v36  ;;  %2624 = vst [vmem:[%s4783_s10 + $0x110] sm:$0xff] %v1861_v8  ;;  %v1690_v10 = vpop.f32.mrb[131].mxu1  ;;  %v1863_v54 = vpop.f32.mrb[131].mxu0 }
 0x25c   : > { %2857 = vst [vmem:[%s4783_s10 + $0x858] sm:$0xff] %v1690_v10  ;;  %2625 = vst [vmem:[%s4783_s10 + $0x118] sm:$0xff] %v1863_v54 }
 0x25e   : > { %v1694_v42 = vpop.f32.mrb[132].mxu1  ;;  %v1867_v2 = vpop.f32.mrb[132].mxu0 }
 0x25f   : > { %2869 = vst [vmem:[%s4783_s10 + $0x8b8] sm:$0xff] %v1694_v42  ;;  %2637 = vst [vmem:[%s4783_s10 + $0x178] sm:$0xff] %v1867_v2  ;;  %v1696_v13 = vpop.f32.mrb[133].mxu1  ;;  %v1869_v25 = vpop.f32.mrb[133].mxu0 }
 0x260   : > { %2870 = vst [vmem:[%s4783_s10 + $0x8c0] sm:$0xff] %v1696_v13  ;;  %2638 = vst [vmem:[%s4783_s10 + $0x180] sm:$0xff] %v1869_v25 }
 0x262   : > { %v1700_v33 = vpop.f32.mrb[134].mxu1  ;;  %v1873_v12 = vpop.f32.mrb[134].mxu0 }
 0x263   : > { %2882 = vst [vmem:[%s4783_s10 + $0x920] sm:$0xff] %v1700_v33  ;;  %2650 = vst [vmem:[%s4783_s10 + $0x1e0] sm:$0xff] %v1873_v12  ;;  %v1702_v3 = vpop.f32.mrb[135].mxu1  ;;  %v1875_v19 = vpop.f32.mrb[135].mxu0 }
 0x264   : > { %2883 = vst [vmem:[%s4783_s10 + $0x928] sm:$0xff] %v1702_v3  ;;  %2651 = vst [vmem:[%s4783_s10 + $0x1e8] sm:$0xff] %v1875_v19 }
 0x266   : > { %v1706_v17 = vpop.f32.mrb[136].mxu1  ;;  %v1879_v29 = vpop.f32.mrb[136].mxu0 }
 0x267   : > { %2895 = vst [vmem:[%s4783_s10 + $0x988] sm:$0xff] %v1706_v17  ;;  %2663 = vst [vmem:[%s4783_s10 + $0x248] sm:$0xff] %v1879_v29  ;;  %v1708_v23 = vpop.f32.mrb[137].mxu1  ;;  %v1881_v31 = vpop.f32.mrb[137].mxu0 }
 0x268   : > { %2896 = vst [vmem:[%s4783_s10 + $0x990] sm:$0xff] %v1708_v23  ;;  %2664 = vst [vmem:[%s4783_s10 + $0x250] sm:$0xff] %v1881_v31 }
 0x26a   : > { %v1712_v41 = vpop.f32.mrb[138].mxu1  ;;  %v1885_v28 = vpop.f32.mrb[138].mxu0 }
 0x26b   : > { %2908 = vst [vmem:[%s4783_s10 + $0x9f0] sm:$0xff] %v1712_v41  ;;  %2676 = vst [vmem:[%s4783_s10 + $0x2b0] sm:$0xff] %v1885_v28  ;;  %v1714_v30 = vpop.f32.mrb[139].mxu1  ;;  %v1887_v20 = vpop.f32.mrb[139].mxu0 }
 0x26c   : > { %2909 = vst [vmem:[%s4783_s10 + $0x9f8] sm:$0xff] %v1714_v30  ;;  %2677 = vst [vmem:[%s4783_s10 + $0x2b8] sm:$0xff] %v1887_v20 }
 0x26e   : > { %v1718_v39 = vpop.f32.mrb[140].mxu1  ;;  %v1891_v50 = vpop.f32.mrb[140].mxu0 }
 0x26f   : > { %2921 = vst [vmem:[%s4783_s10 + $0xa58] sm:$0xff] %v1718_v39  ;;  %2689 = vst [vmem:[%s4783_s10 + $0x318] sm:$0xff] %v1891_v50  ;;  %v1720_v1 = vpop.f32.mrb[141].mxu1  ;;  %v1893_v48 = vpop.f32.mrb[141].mxu0 }
 0x270   : > { %2922 = vst [vmem:[%s4783_s10 + $0xa60] sm:$0xff] %v1720_v1  ;;  %2690 = vst [vmem:[%s4783_s10 + $0x320] sm:$0xff] %v1893_v48 }
 0x272   : > { %v1724_v60 = vpop.f32.mrb[142].mxu1  ;;  %v1897_v53 = vpop.f32.mrb[142].mxu0 }
 0x273   : > { %2934 = vst [vmem:[%s4783_s10 + $0xac0] sm:$0xff] %v1724_v60  ;;  %2702 = vst [vmem:[%s4783_s10 + $0x380] sm:$0xff] %v1897_v53  ;;  %v1726_v45 = vpop.f32.mrb[143].mxu1  ;;  %v1899_v34 = vpop.f32.mrb[143].mxu0 }
 0x274   : > { %2935 = vst [vmem:[%s4783_s10 + $0xac8] sm:$0xff] %v1726_v45  ;;  %2703 = vst [vmem:[%s4783_s10 + $0x388] sm:$0xff] %v1899_v34 }
 0x276   : > { %v1730_v11 = vpop.f32.mrb[144].mxu1  ;;  %v1903_v18 = vpop.f32.mrb[144].mxu0 }
 0x277   : > { %2947 = vst [vmem:[%s4783_s10 + $0xb28] sm:$0xff] %v1730_v11  ;;  %2715 = vst [vmem:[%s4783_s10 + $0x3e8] sm:$0xff] %v1903_v18  ;;  %v1732_v47 = vpop.f32.mrb[145].mxu1  ;;  %v1905_v37 = vpop.f32.mrb[145].mxu0 }
 0x278   : > { %2948 = vst [vmem:[%s4783_s10 + $0xb30] sm:$0xff] %v1732_v47  ;;  %2716 = vst [vmem:[%s4783_s10 + $0x3f0] sm:$0xff] %v1905_v37 }
 0x27a   : > { %v1736_v32 = vpop.f32.mrb[146].mxu1  ;;  %v1909_v44 = vpop.f32.mrb[146].mxu0 }
 0x27b   : > { %2960 = vst [vmem:[%s4783_s10 + $0xb90] sm:$0xff] %v1736_v32  ;;  %2728 = vst [vmem:[%s4783_s10 + $0x450] sm:$0xff] %v1909_v44  ;;  %v1738_v61 = vpop.f32.mrb[147].mxu1  ;;  %v1911_v49 = vpop.f32.mrb[147].mxu0 }
 0x27c   : > { %2961 = vst [vmem:[%s4783_s10 + $0xb98] sm:$0xff] %v1738_v61  ;;  %2729 = vst [vmem:[%s4783_s10 + $0x458] sm:$0xff] %v1911_v49 }
 0x27e   : > { %v1742_v38 = vpop.f32.mrb[148].mxu1  ;;  %v1915_v57 = vpop.f32.mrb[148].mxu0 }
 0x27f   : > { %2973 = vst [vmem:[%s4783_s10 + $0xbf8] sm:$0xff] %v1742_v38  ;;  %2741 = vst [vmem:[%s4783_s10 + $0x4b8] sm:$0xff] %v1915_v57  ;;  %v1744_v55 = vpop.f32.mrb[149].mxu1  ;;  %v1917_v56 = vpop.f32.mrb[149].mxu0 }
 0x280   : > { %2974 = vst [vmem:[%s4783_s10 + $0xc00] sm:$0xff] %v1744_v55  ;;  %2742 = vst [vmem:[%s4783_s10 + $0x4c0] sm:$0xff] %v1917_v56 }
 0x282   : > { %v1748_v52 = vpop.f32.mrb[150].mxu1  ;;  %v1921_v9 = vpop.f32.mrb[150].mxu0 }
 0x283   : > { %2986 = vst [vmem:[%s4783_s10 + $0xc60] sm:$0xff] %v1748_v52  ;;  %2754 = vst [vmem:[%s4783_s10 + $0x520] sm:$0xff] %v1921_v9  ;;  %v1750_v58 = vpop.f32.mrb[151].mxu1  ;;  %v1923_v22 = vpop.f32.mrb[151].mxu0 }
 0x284   : > { %2987 = vst [vmem:[%s4783_s10 + $0xc68] sm:$0xff] %v1750_v58  ;;  %2755 = vst [vmem:[%s4783_s10 + $0x528] sm:$0xff] %v1923_v22 }
 0x286   : > { %v1754_v40 = vpop.f32.mrb[152].mxu1  ;;  %v1927_v6 = vpop.f32.mrb[152].mxu0 }
 0x287   : > { %2999 = vst [vmem:[%s4783_s10 + $0xcc8] sm:$0xff] %v1754_v40  ;;  %2767 = vst [vmem:[%s4783_s10 + $0x588] sm:$0xff] %v1927_v6  ;;  %v1756_v4 = vpop.f32.mrb[153].mxu1  ;;  %v1929_v51 = vpop.f32.mrb[153].mxu0 }
 0x288   : > { %3000 = vst [vmem:[%s4783_s10 + $0xcd0] sm:$0xff] %v1756_v4  ;;  %2768 = vst [vmem:[%s4783_s10 + $0x590] sm:$0xff] %v1929_v51 }
 0x28a   : > { %v1760_v16 = vpop.f32.mrb[154].mxu1  ;;  %v1933_v43 = vpop.f32.mrb[154].mxu0 }
 0x28b   : > { %3012 = vst [vmem:[%s4783_s10 + $0xd30] sm:$0xff] %v1760_v16  ;;  %2780 = vst [vmem:[%s4783_s10 + $0x5f0] sm:$0xff] %v1933_v43  ;;  %v1762_v26 = vpop.f32.mrb[155].mxu1  ;;  %v1935_v62 = vpop.f32.mrb[155].mxu0 }
 0x28c   : > { %3013 = vst [vmem:[%s4783_s10 + $0xd38] sm:$0xff] %v1762_v26  ;;  %2781 = vst [vmem:[%s4783_s10 + $0x5f8] sm:$0xff] %v1935_v62 }
 0x28e   : > { %v1766_v35 = vpop.f32.mrb[156].mxu1  ;;  %v1939_v24 = vpop.f32.mrb[156].mxu0 }
 0x28f   : > { %3025 = vst [vmem:[%s4783_s10 + $0xd98] sm:$0xff] %v1766_v35  ;;  %2793 = vst [vmem:[%s4783_s10 + $0x658] sm:$0xff] %v1939_v24  ;;  %v1768_v14 = vpop.f32.mrb[157].mxu1  ;;  %v1941_v7 = vpop.f32.mrb[157].mxu0 }
 0x290   : > { %3026 = vst [vmem:[%s4783_s10 + $0xda0] sm:$0xff] %v1768_v14  ;;  %2794 = vst [vmem:[%s4783_s10 + $0x660] sm:$0xff] %v1941_v7 }
 0x292   : > { %v1772_v46 = vpop.f32.mrb[158].mxu1  ;;  %v1945_v15 = vpop.f32.mrb[158].mxu0 }
 0x293   : > { %3038 = vst [vmem:[%s4783_s10 + $0xe00] sm:$0xff] %v1772_v46  ;;  %2806 = vst [vmem:[%s4783_s10 + $0x6c0] sm:$0xff] %v1945_v15  ;;  %v1774_v63 = vpop.f32.mrb[159].mxu1  ;;  %v1947_v5 = vpop.f32.mrb[159].mxu0 }
 0x294   : > { %3039 = vst [vmem:[%s4783_s10 + $0xe08] sm:$0xff] %v1774_v63  ;;  %2807 = vst [vmem:[%s4783_s10 + $0x6c8] sm:$0xff] %v1947_v5 }
 0x296   : > { %v1778_v0 = vpop.f32.mrb[160].mxu1  ;;  %v1951_v59 = vpop.f32.mrb[160].mxu0 }
 0x297   : > { %3051 = vst [vmem:[%s4783_s10 + $0xe68] sm:$0xff] %v1778_v0  ;;  %2819 = vst [vmem:[%s4783_s10 + $0x728] sm:$0xff] %v1951_v59  ;;  %v1780_v27 = vpop.f32.mrb[161].mxu1  ;;  %v1953_v21 = vpop.f32.mrb[161].mxu0 }
 0x298   : > { %3052 = vst [vmem:[%s4783_s10 + $0xe70] sm:$0xff] %v1780_v27  ;;  %2820 = vst [vmem:[%s4783_s10 + $0x730] sm:$0xff] %v1953_v21 }
 0x29a   : > { %v1957_v36 = vpop.f32.mrb[162].mxu0  ;;  %v2130_v8 = vpop.f32.mrb[162].mxu1 }
 0x29b   : > { %2832 = vst [vmem:[%s4783_s10 + $0x790] sm:$0xff] %v1957_v36  ;;  %2600 = vst [vmem:[%s4783_s10 + $0x50] sm:$0xff] %v2130_v8  ;;  %v1959_v10 = vpop.f32.mrb[163].mxu0  ;;  %v2132_v54 = vpop.f32.mrb[163].mxu1 }
 0x29c   : > { %2833 = vst [vmem:[%s4783_s10 + $0x798] sm:$0xff] %v1959_v10  ;;  %2601 = vst [vmem:[%s4783_s10 + $0x58] sm:$0xff] %v2132_v54 }
 0x29e   : > { %v1963_v42 = vpop.f32.mrb[164].mxu0  ;;  %v2136_v2 = vpop.f32.mrb[164].mxu1 }
 0x29f   : > { %2845 = vst [vmem:[%s4783_s10 + $0x7f8] sm:$0xff] %v1963_v42  ;;  %2613 = vst [vmem:[%s4783_s10 + $0xb8] sm:$0xff] %v2136_v2  ;;  %v1965_v13 = vpop.f32.mrb[165].mxu0  ;;  %v2138_v25 = vpop.f32.mrb[165].mxu1 }
 0x2a0   : > { %2846 = vst [vmem:[%s4783_s10 + $0x800] sm:$0xff] %v1965_v13  ;;  %2614 = vst [vmem:[%s4783_s10 + $0xc0] sm:$0xff] %v2138_v25 }
 0x2a2   : > { %v1969_v33 = vpop.f32.mrb[166].mxu0  ;;  %v2142_v12 = vpop.f32.mrb[166].mxu1 }
 0x2a3   : > { %2858 = vst [vmem:[%s4783_s10 + $0x860] sm:$0xff] %v1969_v33  ;;  %2626 = vst [vmem:[%s4783_s10 + $0x120] sm:$0xff] %v2142_v12  ;;  %v1971_v3 = vpop.f32.mrb[167].mxu0  ;;  %v2144_v19 = vpop.f32.mrb[167].mxu1 }
 0x2a4   : > { %2859 = vst [vmem:[%s4783_s10 + $0x868] sm:$0xff] %v1971_v3  ;;  %2627 = vst [vmem:[%s4783_s10 + $0x128] sm:$0xff] %v2144_v19 }
 0x2a6   : > { %v1975_v17 = vpop.f32.mrb[168].mxu0  ;;  %v2148_v29 = vpop.f32.mrb[168].mxu1 }
 0x2a7   : > { %2871 = vst [vmem:[%s4783_s10 + $0x8c8] sm:$0xff] %v1975_v17  ;;  %2639 = vst [vmem:[%s4783_s10 + $0x188] sm:$0xff] %v2148_v29  ;;  %v1977_v23 = vpop.f32.mrb[169].mxu0  ;;  %v2150_v31 = vpop.f32.mrb[169].mxu1 }
 0x2a8   : > { %2872 = vst [vmem:[%s4783_s10 + $0x8d0] sm:$0xff] %v1977_v23  ;;  %2640 = vst [vmem:[%s4783_s10 + $0x190] sm:$0xff] %v2150_v31 }
 0x2aa   : > { %v1981_v41 = vpop.f32.mrb[170].mxu0  ;;  %v2154_v28 = vpop.f32.mrb[170].mxu1 }
 0x2ab   : > { %2884 = vst [vmem:[%s4783_s10 + $0x930] sm:$0xff] %v1981_v41  ;;  %2652 = vst [vmem:[%s4783_s10 + $0x1f0] sm:$0xff] %v2154_v28  ;;  %v1983_v30 = vpop.f32.mrb[171].mxu0  ;;  %v2156_v20 = vpop.f32.mrb[171].mxu1 }
 0x2ac   : > { %2885 = vst [vmem:[%s4783_s10 + $0x938] sm:$0xff] %v1983_v30  ;;  %2653 = vst [vmem:[%s4783_s10 + $0x1f8] sm:$0xff] %v2156_v20 }
 0x2ae   : > { %v1987_v39 = vpop.f32.mrb[172].mxu0  ;;  %v2160_v50 = vpop.f32.mrb[172].mxu1 }
 0x2af   : > { %2897 = vst [vmem:[%s4783_s10 + $0x998] sm:$0xff] %v1987_v39  ;;  %2665 = vst [vmem:[%s4783_s10 + $0x258] sm:$0xff] %v2160_v50  ;;  %v1989_v1 = vpop.f32.mrb[173].mxu0  ;;  %v2162_v48 = vpop.f32.mrb[173].mxu1 }
 0x2b0   : > { %2898 = vst [vmem:[%s4783_s10 + $0x9a0] sm:$0xff] %v1989_v1  ;;  %2666 = vst [vmem:[%s4783_s10 + $0x260] sm:$0xff] %v2162_v48 }
 0x2b2   : > { %v1993_v60 = vpop.f32.mrb[174].mxu0  ;;  %v2166_v53 = vpop.f32.mrb[174].mxu1 }
 0x2b3   : > { %2910 = vst [vmem:[%s4783_s10 + $0xa00] sm:$0xff] %v1993_v60  ;;  %2678 = vst [vmem:[%s4783_s10 + $0x2c0] sm:$0xff] %v2166_v53  ;;  %v1995_v45 = vpop.f32.mrb[175].mxu0  ;;  %v2168_v34 = vpop.f32.mrb[175].mxu1 }
 0x2b4   : > { %2911 = vst [vmem:[%s4783_s10 + $0xa08] sm:$0xff] %v1995_v45  ;;  %2679 = vst [vmem:[%s4783_s10 + $0x2c8] sm:$0xff] %v2168_v34 }
 0x2b6   : > { %v1999_v11 = vpop.f32.mrb[176].mxu0  ;;  %v2172_v18 = vpop.f32.mrb[176].mxu1 }
 0x2b7   : > { %2923 = vst [vmem:[%s4783_s10 + $0xa68] sm:$0xff] %v1999_v11  ;;  %2691 = vst [vmem:[%s4783_s10 + $0x328] sm:$0xff] %v2172_v18  ;;  %v2001_v47 = vpop.f32.mrb[177].mxu0  ;;  %v2174_v37 = vpop.f32.mrb[177].mxu1 }
 0x2b8   : > { %2924 = vst [vmem:[%s4783_s10 + $0xa70] sm:$0xff] %v2001_v47  ;;  %2692 = vst [vmem:[%s4783_s10 + $0x330] sm:$0xff] %v2174_v37 }
 0x2ba   : > { %v2005_v32 = vpop.f32.mrb[178].mxu0  ;;  %v2178_v44 = vpop.f32.mrb[178].mxu1 }
 0x2bb   : > { %2936 = vst [vmem:[%s4783_s10 + $0xad0] sm:$0xff] %v2005_v32  ;;  %2704 = vst [vmem:[%s4783_s10 + $0x390] sm:$0xff] %v2178_v44  ;;  %v2007_v61 = vpop.f32.mrb[179].mxu0  ;;  %v2180_v49 = vpop.f32.mrb[179].mxu1 }
 0x2bc   : > { %2937 = vst [vmem:[%s4783_s10 + $0xad8] sm:$0xff] %v2007_v61  ;;  %2705 = vst [vmem:[%s4783_s10 + $0x398] sm:$0xff] %v2180_v49 }
 0x2be   : > { %v2011_v38 = vpop.f32.mrb[180].mxu0  ;;  %v2184_v57 = vpop.f32.mrb[180].mxu1 }
 0x2bf   : > { %2949 = vst [vmem:[%s4783_s10 + $0xb38] sm:$0xff] %v2011_v38  ;;  %2717 = vst [vmem:[%s4783_s10 + $0x3f8] sm:$0xff] %v2184_v57  ;;  %v2013_v55 = vpop.f32.mrb[181].mxu0  ;;  %v2186_v56 = vpop.f32.mrb[181].mxu1 }
 0x2c0   : > { %2950 = vst [vmem:[%s4783_s10 + $0xb40] sm:$0xff] %v2013_v55  ;;  %2718 = vst [vmem:[%s4783_s10 + $0x400] sm:$0xff] %v2186_v56 }
 0x2c2   : > { %v2017_v52 = vpop.f32.mrb[182].mxu0  ;;  %v2190_v9 = vpop.f32.mrb[182].mxu1 }
 0x2c3   : > { %2962 = vst [vmem:[%s4783_s10 + $0xba0] sm:$0xff] %v2017_v52  ;;  %2730 = vst [vmem:[%s4783_s10 + $0x460] sm:$0xff] %v2190_v9  ;;  %v2019_v58 = vpop.f32.mrb[183].mxu0  ;;  %v2192_v22 = vpop.f32.mrb[183].mxu1 }
 0x2c4   : > { %2963 = vst [vmem:[%s4783_s10 + $0xba8] sm:$0xff] %v2019_v58  ;;  %2731 = vst [vmem:[%s4783_s10 + $0x468] sm:$0xff] %v2192_v22 }
 0x2c6   : > { %v2023_v40 = vpop.f32.mrb[184].mxu0  ;;  %v2196_v6 = vpop.f32.mrb[184].mxu1 }
 0x2c7   : > { %2975 = vst [vmem:[%s4783_s10 + $0xc08] sm:$0xff] %v2023_v40  ;;  %2743 = vst [vmem:[%s4783_s10 + $0x4c8] sm:$0xff] %v2196_v6  ;;  %v2025_v4 = vpop.f32.mrb[185].mxu0  ;;  %v2198_v51 = vpop.f32.mrb[185].mxu1 }
 0x2c8   : > { %2976 = vst [vmem:[%s4783_s10 + $0xc10] sm:$0xff] %v2025_v4  ;;  %2744 = vst [vmem:[%s4783_s10 + $0x4d0] sm:$0xff] %v2198_v51 }
 0x2ca   : > { %v2029_v16 = vpop.f32.mrb[186].mxu0  ;;  %v2202_v43 = vpop.f32.mrb[186].mxu1 }
 0x2cb   : > { %2988 = vst [vmem:[%s4783_s10 + $0xc70] sm:$0xff] %v2029_v16  ;;  %2756 = vst [vmem:[%s4783_s10 + $0x530] sm:$0xff] %v2202_v43  ;;  %v2031_v26 = vpop.f32.mrb[187].mxu0  ;;  %v2204_v62 = vpop.f32.mrb[187].mxu1 }
 0x2cc   : > { %2989 = vst [vmem:[%s4783_s10 + $0xc78] sm:$0xff] %v2031_v26  ;;  %2757 = vst [vmem:[%s4783_s10 + $0x538] sm:$0xff] %v2204_v62 }
 0x2ce   : > { %v2035_v35 = vpop.f32.mrb[188].mxu0  ;;  %v2208_v24 = vpop.f32.mrb[188].mxu1 }
 0x2cf   : > { %3001 = vst [vmem:[%s4783_s10 + $0xcd8] sm:$0xff] %v2035_v35  ;;  %2769 = vst [vmem:[%s4783_s10 + $0x598] sm:$0xff] %v2208_v24  ;;  %v2037_v14 = vpop.f32.mrb[189].mxu0  ;;  %v2210_v7 = vpop.f32.mrb[189].mxu1 }
 0x2d0   : > { %3002 = vst [vmem:[%s4783_s10 + $0xce0] sm:$0xff] %v2037_v14  ;;  %2770 = vst [vmem:[%s4783_s10 + $0x5a0] sm:$0xff] %v2210_v7 }
 0x2d2   : > { %v2041_v46 = vpop.f32.mrb[190].mxu0  ;;  %v2214_v15 = vpop.f32.mrb[190].mxu1 }
 0x2d3   : > { %3014 = vst [vmem:[%s4783_s10 + $0xd40] sm:$0xff] %v2041_v46  ;;  %2782 = vst [vmem:[%s4783_s10 + $0x600] sm:$0xff] %v2214_v15  ;;  %v2043_v63 = vpop.f32.mrb[191].mxu0  ;;  %v2216_v5 = vpop.f32.mrb[191].mxu1 }
 0x2d4   : > { %3015 = vst [vmem:[%s4783_s10 + $0xd48] sm:$0xff] %v2043_v63  ;;  %2783 = vst [vmem:[%s4783_s10 + $0x608] sm:$0xff] %v2216_v5 }
 0x2d6   : > { %v2047_v0 = vpop.f32.mrb[192].mxu0  ;;  %v2220_v59 = vpop.f32.mrb[192].mxu1 }
 0x2d7   : > { %3027 = vst [vmem:[%s4783_s10 + $0xda8] sm:$0xff] %v2047_v0  ;;  %2795 = vst [vmem:[%s4783_s10 + $0x668] sm:$0xff] %v2220_v59  ;;  %v2049_v27 = vpop.f32.mrb[193].mxu0  ;;  %v2222_v21 = vpop.f32.mrb[193].mxu1 }
 0x2d8   : > { %3028 = vst [vmem:[%s4783_s10 + $0xdb0] sm:$0xff] %v2049_v27  ;;  %2796 = vst [vmem:[%s4783_s10 + $0x670] sm:$0xff] %v2222_v21 }
 0x2da   : > { %v2053_v36 = vpop.f32.mrb[194].mxu0  ;;  %v2226_v8 = vpop.f32.mrb[194].mxu1 }
 0x2db   : > { %3040 = vst [vmem:[%s4783_s10 + $0xe10] sm:$0xff] %v2053_v36  ;;  %2808 = vst [vmem:[%s4783_s10 + $0x6d0] sm:$0xff] %v2226_v8  ;;  %v2055_v10 = vpop.f32.mrb[195].mxu0  ;;  %v2228_v54 = vpop.f32.mrb[195].mxu1 }
 0x2dc   : > { %3041 = vst [vmem:[%s4783_s10 + $0xe18] sm:$0xff] %v2055_v10  ;;  %2809 = vst [vmem:[%s4783_s10 + $0x6d8] sm:$0xff] %v2228_v54 }
 0x2de   : > { %v2059_v42 = vpop.f32.mrb[196].mxu0  ;;  %v2232_v2 = vpop.f32.mrb[196].mxu1 }
 0x2df   : > { %3053 = vst [vmem:[%s4783_s10 + $0xe78] sm:$0xff] %v2059_v42  ;;  %2821 = vst [vmem:[%s4783_s10 + $0x738] sm:$0xff] %v2232_v2  ;;  %v2061_v13 = vpop.f32.mrb[197].mxu0  ;;  %v2234_v25 = vpop.f32.mrb[197].mxu1 }
 0x2e0   : > { %3054 = vst [vmem:[%s4783_s10 + $0xe80] sm:$0xff] %v2061_v13  ;;  %2822 = vst [vmem:[%s4783_s10 + $0x740] sm:$0xff] %v2234_v25 }
 0x2e2   : > { %v2238_v33 = vpop.f32.mrb[198].mxu1  ;;  %v3527_v12 = vpop.f32.mrb[198].mxu0 }
 0x2e3   : > { %2834 = vst [vmem:[%s4783_s10 + $0x7a0] sm:$0xff] %v2238_v33  ;;  %2615 = vst [vmem:[%s4783_s10 + $0xc8] sm:$0xff] %v3527_v12  ;;  %v2240_v3 = vpop.f32.mrb[199].mxu1  ;;  %v2411_v19 = vpop.f32.mrb[199].mxu0 }
 0x2e4   : > { %2835 = vst [vmem:[%s4783_s10 + $0x7a8] sm:$0xff] %v2240_v3  ;;  %2602 = vst [vmem:[%s4783_s10 + $0x60] sm:$0xff] %v2411_v19 }
 0x2e6   : > { %v2244_v17 = vpop.f32.mrb[200].mxu1  ;;  %v3530_v29 = vpop.f32.mrb[200].mxu0 }
 0x2e7   : > { %2847 = vst [vmem:[%s4783_s10 + $0x808] sm:$0xff] %v2244_v17  ;;  %2641 = vst [vmem:[%s4783_s10 + $0x198] sm:$0xff] %v3530_v29  ;;  %v2246_v23 = vpop.f32.mrb[201].mxu1  ;;  %v2421_v31 = vpop.f32.mrb[201].mxu0 }
 0x2e8   : > { %2848 = vst [vmem:[%s4783_s10 + $0x810] sm:$0xff] %v2246_v23  ;;  %2628 = vst [vmem:[%s4783_s10 + $0x130] sm:$0xff] %v2421_v31 }
 0x2ea   : > { %v2250_v41 = vpop.f32.mrb[202].mxu1  ;;  %v3533_v28 = vpop.f32.mrb[202].mxu0 }
 0x2eb   : > { %2860 = vst [vmem:[%s4783_s10 + $0x870] sm:$0xff] %v2250_v41  ;;  %2667 = vst [vmem:[%s4783_s10 + $0x268] sm:$0xff] %v3533_v28  ;;  %v2252_v30 = vpop.f32.mrb[203].mxu1  ;;  %v2431_v20 = vpop.f32.mrb[203].mxu0 }
 0x2ec   : > { %2861 = vst [vmem:[%s4783_s10 + $0x878] sm:$0xff] %v2252_v30  ;;  %2654 = vst [vmem:[%s4783_s10 + $0x200] sm:$0xff] %v2431_v20 }
 0x2ee   : > { %v2256_v39 = vpop.f32.mrb[204].mxu1  ;;  %v3536_v50 = vpop.f32.mrb[204].mxu0 }
 0x2ef   : > { %2873 = vst [vmem:[%s4783_s10 + $0x8d8] sm:$0xff] %v2256_v39  ;;  %2693 = vst [vmem:[%s4783_s10 + $0x338] sm:$0xff] %v3536_v50  ;;  %v2258_v1 = vpop.f32.mrb[205].mxu1  ;;  %v2441_v48 = vpop.f32.mrb[205].mxu0 }
 0x2f0   : > { %2874 = vst [vmem:[%s4783_s10 + $0x8e0] sm:$0xff] %v2258_v1  ;;  %2680 = vst [vmem:[%s4783_s10 + $0x2d0] sm:$0xff] %v2441_v48 }
 0x2f2   : > { %v2262_v60 = vpop.f32.mrb[206].mxu1  ;;  %v3539_v53 = vpop.f32.mrb[206].mxu0 }
 0x2f3   : > { %2886 = vst [vmem:[%s4783_s10 + $0x940] sm:$0xff] %v2262_v60  ;;  %2719 = vst [vmem:[%s4783_s10 + $0x408] sm:$0xff] %v3539_v53  ;;  %v2264_v45 = vpop.f32.mrb[207].mxu1  ;;  %v2451_v34 = vpop.f32.mrb[207].mxu0 }
 0x2f4   : > { %2887 = vst [vmem:[%s4783_s10 + $0x948] sm:$0xff] %v2264_v45  ;;  %2706 = vst [vmem:[%s4783_s10 + $0x3a0] sm:$0xff] %v2451_v34 }
 0x2f6   : > { %v2268_v11 = vpop.f32.mrb[208].mxu1  ;;  %v3542_v18 = vpop.f32.mrb[208].mxu0 }
 0x2f7   : > { %2899 = vst [vmem:[%s4783_s10 + $0x9a8] sm:$0xff] %v2268_v11  ;;  %2745 = vst [vmem:[%s4783_s10 + $0x4d8] sm:$0xff] %v3542_v18  ;;  %v2270_v47 = vpop.f32.mrb[209].mxu1  ;;  %v2461_v37 = vpop.f32.mrb[209].mxu0 }
 0x2f8   : > { %2900 = vst [vmem:[%s4783_s10 + $0x9b0] sm:$0xff] %v2270_v47  ;;  %2732 = vst [vmem:[%s4783_s10 + $0x470] sm:$0xff] %v2461_v37 }
 0x2fa   : > { %v2274_v32 = vpop.f32.mrb[210].mxu1  ;;  %v3545_v44 = vpop.f32.mrb[210].mxu0 }
 0x2fb   : > { %2912 = vst [vmem:[%s4783_s10 + $0xa10] sm:$0xff] %v2274_v32  ;;  %2771 = vst [vmem:[%s4783_s10 + $0x5a8] sm:$0xff] %v3545_v44  ;;  %v2276_v61 = vpop.f32.mrb[211].mxu1  ;;  %v2471_v49 = vpop.f32.mrb[211].mxu0 }
 0x2fc   : > { %2913 = vst [vmem:[%s4783_s10 + $0xa18] sm:$0xff] %v2276_v61  ;;  %2758 = vst [vmem:[%s4783_s10 + $0x540] sm:$0xff] %v2471_v49 }
 0x2fe   : > { %v2280_v38 = vpop.f32.mrb[212].mxu1  ;;  %v3548_v57 = vpop.f32.mrb[212].mxu0 }
 0x2ff   : > { %2925 = vst [vmem:[%s4783_s10 + $0xa78] sm:$0xff] %v2280_v38  ;;  %2797 = vst [vmem:[%s4783_s10 + $0x678] sm:$0xff] %v3548_v57  ;;  %v2282_v55 = vpop.f32.mrb[213].mxu1  ;;  %v2481_v56 = vpop.f32.mrb[213].mxu0 }
 0x300   : > { %2926 = vst [vmem:[%s4783_s10 + $0xa80] sm:$0xff] %v2282_v55  ;;  %2784 = vst [vmem:[%s4783_s10 + $0x610] sm:$0xff] %v2481_v56 }
 0x302   : > { %v2286_v52 = vpop.f32.mrb[214].mxu1  ;;  %v3551_v9 = vpop.f32.mrb[214].mxu0 }
 0x303   : > { %2938 = vst [vmem:[%s4783_s10 + $0xae0] sm:$0xff] %v2286_v52  ;;  %2823 = vst [vmem:[%s4783_s10 + $0x748] sm:$0xff] %v3551_v9  ;;  %v2288_v58 = vpop.f32.mrb[215].mxu1  ;;  %v2491_v22 = vpop.f32.mrb[215].mxu0 }
 0x304   : > { %2939 = vst [vmem:[%s4783_s10 + $0xae8] sm:$0xff] %v2288_v58  ;;  %2810 = vst [vmem:[%s4783_s10 + $0x6e0] sm:$0xff] %v2491_v22 }
 0x306   : > { %v2292_v40 = vpop.f32.mrb[216].mxu1  ;;  %v3554_v6 = vpop.f32.mrb[216].mxu0 }
 0x307   : > { %2951 = vst [vmem:[%s4783_s10 + $0xb48] sm:$0xff] %v2292_v40  ;;  %2849 = vst [vmem:[%s4783_s10 + $0x818] sm:$0xff] %v3554_v6  ;;  %v2294_v4 = vpop.f32.mrb[217].mxu1  ;;  %v2501_v51 = vpop.f32.mrb[217].mxu0 }
 0x308   : > { %2952 = vst [vmem:[%s4783_s10 + $0xb50] sm:$0xff] %v2294_v4  ;;  %2836 = vst [vmem:[%s4783_s10 + $0x7b0] sm:$0xff] %v2501_v51 }
 0x30a   : > { %v2298_v16 = vpop.f32.mrb[218].mxu1  ;;  %v3557_v43 = vpop.f32.mrb[218].mxu0 }
 0x30b   : > { %2964 = vst [vmem:[%s4783_s10 + $0xbb0] sm:$0xff] %v2298_v16  ;;  %2875 = vst [vmem:[%s4783_s10 + $0x8e8] sm:$0xff] %v3557_v43  ;;  %v2300_v26 = vpop.f32.mrb[219].mxu1  ;;  %v2511_v62 = vpop.f32.mrb[219].mxu0 }
 0x30c   : > { %2965 = vst [vmem:[%s4783_s10 + $0xbb8] sm:$0xff] %v2300_v26  ;;  %2862 = vst [vmem:[%s4783_s10 + $0x880] sm:$0xff] %v2511_v62 }
 0x30e   : > { %v2304_v35 = vpop.f32.mrb[220].mxu1  ;;  %v3560_v24 = vpop.f32.mrb[220].mxu0 }
 0x30f   : > { %2977 = vst [vmem:[%s4783_s10 + $0xc18] sm:$0xff] %v2304_v35  ;;  %2901 = vst [vmem:[%s4783_s10 + $0x9b8] sm:$0xff] %v3560_v24  ;;  %v2306_v14 = vpop.f32.mrb[221].mxu1  ;;  %v2521_v7 = vpop.f32.mrb[221].mxu0 }
 0x310   : > { %2978 = vst [vmem:[%s4783_s10 + $0xc20] sm:$0xff] %v2306_v14  ;;  %2888 = vst [vmem:[%s4783_s10 + $0x950] sm:$0xff] %v2521_v7 }
 0x312   : > { %v2310_v46 = vpop.f32.mrb[222].mxu1  ;;  %v3563_v15 = vpop.f32.mrb[222].mxu0 }
 0x313   : > { %2990 = vst [vmem:[%s4783_s10 + $0xc80] sm:$0xff] %v2310_v46  ;;  %2927 = vst [vmem:[%s4783_s10 + $0xa88] sm:$0xff] %v3563_v15  ;;  %v2312_v63 = vpop.f32.mrb[223].mxu1  ;;  %v2531_v5 = vpop.f32.mrb[223].mxu0 }
 0x314   : > { %2991 = vst [vmem:[%s4783_s10 + $0xc88] sm:$0xff] %v2312_v63  ;;  %2914 = vst [vmem:[%s4783_s10 + $0xa20] sm:$0xff] %v2531_v5 }
 0x316   : > { %v2316_v0 = vpop.f32.mrb[224].mxu1  ;;  %v3566_v59 = vpop.f32.mrb[224].mxu0 }
 0x317   : > { %3003 = vst [vmem:[%s4783_s10 + $0xce8] sm:$0xff] %v2316_v0  ;;  %2953 = vst [vmem:[%s4783_s10 + $0xb58] sm:$0xff] %v3566_v59  ;;  %v2318_v27 = vpop.f32.mrb[225].mxu1  ;;  %v2541_v21 = vpop.f32.mrb[225].mxu0 }
 0x318   : > { %3004 = vst [vmem:[%s4783_s10 + $0xcf0] sm:$0xff] %v2318_v27  ;;  %2940 = vst [vmem:[%s4783_s10 + $0xaf0] sm:$0xff] %v2541_v21 }
 0x31a   : > { %v2322_v36 = vpop.f32.mrb[226].mxu1  ;;  %v3569_v8 = vpop.f32.mrb[226].mxu0 }
 0x31b   : > { %3016 = vst [vmem:[%s4783_s10 + $0xd50] sm:$0xff] %v2322_v36  ;;  %2979 = vst [vmem:[%s4783_s10 + $0xc28] sm:$0xff] %v3569_v8  ;;  %v2324_v10 = vpop.f32.mrb[227].mxu1  ;;  %v2551_v54 = vpop.f32.mrb[227].mxu0 }
 0x31c   : > { %3017 = vst [vmem:[%s4783_s10 + $0xd58] sm:$0xff] %v2324_v10  ;;  %2966 = vst [vmem:[%s4783_s10 + $0xbc0] sm:$0xff] %v2551_v54 }
 0x31e   : > { %v2328_v42 = vpop.f32.mrb[228].mxu1  ;;  %v3572_v2 = vpop.f32.mrb[228].mxu0 }
 0x31f   : > { %3029 = vst [vmem:[%s4783_s10 + $0xdb8] sm:$0xff] %v2328_v42  ;;  %3005 = vst [vmem:[%s4783_s10 + $0xcf8] sm:$0xff] %v3572_v2  ;;  %v2330_v13 = vpop.f32.mrb[229].mxu1  ;;  %v2561_v25 = vpop.f32.mrb[229].mxu0 }
 0x320   : > { %3030 = vst [vmem:[%s4783_s10 + $0xdc0] sm:$0xff] %v2330_v13  ;;  %2992 = vst [vmem:[%s4783_s10 + $0xc90] sm:$0xff] %v2561_v25 }
 0x322   : > { %v2334_v33 = vpop.f32.mrb[230].mxu1  ;;  %v3575_v12 = vpop.f32.mrb[230].mxu0  ;;  %3065 = sbr.rel (!%p5925_p8) target bundleno = 839 (0x347), region = 44 }
 0x323   : > { %3042 = vst [vmem:[%s4783_s10 + $0xe20] sm:$0xff] %v2334_v33  ;;  %3031 = vst [vmem:[%s4783_s10 + $0xdc8] sm:$0xff] %v3575_v12  ;;  %v2336_v3 = vpop.f32.mrb[231].mxu1  ;;  %v2571_v19 = vpop.f32.mrb[231].mxu0 }
 0x324   : > { %3043 = vst [vmem:[%s4783_s10 + $0xe28] sm:$0xff] %v2336_v3  ;;  %3018 = vst [vmem:[%s4783_s10 + $0xd60] sm:$0xff] %v2571_v19 }
 0x326   : > { %v2340_v17 = vpop.f32.mrb[232].mxu1  ;;  %v3578_v29 = vpop.f32.mrb[232].mxu0 }
 0x327   : > { %3055 = vst [vmem:[%s4783_s10 + $0xe88] sm:$0xff] %v2340_v17  ;;  %3057 = vst [vmem:[%s4783_s10 + $0xe98] sm:$0xff] %v3578_v29  ;;  %v2342_v23 = vpop.f32.mrb[233].mxu1  ;;  %v2581_v31 = vpop.f32.mrb[233].mxu0 }
 0x328   : > { %3056 = vst [vmem:[%s4783_s10 + $0xe90] sm:$0xff] %v2342_v23  ;;  %3044 = vst [vmem:[%s4783_s10 + $0xe30] sm:$0xff] %v2581_v31 }
 0x329   : > { %s5940_s7 = smov (!%p3068_p4, %s3067_s7), 13 }
 0x32a   : > { %s5849_s19 = smul.u32 4608, %s5940_s7 }
 0x32c   : > { %s3072_s18 = ssub.s32 59904, %s5849_s19 }
 0x32d   : > { %3073 = vsyncadd %s3059_s24, %s3072_s18  ;;  %p3461_p2 = scmp.ne.s32.totalorder %s5849_s19, 0  ;;  %s3470_s25 = smul.u32 1664, %s3906_s15 }
 0x32e   : > { %s3463_s28 = sshll.u32 %s5940_s7, 3  ;;  %s3081_s5 = sshll.u32 %s4783_s10, 4  ;;  %s5863_s5 = int_to_ptr.vmem [resolvable:$true] %s3081_s5 }
 0x32f   : > { %s5861_s21 = scalar_lea.hbm %s5919_s3, %s3470_s25  ;;  %s3828_s23 = scalar_lea.vmem %s5863_s5, %s5849_s19 }
 0x330   : > { %p3829_p5 = scmp.ne.s32.totalorder %s5863_s5, %s3828_s23  ;;  %s3923_s29 = smov [#allocation7]  }
 0x331   : > { %s3832_s6 = sshll.u32 %s3923_s29, 4  ;;  %s3833_s6 = int_to_ptr.vmem [resolvable:$false] %s3832_s6 }
 0x332   : > { %p3830_p6 = pnand %p3829_p5, %p3461_p2  ;;  %s3834_s15 = scalar_lea.vmem %s3833_s6, 119808 }
 0x333   : > { %p3835_p9 = scmp.lt.s32.totalorder %s5863_s5, %s3833_s6  ;;  %p3836_p11 = scmp.lt.s32.totalorder %s3834_s15, %s3828_s23 }
 0x334   : > { %p3831_p7 = pneg %p3830_p6 }
 0x335   : > { %p3837_p12 = por %p3836_p11, %p3835_p9 }
 0x337   : > { %p3838_p3 = pnand %p3837_p12, %p3831_p7 }
 0x339   : > { %3841 = shalt.err (!%p3838_p3)
}
 0x33a   : > { %s3842_s10 = scalar_lea.hbm %s5861_s21, %s5849_s19  ;;  %s3846_s4 = scalar_lea.hbm %s5919_s3, 115200 }
 0x33b   : > { %p3843_p10 = scmp.ne.s32.totalorder %s5861_s21, %s3842_s10  ;;  %p3847_p1 = scmp.lt.u32.totalorder %s5861_s21, %s5919_s3 }
 0x33c   : > { %p3848_p8 = scmp.lt.u32.totalorder %s3846_s4, %s3842_s10  ;;  %p3850_p5 = scmp.lt.u32.totalorder %s3842_s10, %s5861_s21 }
 0x33d   : > { %p3844_p0 = pnand %p3843_p10, %p3461_p2 }
 0x33e   : > { %p3849_p4 = por %p3848_p8, %p3847_p1 }
 0x33f   : > { %p3845_p13 = pneg %p3844_p0 }
 0x340   : > { %p3851_p6 = por %p3850_p5, %p3849_p4 }
 0x342   : > { %p3852_p7 = pnand %p3851_p6, %p3845_p13 }
 0x344   : > { %3855 = shalt.err (!%p3852_p7)
}
 0x345   : > { %s3924_s22 = smov 1664   ;;  %s3925_s11 = smov 3200  }
 0x346   : > { %3087 = dma.vmem_to_hbm [thread:$0]  (%p3461_p2), %s5863_s5, %s5849_s19, %s5861_s21, %s3059_s24, %s3924_s22, %s3925_s11, %s3463_s28  }
 0x347 PF: > { %s3096_s23 = sand.u32 1, %s3894_s12   ;;  %p5926_p9 = scmp.ne.s32.totalorder %s5924_s27, 0 }
 0x348   : > { %p5927_p11 = scmp.ge.s32.totalorder %s3914_s17, 2  ;;  %s3097_s29 = scalar_lea.sflag [#allocation4], %s3096_s23 }
 0x34a   : > { %p3677_p12 = pnand %p5927_p11, %p5926_p9 }
 0x34c   : > { %3889 = dma.done.wait (!%p3677_p12), %s3097_s29, 59904  }
 0x34d   : > { %3891 = vsyncadd (!%p3677_p12), %s3097_s29, 4294907392  ;;  %s22_s17 = sadd.s32 1, %s3914_s17   ;;  %s5928_s12 = smov %s3898_s13 }
 0x34e   : > { %p19_p3 = scmp.ge.s32.totalorder %s22_s17, 4   ;;  %s5929_s13 = smov %s3902_s14 }
 0x34f   : > { %s5930_s14 = smov %s4002_s26  ;;  %s5931_s15 = smov %s3910_s16 }
 0x350   : > { %s5932_s16 = smov %s5934_s20  ;;  %21 = sbr.rel (!%p19_p3) target bundleno = 8 (0x8), region = 90 }
 0x357   :  { %3102 = vsyncpa [#allocation3], 1 }
 0x358   :  { %3104 = vsyncpa [#allocation3 + $0x1], 1 }
 0x359   :  { %3105 = vsyncpa [#allocation6], 1 }
 0x35a   :  { %3107 = vsyncpa [#allocation6 + $0x1], 1 }
 0x35b   :  { %3108 = vsyncpa [#allocation4], 1 }
 0x35c   :  { %3110 = vsyncpa [#allocation4 + $0x1], 1 }

</bundles_post_ra>
